<compile_context>
chip_gen: v7x
topology: tpu7x:2x2x1
jax: 0.10.0
libtpu: 0.0.40
codegen_flags: <defaults>
</compile_context>

<pallas_src>
import math
from functools import partial

import jax
import jax.numpy as jnp
from jax.experimental import pallas as pl
from jax.experimental.pallas import tpu as pltpu

TILE_P = 512   # pixel (lane) tile
LANE = 128


def _round_up(n, m):
    return ((n + m - 1) // m) * m


# ----------------------------------------------------------------------------
# Pallas kernels: fused  W @ A + b  with optional ReLU / GDN / IGDN epilogue.
# A is (K, T) bf16 (pixels on lanes), W is (C, K) bf16, output (C, T) f32.
# ----------------------------------------------------------------------------
def _matmul_bias_kernel(a_ref, w_ref, b_ref, o_ref, *, act):
    acc = jnp.dot(w_ref[...], a_ref[...], preferred_element_type=jnp.float32)
    acc = acc + b_ref[...]
    if act == "relu":
        acc = jnp.maximum(acc, 0.0)
    o_ref[...] = acc


def _matmul_gdn_kernel(a_ref, w_ref, b_ref, g_ref, beta_ref, o_ref, *, act):
    acc = jnp.dot(w_ref[...], a_ref[...], preferred_element_type=jnp.float32)
    acc = acc + b_ref[...]
    norm = jnp.dot(g_ref[...], acc * acc,
                   preferred_element_type=jnp.float32) + beta_ref[...]
    if act == "igdn":
        o_ref[...] = acc * jnp.sqrt(norm)
    else:  # "gdn": rsqrt goes to the EUP slot instead of a VALU divide
        o_ref[...] = acc * jax.lax.rsqrt(norm)


def fused_matmul(A, Wm, b, act="none", gamma=None, beta=None):
    """out (C, P) = Wm (C, K) @ A (K, P) + b, fused activation epilogue."""
    K, P = A.shape
    C = Wm.shape[0]
    T = min(TILE_P, _round_up(P, LANE))      # lane-dense tile, never > array
    Pp = _round_up(P, T)
    A = A.astype(jnp.bfloat16)
    if Pp != P:
        A = jnp.pad(A, ((0, 0), (0, Pp - P)))
    Wm = Wm.astype(jnp.bfloat16)
    b2 = b.astype(jnp.float32).reshape(C, 1)

    if gamma is None:
        kern = partial(_matmul_bias_kernel, act=act)
        inputs = (A, Wm, b2)
        in_specs = [
            pl.BlockSpec((K, T), lambda i: (0, i)),   # pixel-tiled activations
            pl.BlockSpec((C, K), lambda i: (0, 0)),   # resident weights
            pl.BlockSpec((C, 1), lambda i: (0, 0)),
        ]
    else:
        kern = partial(_matmul_gdn_kernel, act=act)
        inputs = (A, Wm, b2,
                  gamma.astype(jnp.float32),
                  beta.astype(jnp.float32).reshape(C, 1))
        in_specs = [
            pl.BlockSpec((K, T), lambda i: (0, i)),
            pl.BlockSpec((C, K), lambda i: (0, 0)),
            pl.BlockSpec((C, 1), lambda i: (0, 0)),
            pl.BlockSpec((C, C), lambda i: (0, 0)),
            pl.BlockSpec((C, 1), lambda i: (0, 0)),
        ]

    out = pl.pallas_call(
        kern,
        out_shape=jax.ShapeDtypeStruct((C, Pp), jnp.float32),
        grid=(Pp // T,),
        in_specs=in_specs,
        out_specs=pl.BlockSpec((C, T), lambda i: (0, i)),
        compiler_params=pltpu.CompilerParams(dimension_semantics=("parallel",)),
    )(*inputs)
    if Pp != P:
        out = out[:, :P]
    return out


# ----------------------------------------------------------------------------
# Conv / transposed-conv wrappers (channel-major activations: (C, B, H, W))
# ----------------------------------------------------------------------------
def _im2col(xp, k, stride):
    """xp: padded (Cin, B, Hp, Wp) -> A (k*k*Cin, B*Ho*Wo), rows tap-major."""
    Cin, B, Hp, Wp = xp.shape
    Ho = (Hp - k) // stride + 1
    Wo = (Wp - k) // stride + 1
    taps = []
    for di in range(k):
        for dj in range(k):
            taps.append(xp[:, :, di:di + stride * (Ho - 1) + 1:stride,
                           dj:dj + stride * (Wo - 1) + 1:stride])
    A = jnp.stack(taps, 0).reshape(k * k * Cin, B * Ho * Wo)
    return A, (B, Ho, Wo)


def conv2d(x, w, b, stride, act="none", gamma=None, beta=None):
    """x: (Cin, B, H, W); w: (Cout, Cin, k, k) (PyTorch Conv2d, padding=k//2)."""
    Cout, Cin, k, _ = w.shape
    p = k // 2
    xp = jnp.pad(x, ((0, 0), (0, 0), (p, p), (p, p)))
    A, (B, Ho, Wo) = _im2col(xp, k, stride)
    Wm = jnp.transpose(w, (0, 2, 3, 1)).reshape(Cout, k * k * Cin)
    out = fused_matmul(A, Wm, b, act=act, gamma=gamma, beta=beta)
    return out.reshape(Cout, B, Ho, Wo)


def _deconv_phase_weight(w):
    """ConvTranspose2d weight (Cin, Cout, 5, 5) -> sub-pixel weight (4*Cout, 9*Cin).

    Output row block p = 2*pi + pj (row/col parity of the output pixel), column
    block = union tap (ju, jv) over the 3x3 input window x[m-1+ju, n-1+jv].
    Even phase uses kernel taps 4-2j, odd phase uses 5-2j (j>=1); unused taps = 0.
    """
    Cin, Cout, k, _ = w.shape
    assert k == 5
    Weff = jnp.zeros((4 * Cout, 9 * Cin), w.dtype)
    for pi in range(2):
        for ju in range(3):
            kh = 4 - 2 * ju if pi == 0 else 5 - 2 * ju
            if not (0 <= kh < k):
                continue
            for pj in range(2):
                for jv in range(3):
                    kw = 4 - 2 * jv if pj == 0 else 5 - 2 * jv
                    if not (0 <= kw < k):
                        continue
                    r0 = (pi * 2 + pj) * Cout
                    c0 = (ju * 3 + jv) * Cin
                    Weff = Weff.at[r0:r0 + Cout, c0:c0 + Cin].set(w[:, :, kh, kw].T)
    return Weff


def deconv2d(x, w, b, act="none", gamma=None, beta=None):
    """ConvTranspose2d(k=5, s=2, padding=2, output_padding=1) via sub-pixel phases."""
    Cin, Cout, k, _ = w.shape
    _, B, H, W = x.shape
    xp = jnp.pad(x, ((0, 0), (0, 0), (1, 1), (1, 1)))
    A, _ = _im2col(xp, 3, 1)                       # (9*Cin, B*H*W), stride-1
    Weff = _deconv_phase_weight(w)                 # (4*Cout, 9*Cin)
    beff = jnp.tile(b, 4)
    geff = None if gamma is None else jnp.kron(jnp.eye(4, dtype=jnp.float32), gamma)
    bteff = None if beta is None else jnp.tile(beta, 4)
    out = fused_matmul(A, Weff, beff, act=act, gamma=geff, beta=bteff)  # (4*Cout, P)
    # pixel shuffle: out[c, b, 2m+pi, 2n+pj] = phases[pi, pj, c, b, m, n]
    out = out.reshape(2, 2, Cout, B, H, W)
    out = jnp.transpose(out, (2, 3, 4, 0, 5, 1)).reshape(Cout, B, 2 * H, 2 * W)
    return out


# ----------------------------------------------------------------------------
# Entropy models (elementwise glue, tiny tensors, plain JAX)
# ----------------------------------------------------------------------------
def entropy_bottleneck_fwd(eb_params, z, key):
    """Factorized prior, training-mode (uniform noise) quantization. z: (C,B,h,w)."""
    C = z.shape[0]
    noise = jax.random.uniform(key, z.shape, jnp.float32, -0.5, 0.5)
    z_hat = z + noise
    v = z_hat.reshape(C, 1, -1)

    def logits_cumulative(inp):
        logits = inp
        for matrix, bias, factor in eb_params:
            logits = jnp.matmul(jax.nn.softplus(matrix), logits) + bias
            if factor is not None:
                logits = logits + jnp.tanh(factor) * jnp.tanh(logits)
        return logits

    lower = logits_cumulative(v - 0.5)
    upper = logits_cumulative(v + 0.5)
    sign = -jnp.sign(lower + upper)
    lik = jnp.abs(jax.nn.sigmoid(sign * upper) - jax.nn.sigmoid(sign * lower))
    lik = jnp.maximum(lik, 1e-9)
    return z_hat, lik.reshape(z.shape)


def gaussian_conditional_fwd(y, scales, key):
    """GaussianConditional(None): scale lower bound 0.11, erfc CDF."""
    noise = jax.random.uniform(key, y.shape, jnp.float32, -0.5, 0.5)
    y_hat = y + noise
    s = jnp.maximum(scales, 0.11)
    values = jnp.abs(y_hat)
    const = -(2.0 ** -0.5)
    upper = 0.5 * jax.scipy.special.erfc(const * ((0.5 - values) / s))
    lower = 0.5 * jax.scipy.special.erfc(const * ((-0.5 - values) / s))
    lik = jnp.maximum(upper - lower, 1e-9)
    return y_hat, lik


# ----------------------------------------------------------------------------
# Parameter init (deterministic, synthetic)
# ----------------------------------------------------------------------------
def init_params(key, N, M):
    keys = iter(jax.random.split(key, 64))

    def conv_w(cout, cin, k):
        fan_in = cin * k * k
        return jax.random.normal(next(keys), (cout, cin, k, k), jnp.float32) / math.sqrt(fan_in)

    def deconv_w(cin, cout, k):
        fan_in = cin * k * k
        return jax.random.normal(next(keys), (cin, cout, k, k), jnp.float32) / math.sqrt(fan_in)

    def bias(c):
        return 0.01 * jax.random.normal(next(keys), (c,), jnp.float32)

    params = {}
    params["g_a"] = [(conv_w(N, 3, 5), bias(N)), (conv_w(N, N, 5), bias(N)),
                     (conv_w(N, N, 5), bias(N)), (conv_w(M, N, 5), bias(M))]
    params["g_a_gdn"] = [(jnp.ones((N,), jnp.float32), 0.1 * jnp.eye(N, dtype=jnp.float32))
                         for _ in range(3)]
    params["g_s"] = [(deconv_w(M, N, 5), bias(N)), (deconv_w(N, N, 5), bias(N)),
                     (deconv_w(N, N, 5), bias(N)), (deconv_w(N, 3, 5), bias(3))]
    params["g_s_gdn"] = [(jnp.ones((N,), jnp.float32), 0.1 * jnp.eye(N, dtype=jnp.float32))
                         for _ in range(3)]
    params["h_a"] = [(conv_w(N, M, 3), bias(N)), (conv_w(N, N, 5), bias(N)),
                     (conv_w(N, N, 5), bias(N))]
    params["h_s"] = [(deconv_w(N, N, 5), bias(N)), (deconv_w(N, N, 5), bias(N)),
                     (conv_w(M, N, 3), bias(M))]

    # EntropyBottleneck(N): filters=(3,3,3), init_scale=10
    filters = (1, 3, 3, 3, 1)
    scale = 10.0 ** (1.0 / (len(filters) - 1))
    eb = []
    for i in range(len(filters) - 1):
        init = math.log(math.expm1(1.0 / scale / filters[i + 1]))
        matrix = jnp.full((N, filters[i + 1], filters[i]), init, jnp.float32)
        b = jax.random.uniform(next(keys), (N, filters[i + 1], 1), jnp.float32, -0.5, 0.5)
        factor = (jnp.zeros((N, filters[i + 1], 1), jnp.float32)
                  if i < len(filters) - 2 else None)
        eb.append((matrix, b, factor))
    params["eb"] = eb
    return params


# ----------------------------------------------------------------------------
# ScaleHyperprior forward (activations are channel-major (C, B, H, W))
# ----------------------------------------------------------------------------
def g_a_fwd(p, x):
    h = x
    for i in range(3):
        w, b = p["g_a"][i]
        beta, gamma = p["g_a_gdn"][i]
        h = conv2d(h, w, b, stride=2, act="gdn", gamma=gamma, beta=beta)
    w, b = p["g_a"][3]
    return conv2d(h, w, b, stride=2)


def g_s_fwd(p, y):
    h = y
    for i in range(3):
        w, b = p["g_s"][i]
        beta, gamma = p["g_s_gdn"][i]
        h = deconv2d(h, w, b, act="igdn", gamma=gamma, beta=beta)
    w, b = p["g_s"][3]
    return deconv2d(h, w, b)


def h_a_fwd(p, y_abs):
    (w0, b0), (w1, b1), (w2, b2) = p["h_a"]
    h = conv2d(y_abs, w0, b0, stride=1, act="relu")
    h = conv2d(h, w1, b1, stride=2, act="relu")
    return conv2d(h, w2, b2, stride=2)


def h_s_fwd(p, z_hat):
    (w0, b0), (w1, b1), (w2, b2) = p["h_s"]
    h = deconv2d(z_hat, w0, b0, act="relu")
    h = deconv2d(h, w1, b1, act="relu")
    return conv2d(h, w2, b2, stride=1, act="relu")


def scale_hyperprior_forward(params, x_nchw, key):
    x = jnp.transpose(x_nchw, (1, 0, 2, 3))        # NCHW -> (C, B, H, W)
    y = g_a_fwd(params, x)
    z = h_a_fwd(params, jnp.abs(y))
    k1, k2 = jax.random.split(key)
    z_hat, z_lik = entropy_bottleneck_fwd(params["eb"], z, k1)
    scales_hat = h_s_fwd(params, z_hat)
    y_hat, y_lik = gaussian_conditional_fwd(y, scales_hat, k2)
    x_hat = g_s_fwd(params, y_hat)
    to_nchw = lambda t: jnp.transpose(t, (1, 0, 2, 3))
    # TODO(synk): compress()/decompress() (range coding with quantized CDFs) has no
    # Pallas equivalent and is not part of forward(); only forward() is implemented.
    return {"x_hat": to_nchw(x_hat),
            "likelihoods": {"y": to_nchw(y_lik), "z": to_nchw(z_lik)}}


if __name__ == "__main__":
    N, M = 8, 12
    B, H, W = 2, 64, 64  # spatial must be a multiple of downsampling_factor = 64
    key = jax.random.PRNGKey(0)
    kp, kx, kq = jax.random.split(key, 3)
    params = init_params(kp, N, M)
    x = jax.random.uniform(kx, (B, 3, H, W), jnp.float32)

    fwd = jax.jit(partial(scale_hyperprior_forward, params))
    out = fwd(x, kq)
    jax.block_until_ready(out)

    assert out["x_hat"].shape == (B, 3, H, W)
    assert out["likelihoods"]["y"].shape == (B, M, H // 16, W // 16)
    assert out["likelihoods"]["z"].shape == (B, N, H // 64, W // 64)
    assert bool(jnp.all(jnp.isfinite(out["x_hat"])))
    assert bool(jnp.all(out["likelihoods"]["y"] >= 1e-9))
    assert bool(jnp.all(out["likelihoods"]["z"] >= 1e-9))
    print("KERNEL_OK")
</pallas_src>

<mosaic_0001>
module attributes {stable_mosaic.version = 11 : i64} {
  func.func @_matmul_gdn_kernel(%arg0: i32, %arg1: memref<75x512xbf16, #tpu.memory_space<vmem>>, %arg2: memref<8x75xbf16, #tpu.memory_space<vmem>>, %arg3: memref<8x1xf32, #tpu.memory_space<vmem>>, %arg4: memref<8x8xf32, #tpu.memory_space<vmem>>, %arg5: memref<8x1xf32, #tpu.memory_space<vmem>>, %arg6: memref<8x512xf32, #tpu.memory_space<vmem>>) attributes {dimension_semantics = [#tpu.dimension_semantics<parallel>], iteration_bounds = array<i64: 4>, scalar_prefetch = 0 : i64, scratch_operands = 0 : i64, tpu.core_type = #tpu.core_type<tc>, window_params = [{transform_indices = @transform_0, window_bounds = array<i64: 75, 512>}, {pipeline_mode = #tpu.pipeline_mode<synchronous>, transform_indices = @transform_1, window_bounds = array<i64: 8, 75>}, {pipeline_mode = #tpu.pipeline_mode<synchronous>, transform_indices = @transform_2, window_bounds = array<i64: 8, 1>}, {pipeline_mode = #tpu.pipeline_mode<synchronous>, transform_indices = @transform_3, window_bounds = array<i64: 8, 8>}, {pipeline_mode = #tpu.pipeline_mode<synchronous>, transform_indices = @transform_4, window_bounds = array<i64: 8, 1>}, {transform_indices = @transform_5, window_bounds = array<i64: 8, 512>}]} {
    %c0 = arith.constant 0 : index
    %c0_0 = arith.constant 0 : index
    %0 = vector.load %arg2[%c0, %c0_0] : memref<8x75xbf16, #tpu.memory_space<vmem>>, vector<8x75xbf16>
    %c0_1 = arith.constant 0 : index
    %c0_2 = arith.constant 0 : index
    %1 = vector.load %arg1[%c0_1, %c0_2] : memref<75x512xbf16, #tpu.memory_space<vmem>>, vector<75x512xbf16>
    %cst = arith.constant dense<0.000000e+00> : vector<8x512xf32>
    %2 = tpu.matmul %0, %1, %cst {dimension_numbers = #tpu.dot_dimension_numbers<[1], [0], [0], [1], [0, 0, 1, 1], [], []>} : vector<8x75xbf16>, vector<75x512xbf16>, vector<8x512xf32> -> vector<8x512xf32>
    %c0_3 = arith.constant 0 : index
    %c0_4 = arith.constant 0 : index
    %3 = vector.load %arg3[%c0_3, %c0_4] : memref<8x1xf32, #tpu.memory_space<vmem>>, vector<8x1xf32>
    %4 = vector.broadcast %3 : vector<8x1xf32> to vector<8x512xf32>
    %5 = arith.addf %2, %4 : vector<8x512xf32>
    %c0_5 = arith.constant 0 : index
    %c0_6 = arith.constant 0 : index
    %6 = vector.load %arg4[%c0_5, %c0_6] : memref<8x8xf32, #tpu.memory_space<vmem>>, vector<8x8xf32>
    %7 = arith.mulf %5, %5 : vector<8x512xf32>
    %cst_7 = arith.constant dense<0.000000e+00> : vector<8x512xf32>
    %8 = tpu.matmul %6, %7, %cst_7 {dimension_numbers = #tpu.dot_dimension_numbers<[1], [0], [0], [1], [0, 0, 1, 1], [], []>} : vector<8x8xf32>, vector<8x512xf32>, vector<8x512xf32> -> vector<8x512xf32>
    %c0_8 = arith.constant 0 : index
    %c0_9 = arith.constant 0 : index
    %9 = vector.load %arg5[%c0_8, %c0_9] : memref<8x1xf32, #tpu.memory_space<vmem>>, vector<8x1xf32>
    %10 = vector.broadcast %9 : vector<8x1xf32> to vector<8x512xf32>
    %11 = arith.addf %8, %10 : vector<8x512xf32>
    %12 = math.rsqrt %11 : vector<8x512xf32>
    %13 = arith.mulf %5, %12 : vector<8x512xf32>
    %c0_10 = arith.constant 0 : index
    %c0_11 = arith.constant 0 : index
    %14 = vector.load %arg6[%c0_10, %c0_11] : memref<8x512xf32, #tpu.memory_space<vmem>>, vector<8x512xf32>
    tpu.vector_store %arg6[%c0_10, %c0_11], %13 {strides = array<i32>} : memref<8x512xf32, #tpu.memory_space<vmem>>, vector<8x512xf32>,
    return
  }
  func.func @transform_0(%arg0: i32) -> (i32, i32) {
    %c0_i32 = arith.constant 0 : i32
    %c0_i32_0 = arith.constant 0 : i32
    return %c0_i32, %arg0 : i32, i32
  }
  func.func @transform_1(%arg0: i32) -> (i32, i32) {
    %c0_i32 = arith.constant 0 : i32
    %c0_i32_0 = arith.constant 0 : i32
    %c0_i32_1 = arith.constant 0 : i32
    return %c0_i32, %c0_i32_0 : i32, i32
  }
  func.func @transform_2(%arg0: i32) -> (i32, i32) {
    %c0_i32 = arith.constant 0 : i32
    %c0_i32_0 = arith.constant 0 : i32
    %c0_i32_1 = arith.constant 0 : i32
    return %c0_i32, %c0_i32_0 : i32, i32
  }
  func.func @transform_3(%arg0: i32) -> (i32, i32) {
    %c0_i32 = arith.constant 0 : i32
    %c0_i32_0 = arith.constant 0 : i32
    %c0_i32_1 = arith.constant 0 : i32
    return %c0_i32, %c0_i32_0 : i32, i32
  }
  func.func @transform_4(%arg0: i32) -> (i32, i32) {
    %c0_i32 = arith.constant 0 : i32
    %c0_i32_0 = arith.constant 0 : i32
    %c0_i32_1 = arith.constant 0 : i32
    return %c0_i32, %c0_i32_0 : i32, i32
  }
  func.func @transform_5(%arg0: i32) -> (i32, i32) {
    %c0_i32 = arith.constant 0 : i32
    %c0_i32_0 = arith.constant 0 : i32
    return %c0_i32, %arg0 : i32, i32
  }
}

module attributes {stable_mosaic.version = 11 : i64} {
  func.func @_matmul_gdn_kernel(%arg0: i32, %arg1: memref<200x512xbf16, #tpu.memory_space<vmem>>, %arg2: memref<8x200xbf16, #tpu.memory_space<vmem>>, %arg3: memref<8x1xf32, #tpu.memory_space<vmem>>, %arg4: memref<8x8xf32, #tpu.memory_space<vmem>>, %arg5: memref<8x1xf32, #tpu.memory_space<vmem>>, %arg6: memref<8x512xf32, #tpu.memory_space<vmem>>) attributes {dimension_semantics = [#tpu.dimension_semantics<parallel>], iteration_bounds = array<i64: 1>, scalar_prefetch = 0 : i64, scratch_operands = 0 : i64, tpu.core_type = #tpu.core_type<tc>, window_params = [{transform_indices = @transform_0, window_bounds = array<i64: 200, 512>}, {pipeline_mode = #tpu.pipeline_mode<synchronous>, transform_indices = @transform_1, window_bounds = array<i64: 8, 200>}, {pipeline_mode = #tpu.pipeline_mode<synchronous>, transform_indices = @transform_2, window_bounds = array<i64: 8, 1>}, {pipeline_mode = #tpu.pipeline_mode<synchronous>, transform_indices = @transform_3, window_bounds = array<i64: 8, 8>}, {pipeline_mode = #tpu.pipeline_mode<synchronous>, transform_indices = @transform_4, window_bounds = array<i64: 8, 1>}, {transform_indices = @transform_5, window_bounds = array<i64: 8, 512>}]} {
    %c0 = arith.constant 0 : index
    %c0_0 = arith.constant 0 : index
    %0 = vector.load %arg2[%c0, %c0_0] : memref<8x200xbf16, #tpu.memory_space<vmem>>, vector<8x200xbf16>
    %c0_1 = arith.constant 0 : index
    %c0_2 = arith.constant 0 : index
    %1 = vector.load %arg1[%c0_1, %c0_2] : memref<200x512xbf16, #tpu.memory_space<vmem>>, vector<200x512xbf16>
    %cst = arith.constant dense<0.000000e+00> : vector<8x512xf32>
    %2 = tpu.matmul %0, %1, %cst {dimension_numbers = #tpu.dot_dimension_numbers<[1], [0], [0], [1], [0, 0, 1, 1], [], []>} : vector<8x200xbf16>, vector<200x512xbf16>, vector<8x512xf32> -> vector<8x512xf32>
    %c0_3 = arith.constant 0 : index
    %c0_4 = arith.constant 0 : index
    %3 = vector.load %arg3[%c0_3, %c0_4] : memref<8x1xf32, #tpu.memory_space<vmem>>, vector<8x1xf32>
    %4 = vector.broadcast %3 : vector<8x1xf32> to vector<8x512xf32>
    %5 = arith.addf %2, %4 : vector<8x512xf32>
    %c0_5 = arith.constant 0 : index
    %c0_6 = arith.constant 0 : index
    %6 = vector.load %arg4[%c0_5, %c0_6] : memref<8x8xf32, #tpu.memory_space<vmem>>, vector<8x8xf32>
    %7 = arith.mulf %5, %5 : vector<8x512xf32>
    %cst_7 = arith.constant dense<0.000000e+00> : vector<8x512xf32>
    %8 = tpu.matmul %6, %7, %cst_7 {dimension_numbers = #tpu.dot_dimension_numbers<[1], [0], [0], [1], [0, 0, 1, 1], [], []>} : vector<8x8xf32>, vector<8x512xf32>, vector<8x512xf32> -> vector<8x512xf32>
    %c0_8 = arith.constant 0 : index
    %c0_9 = arith.constant 0 : index
    %9 = vector.load %arg5[%c0_8, %c0_9] : memref<8x1xf32, #tpu.memory_space<vmem>>, vector<8x1xf32>
    %10 = vector.broadcast %9 : vector<8x1xf32> to vector<8x512xf32>
    %11 = arith.addf %8, %10 : vector<8x512xf32>
    %12 = math.rsqrt %11 : vector<8x512xf32>
    %13 = arith.mulf %5, %12 : vector<8x512xf32>
    %c0_10 = arith.constant 0 : index
    %c0_11 = arith.constant 0 : index
    %14 = vector.load %arg6[%c0_10, %c0_11] : memref<8x512xf32, #tpu.memory_space<vmem>>, vector<8x512xf32>
    tpu.vector_store %arg6[%c0_10, %c0_11], %13 {strides = array<i32>} : memref<8x512xf32, #tpu.memory_space<vmem>>, vector<8x512xf32>,
    return
  }
  func.func @transform_0(%arg0: i32) -> (i32, i32) {
    %c0_i32 = arith.constant 0 : i32
    %c0_i32_0 = arith.constant 0 : i32
    return %c0_i32, %arg0 : i32, i32
  }
  func.func @transform_1(%arg0: i32) -> (i32, i32) {
    %c0_i32 = arith.constant 0 : i32
    %c0_i32_0 = arith.constant 0 : i32
    %c0_i32_1 = arith.constant 0 : i32
    return %c0_i32, %c0_i32_0 : i32, i32
  }
  func.func @transform_2(%arg0: i32) -> (i32, i32) {
    %c0_i32 = arith.constant 0 : i32
    %c0_i32_0 = arith.constant 0 : i32
    %c0_i32_1 = arith.constant 0 : i32
    return %c0_i32, %c0_i32_0 : i32, i32
  }
  func.func @transform_3(%arg0: i32) -> (i32, i32) {
    %c0_i32 = arith.constant 0 : i32
    %c0_i32_0 = arith.constant 0 : i32
    %c0_i32_1 = arith.constant 0 : i32
    return %c0_i32, %c0_i32_0 : i32, i32
  }
  func.func @transform_4(%arg0: i32) -> (i32, i32) {
    %c0_i32 = arith.constant 0 : i32
    %c0_i32_0 = arith.constant 0 : i32
    %c0_i32_1 = arith.constant 0 : i32
    return %c0_i32, %c0_i32_0 : i32, i32
  }
  func.func @transform_5(%arg0: i32) -> (i32, i32) {
    %c0_i32 = arith.constant 0 : i32
    %c0_i32_0 = arith.constant 0 : i32
    return %c0_i32, %arg0 : i32, i32
  }
}

module attributes {stable_mosaic.version = 11 : i64} {
  func.func @_matmul_gdn_kernel(%arg0: i32, %arg1: memref<200x128xbf16, #tpu.memory_space<vmem>>, %arg2: memref<8x200xbf16, #tpu.memory_space<vmem>>, %arg3: memref<8x1xf32, #tpu.memory_space<vmem>>, %arg4: memref<8x8xf32, #tpu.memory_space<vmem>>, %arg5: memref<8x1xf32, #tpu.memory_space<vmem>>, %arg6: memref<8x128xf32, #tpu.memory_space<vmem>>) attributes {dimension_semantics = [#tpu.dimension_semantics<parallel>], iteration_bounds = array<i64: 1>, scalar_prefetch = 0 : i64, scratch_operands = 0 : i64, tpu.core_type = #tpu.core_type<tc>, window_params = [{transform_indices = @transform_0, window_bounds = array<i64: 200, 128>}, {pipeline_mode = #tpu.pipeline_mode<synchronous>, transform_indices = @transform_1, window_bounds = array<i64: 8, 200>}, {pipeline_mode = #tpu.pipeline_mode<synchronous>, transform_indices = @transform_2, window_bounds = array<i64: 8, 1>}, {pipeline_mode = #tpu.pipeline_mode<synchronous>, transform_indices = @transform_3, window_bounds = array<i64: 8, 8>}, {pipeline_mode = #tpu.pipeline_mode<synchronous>, transform_indices = @transform_4, window_bounds = array<i64: 8, 1>}, {transform_indices = @transform_5, window_bounds = array<i64: 8, 128>}]} {
    %c0 = arith.constant 0 : index
    %c0_0 = arith.constant 0 : index
    %0 = vector.load %arg2[%c0, %c0_0] : memref<8x200xbf16, #tpu.memory_space<vmem>>, vector<8x200xbf16>
    %c0_1 = arith.constant 0 : index
    %c0_2 = arith.constant 0 : index
    %1 = vector.load %arg1[%c0_1, %c0_2] : memref<200x128xbf16, #tpu.memory_space<vmem>>, vector<200x128xbf16>
    %cst = arith.constant dense<0.000000e+00> : vector<8x128xf32>
    %2 = tpu.matmul %0, %1, %cst {dimension_numbers = #tpu.dot_dimension_numbers<[1], [0], [0], [1], [0, 0, 1, 1], [], []>} : vector<8x200xbf16>, vector<200x128xbf16>, vector<8x128xf32> -> vector<8x128xf32>
    %c0_3 = arith.constant 0 : index
    %c0_4 = arith.constant 0 : index
    %3 = vector.load %arg3[%c0_3, %c0_4] : memref<8x1xf32, #tpu.memory_space<vmem>>, vector<8x1xf32>
    %4 = vector.broadcast %3 : vector<8x1xf32> to vector<8x128xf32>
    %5 = arith.addf %2, %4 : vector<8x128xf32>
    %c0_5 = arith.constant 0 : index
    %c0_6 = arith.constant 0 : index
    %6 = vector.load %arg4[%c0_5, %c0_6] : memref<8x8xf32, #tpu.memory_space<vmem>>, vector<8x8xf32>
    %7 = arith.mulf %5, %5 : vector<8x128xf32>
    %cst_7 = arith.constant dense<0.000000e+00> : vector<8x128xf32>
    %8 = tpu.matmul %6, %7, %cst_7 {dimension_numbers = #tpu.dot_dimension_numbers<[1], [0], [0], [1], [0, 0, 1, 1], [], []>} : vector<8x8xf32>, vector<8x128xf32>, vector<8x128xf32> -> vector<8x128xf32>
    %c0_8 = arith.constant 0 : index
    %c0_9 = arith.constant 0 : index
    %9 = vector.load %arg5[%c0_8, %c0_9] : memref<8x1xf32, #tpu.memory_space<vmem>>, vector<8x1xf32>
    %10 = vector.broadcast %9 : vector<8x1xf32> to vector<8x128xf32>
    %11 = arith.addf %8, %10 : vector<8x128xf32>
    %12 = math.rsqrt %11 : vector<8x128xf32>
    %13 = arith.mulf %5, %12 : vector<8x128xf32>
    %c0_10 = arith.constant 0 : index
    %c0_11 = arith.constant 0 : index
    %14 = vector.load %arg6[%c0_10, %c0_11] : memref<8x128xf32, #tpu.memory_space<vmem>>, vector<8x128xf32>
    tpu.vector_store %arg6[%c0_10, %c0_11], %13 {strides = array<i32>} : memref<8x128xf32, #tpu.memory_space<vmem>>, vector<8x128xf32>,
    return
  }
  func.func @transform_0(%arg0: i32) -> (i32, i32) {
    %c0_i32 = arith.constant 0 : i32
    %c0_i32_0 = arith.constant 0 : i32
    return %c0_i32, %arg0 : i32, i32
  }
  func.func @transform_1(%arg0: i32) -> (i32, i32) {
    %c0_i32 = arith.constant 0 : i32
    %c0_i32_0 = arith.constant 0 : i32
    %c0_i32_1 = arith.constant 0 : i32
    return %c0_i32, %c0_i32_0 : i32, i32
  }
  func.func @transform_2(%arg0: i32) -> (i32, i32) {
    %c0_i32 = arith.constant 0 : i32
    %c0_i32_0 = arith.constant 0 : i32
    %c0_i32_1 = arith.constant 0 : i32
    return %c0_i32, %c0_i32_0 : i32, i32
  }
  func.func @transform_3(%arg0: i32) -> (i32, i32) {
    %c0_i32 = arith.constant 0 : i32
    %c0_i32_0 = arith.constant 0 : i32
    %c0_i32_1 = arith.constant 0 : i32
    return %c0_i32, %c0_i32_0 : i32, i32
  }
  func.func @transform_4(%arg0: i32) -> (i32, i32) {
    %c0_i32 = arith.constant 0 : i32
    %c0_i32_0 = arith.constant 0 : i32
    %c0_i32_1 = arith.constant 0 : i32
    return %c0_i32, %c0_i32_0 : i32, i32
  }
  func.func @transform_5(%arg0: i32) -> (i32, i32) {
    %c0_i32 = arith.constant 0 : i32
    %c0_i32_0 = arith.constant 0 : i32
    return %c0_i32, %arg0 : i32, i32
  }
}

module attributes {stable_mosaic.version = 11 : i64} {
  func.func @_matmul_bias_kernel(%arg0: i32, %arg1: memref<200x128xbf16, #tpu.memory_space<vmem>>, %arg2: memref<12x200xbf16, #tpu.memory_space<vmem>>, %arg3: memref<12x1xf32, #tpu.memory_space<vmem>>, %arg4: memref<12x128xf32, #tpu.memory_space<vmem>>) attributes {dimension_semantics = [#tpu.dimension_semantics<parallel>], iteration_bounds = array<i64: 1>, scalar_prefetch = 0 : i64, scratch_operands = 0 : i64, tpu.core_type = #tpu.core_type<tc>, window_params = [{transform_indices = @transform_0, window_bounds = array<i64: 200, 128>}, {pipeline_mode = #tpu.pipeline_mode<synchronous>, transform_indices = @transform_1, window_bounds = array<i64: 12, 200>}, {pipeline_mode = #tpu.pipeline_mode<synchronous>, transform_indices = @transform_2, window_bounds = array<i64: 12, 1>}, {transform_indices = @transform_3, window_bounds = array<i64: 12, 128>}]} {
    %c0 = arith.constant 0 : index
    %c0_0 = arith.constant 0 : index
    %0 = vector.load %arg2[%c0, %c0_0] : memref<12x200xbf16, #tpu.memory_space<vmem>>, vector<12x200xbf16>
    %c0_1 = arith.constant 0 : index
    %c0_2 = arith.constant 0 : index
    %1 = vector.load %arg1[%c0_1, %c0_2] : memref<200x128xbf16, #tpu.memory_space<vmem>>, vector<200x128xbf16>
    %cst = arith.constant dense<0.000000e+00> : vector<12x128xf32>
    %2 = tpu.matmul %0, %1, %cst {dimension_numbers = #tpu.dot_dimension_numbers<[1], [0], [0], [1], [0, 0, 1, 1], [], []>} : vector<12x200xbf16>, vector<200x128xbf16>, vector<12x128xf32> -> vector<12x128xf32>
    %c0_3 = arith.constant 0 : index
    %c0_4 = arith.constant 0 : index
    %3 = vector.load %arg3[%c0_3, %c0_4] : memref<12x1xf32, #tpu.memory_space<vmem>>, vector<12x1xf32>
    %4 = vector.broadcast %3 : vector<12x1xf32> to vector<12x128xf32>
    %5 = arith.addf %2, %4 : vector<12x128xf32>
    %c0_5 = arith.constant 0 : index
    %c0_6 = arith.constant 0 : index
    %6 = vector.load %arg4[%c0_5, %c0_6] : memref<12x128xf32, #tpu.memory_space<vmem>>, vector<12x128xf32>
    tpu.vector_store %arg4[%c0_5, %c0_6], %5 {strides = array<i32>} : memref<12x128xf32, #tpu.memory_space<vmem>>, vector<12x128xf32>,
    return
  }
  func.func @transform_0(%arg0: i32) -> (i32, i32) {
    %c0_i32 = arith.constant 0 : i32
    %c0_i32_0 = arith.constant 0 : i32
    return %c0_i32, %arg0 : i32, i32
  }
  func.func @transform_1(%arg0: i32) -> (i32, i32) {
    %c0_i32 = arith.constant 0 : i32
    %c0_i32_0 = arith.constant 0 : i32
    %c0_i32_1 = arith.constant 0 : i32
    return %c0_i32, %c0_i32_0 : i32, i32
  }
  func.func @transform_2(%arg0: i32) -> (i32, i32) {
    %c0_i32 = arith.constant 0 : i32
    %c0_i32_0 = arith.constant 0 : i32
    %c0_i32_1 = arith.constant 0 : i32
    return %c0_i32, %c0_i32_0 : i32, i32
  }
  func.func @transform_3(%arg0: i32) -> (i32, i32) {
    %c0_i32 = arith.constant 0 : i32
    %c0_i32_0 = arith.constant 0 : i32
    return %c0_i32, %arg0 : i32, i32
  }
}

module attributes {stable_mosaic.version = 11 : i64} {
  func.func @_matmul_bias_kernel(%arg0: i32, %arg1: memref<108x128xbf16, #tpu.memory_space<vmem>>, %arg2: memref<8x108xbf16, #tpu.memory_space<vmem>>, %arg3: memref<8x1xf32, #tpu.memory_space<vmem>>, %arg4: memref<8x128xf32, #tpu.memory_space<vmem>>) attributes {dimension_semantics = [#tpu.dimension_semantics<parallel>], iteration_bounds = array<i64: 1>, scalar_prefetch = 0 : i64, scratch_operands = 0 : i64, tpu.core_type = #tpu.core_type<tc>, window_params = [{transform_indices = @transform_0, window_bounds = array<i64: 108, 128>}, {pipeline_mode = #tpu.pipeline_mode<synchronous>, transform_indices = @transform_1, window_bounds = array<i64: 8, 108>}, {pipeline_mode = #tpu.pipeline_mode<synchronous>, transform_indices = @transform_2, window_bounds = array<i64: 8, 1>}, {transform_indices = @transform_3, window_bounds = array<i64: 8, 128>}]} {
    %c0 = arith.constant 0 : index
    %c0_0 = arith.constant 0 : index
    %0 = vector.load %arg2[%c0, %c0_0] : memref<8x108xbf16, #tpu.memory_space<vmem>>, vector<8x108xbf16>
    %c0_1 = arith.constant 0 : index
    %c0_2 = arith.constant 0 : index
    %1 = vector.load %arg1[%c0_1, %c0_2] : memref<108x128xbf16, #tpu.memory_space<vmem>>, vector<108x128xbf16>
    %cst = arith.constant dense<0.000000e+00> : vector<8x128xf32>
    %2 = tpu.matmul %0, %1, %cst {dimension_numbers = #tpu.dot_dimension_numbers<[1], [0], [0], [1], [0, 0, 1, 1], [], []>} : vector<8x108xbf16>, vector<108x128xbf16>, vector<8x128xf32> -> vector<8x128xf32>
    %c0_3 = arith.constant 0 : index
    %c0_4 = arith.constant 0 : index
    %3 = vector.load %arg3[%c0_3, %c0_4] : memref<8x1xf32, #tpu.memory_space<vmem>>, vector<8x1xf32>
    %4 = vector.broadcast %3 : vector<8x1xf32> to vector<8x128xf32>
    %5 = arith.addf %2, %4 : vector<8x128xf32>
    %cst_5 = arith.constant 0.000000e+00 : f32
    %6 = vector.broadcast %cst_5 : f32 to vector<8x128xf32>
    %7 = arith.maximumf %5, %6 : vector<8x128xf32>
    %c0_6 = arith.constant 0 : index
    %c0_7 = arith.constant 0 : index
    %8 = vector.load %arg4[%c0_6, %c0_7] : memref<8x128xf32, #tpu.memory_space<vmem>>, vector<8x128xf32>
    tpu.vector_store %arg4[%c0_6, %c0_7], %7 {strides = array<i32>} : memref<8x128xf32, #tpu.memory_space<vmem>>, vector<8x128xf32>,
    return
  }
  func.func @transform_0(%arg0: i32) -> (i32, i32) {
    %c0_i32 = arith.constant 0 : i32
    %c0_i32_0 = arith.constant 0 : i32
    return %c0_i32, %arg0 : i32, i32
  }
  func.func @transform_1(%arg0: i32) -> (i32, i32) {
    %c0_i32 = arith.constant 0 : i32
    %c0_i32_0 = arith.constant 0 : i32
    %c0_i32_1 = arith.constant 0 : i32
    return %c0_i32, %c0_i32_0 : i32, i32
  }
  func.func @transform_2(%arg0: i32) -> (i32, i32) {
    %c0_i32 = arith.constant 0 : i32
    %c0_i32_0 = arith.constant 0 : i32
    %c0_i32_1 = arith.constant 0 : i32
    return %c0_i32, %c0_i32_0 : i32, i32
  }
  func.func @transform_3(%arg0: i32) -> (i32, i32) {
    %c0_i32 = arith.constant 0 : i32
    %c0_i32_0 = arith.constant 0 : i32
    return %c0_i32, %arg0 : i32, i32
  }
}

module attributes {stable_mosaic.version = 11 : i64} {
  func.func @_matmul_bias_kernel(%arg0: i32, %arg1: memref<200x128xbf16, #tpu.memory_space<vmem>>, %arg2: memref<8x200xbf16, #tpu.memory_space<vmem>>, %arg3: memref<8x1xf32, #tpu.memory_space<vmem>>, %arg4: memref<8x128xf32, #tpu.memory_space<vmem>>) attributes {dimension_semantics = [#tpu.dimension_semantics<parallel>], iteration_bounds = array<i64: 1>, scalar_prefetch = 0 : i64, scratch_operands = 0 : i64, tpu.core_type = #tpu.core_type<tc>, window_params = [{transform_indices = @transform_0, window_bounds = array<i64: 200, 128>}, {pipeline_mode = #tpu.pipeline_mode<synchronous>, transform_indices = @transform_1, window_bounds = array<i64: 8, 200>}, {pipeline_mode = #tpu.pipeline_mode<synchronous>, transform_indices = @transform_2, window_bounds = array<i64: 8, 1>}, {transform_indices = @transform_3, window_bounds = array<i64: 8, 128>}]} {
    %c0 = arith.constant 0 : index
    %c0_0 = arith.constant 0 : index
    %0 = vector.load %arg2[%c0, %c0_0] : memref<8x200xbf16, #tpu.memory_space<vmem>>, vector<8x200xbf16>
    %c0_1 = arith.constant 0 : index
    %c0_2 = arith.constant 0 : index
    %1 = vector.load %arg1[%c0_1, %c0_2] : memref<200x128xbf16, #tpu.memory_space<vmem>>, vector<200x128xbf16>
    %cst = arith.constant dense<0.000000e+00> : vector<8x128xf32>
    %2 = tpu.matmul %0, %1, %cst {dimension_numbers = #tpu.dot_dimension_numbers<[1], [0], [0], [1], [0, 0, 1, 1], [], []>} : vector<8x200xbf16>, vector<200x128xbf16>, vector<8x128xf32> -> vector<8x128xf32>
    %c0_3 = arith.constant 0 : index
    %c0_4 = arith.constant 0 : index
    %3 = vector.load %arg3[%c0_3, %c0_4] : memref<8x1xf32, #tpu.memory_space<vmem>>, vector<8x1xf32>
    %4 = vector.broadcast %3 : vector<8x1xf32> to vector<8x128xf32>
    %5 = arith.addf %2, %4 : vector<8x128xf32>
    %cst_5 = arith.constant 0.000000e+00 : f32
    %6 = vector.broadcast %cst_5 : f32 to vector<8x128xf32>
    %7 = arith.maximumf %5, %6 : vector<8x128xf32>
    %c0_6 = arith.constant 0 : index
    %c0_7 = arith.constant 0 : index
    %8 = vector.load %arg4[%c0_6, %c0_7] : memref<8x128xf32, #tpu.memory_space<vmem>>, vector<8x128xf32>
    tpu.vector_store %arg4[%c0_6, %c0_7], %7 {strides = array<i32>} : memref<8x128xf32, #tpu.memory_space<vmem>>, vector<8x128xf32>,
    return
  }
  func.func @transform_0(%arg0: i32) -> (i32, i32) {
    %c0_i32 = arith.constant 0 : i32
    %c0_i32_0 = arith.constant 0 : i32
    return %c0_i32, %arg0 : i32, i32
  }
  func.func @transform_1(%arg0: i32) -> (i32, i32) {
    %c0_i32 = arith.constant 0 : i32
    %c0_i32_0 = arith.constant 0 : i32
    %c0_i32_1 = arith.constant 0 : i32
    return %c0_i32, %c0_i32_0 : i32, i32
  }
  func.func @transform_2(%arg0: i32) -> (i32, i32) {
    %c0_i32 = arith.constant 0 : i32
    %c0_i32_0 = arith.constant 0 : i32
    %c0_i32_1 = arith.constant 0 : i32
    return %c0_i32, %c0_i32_0 : i32, i32
  }
  func.func @transform_3(%arg0: i32) -> (i32, i32) {
    %c0_i32 = arith.constant 0 : i32
    %c0_i32_0 = arith.constant 0 : i32
    return %c0_i32, %arg0 : i32, i32
  }
}

module attributes {stable_mosaic.version = 11 : i64} {
  func.func @_matmul_bias_kernel(%arg0: i32, %arg1: memref<200x128xbf16, #tpu.memory_space<vmem>>, %arg2: memref<8x200xbf16, #tpu.memory_space<vmem>>, %arg3: memref<8x1xf32, #tpu.memory_space<vmem>>, %arg4: memref<8x128xf32, #tpu.memory_space<vmem>>) attributes {dimension_semantics = [#tpu.dimension_semantics<parallel>], iteration_bounds = array<i64: 1>, scalar_prefetch = 0 : i64, scratch_operands = 0 : i64, tpu.core_type = #tpu.core_type<tc>, window_params = [{transform_indices = @transform_0, window_bounds = array<i64: 200, 128>}, {pipeline_mode = #tpu.pipeline_mode<synchronous>, transform_indices = @transform_1, window_bounds = array<i64: 8, 200>}, {pipeline_mode = #tpu.pipeline_mode<synchronous>, transform_indices = @transform_2, window_bounds = array<i64: 8, 1>}, {transform_indices = @transform_3, window_bounds = array<i64: 8, 128>}]} {
    %c0 = arith.constant 0 : index
    %c0_0 = arith.constant 0 : index
    %0 = vector.load %arg2[%c0, %c0_0] : memref<8x200xbf16, #tpu.memory_space<vmem>>, vector<8x200xbf16>
    %c0_1 = arith.constant 0 : index
    %c0_2 = arith.constant 0 : index
    %1 = vector.load %arg1[%c0_1, %c0_2] : memref<200x128xbf16, #tpu.memory_space<vmem>>, vector<200x128xbf16>
    %cst = arith.constant dense<0.000000e+00> : vector<8x128xf32>
    %2 = tpu.matmul %0, %1, %cst {dimension_numbers = #tpu.dot_dimension_numbers<[1], [0], [0], [1], [0, 0, 1, 1], [], []>} : vector<8x200xbf16>, vector<200x128xbf16>, vector<8x128xf32> -> vector<8x128xf32>
    %c0_3 = arith.constant 0 : index
    %c0_4 = arith.constant 0 : index
    %3 = vector.load %arg3[%c0_3, %c0_4] : memref<8x1xf32, #tpu.memory_space<vmem>>, vector<8x1xf32>
    %4 = vector.broadcast %3 : vector<8x1xf32> to vector<8x128xf32>
    %5 = arith.addf %2, %4 : vector<8x128xf32>
    %c0_5 = arith.constant 0 : index
    %c0_6 = arith.constant 0 : index
    %6 = vector.load %arg4[%c0_5, %c0_6] : memref<8x128xf32, #tpu.memory_space<vmem>>, vector<8x128xf32>
    tpu.vector_store %arg4[%c0_5, %c0_6], %5 {strides = array<i32>} : memref<8x128xf32, #tpu.memory_space<vmem>>, vector<8x128xf32>,
    return
  }
  func.func @transform_0(%arg0: i32) -> (i32, i32) {
    %c0_i32 = arith.constant 0 : i32
    %c0_i32_0 = arith.constant 0 : i32
    return %c0_i32, %arg0 : i32, i32
  }
  func.func @transform_1(%arg0: i32) -> (i32, i32) {
    %c0_i32 = arith.constant 0 : i32
    %c0_i32_0 = arith.constant 0 : i32
    %c0_i32_1 = arith.constant 0 : i32
    return %c0_i32, %c0_i32_0 : i32, i32
  }
  func.func @transform_2(%arg0: i32) -> (i32, i32) {
    %c0_i32 = arith.constant 0 : i32
    %c0_i32_0 = arith.constant 0 : i32
    %c0_i32_1 = arith.constant 0 : i32
    return %c0_i32, %c0_i32_0 : i32, i32
  }
  func.func @transform_3(%arg0: i32) -> (i32, i32) {
    %c0_i32 = arith.constant 0 : i32
    %c0_i32_0 = arith.constant 0 : i32
    return %c0_i32, %arg0 : i32, i32
  }
}

module attributes {stable_mosaic.version = 11 : i64} {
  func.func @_matmul_bias_kernel(%arg0: i32, %arg1: memref<72x128xbf16, #tpu.memory_space<vmem>>, %arg2: memref<32x72xbf16, #tpu.memory_space<vmem>>, %arg3: memref<32x1xf32, #tpu.memory_space<vmem>>, %arg4: memref<32x128xf32, #tpu.memory_space<vmem>>) attributes {dimension_semantics = [#tpu.dimension_semantics<parallel>], iteration_bounds = array<i64: 1>, scalar_prefetch = 0 : i64, scratch_operands = 0 : i64, tpu.core_type = #tpu.core_type<tc>, window_params = [{transform_indices = @transform_0, window_bounds = array<i64: 72, 128>}, {pipeline_mode = #tpu.pipeline_mode<synchronous>, transform_indices = @transform_1, window_bounds = array<i64: 32, 72>}, {pipeline_mode = #tpu.pipeline_mode<synchronous>, transform_indices = @transform_2, window_bounds = array<i64: 32, 1>}, {transform_indices = @transform_3, window_bounds = array<i64: 32, 128>}]} {
    %c0 = arith.constant 0 : index
    %c0_0 = arith.constant 0 : index
    %0 = vector.load %arg2[%c0, %c0_0] : memref<32x72xbf16, #tpu.memory_space<vmem>>, vector<32x72xbf16>
    %c0_1 = arith.constant 0 : index
    %c0_2 = arith.constant 0 : index
    %1 = vector.load %arg1[%c0_1, %c0_2] : memref<72x128xbf16, #tpu.memory_space<vmem>>, vector<72x128xbf16>
    %cst = arith.constant dense<0.000000e+00> : vector<32x128xf32>
    %2 = tpu.matmul %0, %1, %cst {dimension_numbers = #tpu.dot_dimension_numbers<[1], [0], [0], [1], [0, 0, 1, 1], [], []>} : vector<32x72xbf16>, vector<72x128xbf16>, vector<32x128xf32> -> vector<32x128xf32>
    %c0_3 = arith.constant 0 : index
    %c0_4 = arith.constant 0 : index
    %3 = vector.load %arg3[%c0_3, %c0_4] : memref<32x1xf32, #tpu.memory_space<vmem>>, vector<32x1xf32>
    %4 = vector.broadcast %3 : vector<32x1xf32> to vector<32x128xf32>
    %5 = arith.addf %2, %4 : vector<32x128xf32>
    %cst_5 = arith.constant 0.000000e+00 : f32
    %6 = vector.broadcast %cst_5 : f32 to vector<32x128xf32>
    %7 = arith.maximumf %5, %6 : vector<32x128xf32>
    %c0_6 = arith.constant 0 : index
    %c0_7 = arith.constant 0 : index
    %8 = vector.load %arg4[%c0_6, %c0_7] : memref<32x128xf32, #tpu.memory_space<vmem>>, vector<32x128xf32>
    tpu.vector_store %arg4[%c0_6, %c0_7], %7 {strides = array<i32>} : memref<32x128xf32, #tpu.memory_space<vmem>>, vector<32x128xf32>,
    return
  }
  func.func @transform_0(%arg0: i32) -> (i32, i32) {
    %c0_i32 = arith.constant 0 : i32
    %c0_i32_0 = arith.constant 0 : i32
    return %c0_i32, %arg0 : i32, i32
  }
  func.func @transform_1(%arg0: i32) -> (i32, i32) {
    %c0_i32 = arith.constant 0 : i32
    %c0_i32_0 = arith.constant 0 : i32
    %c0_i32_1 = arith.constant 0 : i32
    return %c0_i32, %c0_i32_0 : i32, i32
  }
  func.func @transform_2(%arg0: i32) -> (i32, i32) {
    %c0_i32 = arith.constant 0 : i32
    %c0_i32_0 = arith.constant 0 : i32
    %c0_i32_1 = arith.constant 0 : i32
    return %c0_i32, %c0_i32_0 : i32, i32
  }
  func.func @transform_3(%arg0: i32) -> (i32, i32) {
    %c0_i32 = arith.constant 0 : i32
    %c0_i32_0 = arith.constant 0 : i32
    return %c0_i32, %arg0 : i32, i32
  }
}

module attributes {stable_mosaic.version = 11 : i64} {
  func.func @_matmul_bias_kernel(%arg0: i32, %arg1: memref<72x128xbf16, #tpu.memory_space<vmem>>, %arg2: memref<12x72xbf16, #tpu.memory_space<vmem>>, %arg3: memref<12x1xf32, #tpu.memory_space<vmem>>, %arg4: memref<12x128xf32, #tpu.memory_space<vmem>>) attributes {dimension_semantics = [#tpu.dimension_semantics<parallel>], iteration_bounds = array<i64: 1>, scalar_prefetch = 0 : i64, scratch_operands = 0 : i64, tpu.core_type = #tpu.core_type<tc>, window_params = [{transform_indices = @transform_0, window_bounds = array<i64: 72, 128>}, {pipeline_mode = #tpu.pipeline_mode<synchronous>, transform_indices = @transform_1, window_bounds = array<i64: 12, 72>}, {pipeline_mode = #tpu.pipeline_mode<synchronous>, transform_indices = @transform_2, window_bounds = array<i64: 12, 1>}, {transform_indices = @transform_3, window_bounds = array<i64: 12, 128>}]} {
    %c0 = arith.constant 0 : index
    %c0_0 = arith.constant 0 : index
    %0 = vector.load %arg2[%c0, %c0_0] : memref<12x72xbf16, #tpu.memory_space<vmem>>, vector<12x72xbf16>
    %c0_1 = arith.constant 0 : index
    %c0_2 = arith.constant 0 : index
    %1 = vector.load %arg1[%c0_1, %c0_2] : memref<72x128xbf16, #tpu.memory_space<vmem>>, vector<72x128xbf16>
    %cst = arith.constant dense<0.000000e+00> : vector<12x128xf32>
    %2 = tpu.matmul %0, %1, %cst {dimension_numbers = #tpu.dot_dimension_numbers<[1], [0], [0], [1], [0, 0, 1, 1], [], []>} : vector<12x72xbf16>, vector<72x128xbf16>, vector<12x128xf32> -> vector<12x128xf32>
    %c0_3 = arith.constant 0 : index
    %c0_4 = arith.constant 0 : index
    %3 = vector.load %arg3[%c0_3, %c0_4] : memref<12x1xf32, #tpu.memory_space<vmem>>, vector<12x1xf32>
    %4 = vector.broadcast %3 : vector<12x1xf32> to vector<12x128xf32>
    %5 = arith.addf %2, %4 : vector<12x128xf32>
    %cst_5 = arith.constant 0.000000e+00 : f32
    %6 = vector.broadcast %cst_5 : f32 to vector<12x128xf32>
    %7 = arith.maximumf %5, %6 : vector<12x128xf32>
    %c0_6 = arith.constant 0 : index
    %c0_7 = arith.constant 0 : index
    %8 = vector.load %arg4[%c0_6, %c0_7] : memref<12x128xf32, #tpu.memory_space<vmem>>, vector<12x128xf32>
    tpu.vector_store %arg4[%c0_6, %c0_7], %7 {strides = array<i32>} : memref<12x128xf32, #tpu.memory_space<vmem>>, vector<12x128xf32>,
    return
  }
  func.func @transform_0(%arg0: i32) -> (i32, i32) {
    %c0_i32 = arith.constant 0 : i32
    %c0_i32_0 = arith.constant 0 : i32
    return %c0_i32, %arg0 : i32, i32
  }
  func.func @transform_1(%arg0: i32) -> (i32, i32) {
    %c0_i32 = arith.constant 0 : i32
    %c0_i32_0 = arith.constant 0 : i32
    %c0_i32_1 = arith.constant 0 : i32
    return %c0_i32, %c0_i32_0 : i32, i32
  }
  func.func @transform_2(%arg0: i32) -> (i32, i32) {
    %c0_i32 = arith.constant 0 : i32
    %c0_i32_0 = arith.constant 0 : i32
    %c0_i32_1 = arith.constant 0 : i32
    return %c0_i32, %c0_i32_0 : i32, i32
  }
  func.func @transform_3(%arg0: i32) -> (i32, i32) {
    %c0_i32 = arith.constant 0 : i32
    %c0_i32_0 = arith.constant 0 : i32
    return %c0_i32, %arg0 : i32, i32
  }
}

module attributes {stable_mosaic.version = 11 : i64} {
  func.func @_matmul_gdn_kernel(%arg0: i32, %arg1: memref<108x128xbf16, #tpu.memory_space<vmem>>, %arg2: memref<32x108xbf16, #tpu.memory_space<vmem>>, %arg3: memref<32x1xf32, #tpu.memory_space<vmem>>, %arg4: memref<32x32xf32, #tpu.memory_space<vmem>>, %arg5: memref<32x1xf32, #tpu.memory_space<vmem>>, %arg6: memref<32x128xf32, #tpu.memory_space<vmem>>) attributes {dimension_semantics = [#tpu.dimension_semantics<parallel>], iteration_bounds = array<i64: 1>, scalar_prefetch = 0 : i64, scratch_operands = 0 : i64, tpu.core_type = #tpu.core_type<tc>, window_params = [{transform_indices = @transform_0, window_bounds = array<i64: 108, 128>}, {pipeline_mode = #tpu.pipeline_mode<synchronous>, transform_indices = @transform_1, window_bounds = array<i64: 32, 108>}, {pipeline_mode = #tpu.pipeline_mode<synchronous>, transform_indices = @transform_2, window_bounds = array<i64: 32, 1>}, {pipeline_mode = #tpu.pipeline_mode<synchronous>, transform_indices = @transform_3, window_bounds = array<i64: 32, 32>}, {pipeline_mode = #tpu.pipeline_mode<synchronous>, transform_indices = @transform_4, window_bounds = array<i64: 32, 1>}, {transform_indices = @transform_5, window_bounds = array<i64: 32, 128>}]} {
    %c0 = arith.constant 0 : index
    %c0_0 = arith.constant 0 : index
    %0 = vector.load %arg2[%c0, %c0_0] : memref<32x108xbf16, #tpu.memory_space<vmem>>, vector<32x108xbf16>
    %c0_1 = arith.constant 0 : index
    %c0_2 = arith.constant 0 : index
    %1 = vector.load %arg1[%c0_1, %c0_2] : memref<108x128xbf16, #tpu.memory_space<vmem>>, vector<108x128xbf16>
    %cst = arith.constant dense<0.000000e+00> : vector<32x128xf32>
    %2 = tpu.matmul %0, %1, %cst {dimension_numbers = #tpu.dot_dimension_numbers<[1], [0], [0], [1], [0, 0, 1, 1], [], []>} : vector<32x108xbf16>, vector<108x128xbf16>, vector<32x128xf32> -> vector<32x128xf32>
    %c0_3 = arith.constant 0 : index
    %c0_4 = arith.constant 0 : index
    %3 = vector.load %arg3[%c0_3, %c0_4] : memref<32x1xf32, #tpu.memory_space<vmem>>, vector<32x1xf32>
    %4 = vector.broadcast %3 : vector<32x1xf32> to vector<32x128xf32>
    %5 = arith.addf %2, %4 : vector<32x128xf32>
    %c0_5 = arith.constant 0 : index
    %c0_6 = arith.constant 0 : index
    %6 = vector.load %arg4[%c0_5, %c0_6] : memref<32x32xf32, #tpu.memory_space<vmem>>, vector<32x32xf32>
    %7 = arith.mulf %5, %5 : vector<32x128xf32>
    %cst_7 = arith.constant dense<0.000000e+00> : vector<32x128xf32>
    %8 = tpu.matmul %6, %7, %cst_7 {dimension_numbers = #tpu.dot_dimension_numbers<[1], [0], [0], [1], [0, 0, 1, 1], [], []>} : vector<32x32xf32>, vector<32x128xf32>, vector<32x128xf32> -> vector<32x128xf32>
    %c0_8 = arith.constant 0 : index
    %c0_9 = arith.constant 0 : index
    %9 = vector.load %arg5[%c0_8, %c0_9] : memref<32x1xf32, #tpu.memory_space<vmem>>, vector<32x1xf32>
    %10 = vector.broadcast %9 : vector<32x1xf32> to vector<32x128xf32>
    %11 = arith.addf %8, %10 : vector<32x128xf32>
    %12 = math.sqrt %11 : vector<32x128xf32>
    %13 = arith.mulf %5, %12 : vector<32x128xf32>
    %c0_10 = arith.constant 0 : index
    %c0_11 = arith.constant 0 : index
    %14 = vector.load %arg6[%c0_10, %c0_11] : memref<32x128xf32, #tpu.memory_space<vmem>>, vector<32x128xf32>
    tpu.vector_store %arg6[%c0_10, %c0_11], %13 {strides = array<i32>} : memref<32x128xf32, #tpu.memory_space<vmem>>, vector<32x128xf32>,
    return
  }
  func.func @transform_0(%arg0: i32) -> (i32, i32) {
    %c0_i32 = arith.constant 0 : i32
    %c0_i32_0 = arith.constant 0 : i32
    return %c0_i32, %arg0 : i32, i32
  }
  func.func @transform_1(%arg0: i32) -> (i32, i32) {
    %c0_i32 = arith.constant 0 : i32
    %c0_i32_0 = arith.constant 0 : i32
    %c0_i32_1 = arith.constant 0 : i32
    return %c0_i32, %c0_i32_0 : i32, i32
  }
  func.func @transform_2(%arg0: i32) -> (i32, i32) {
    %c0_i32 = arith.constant 0 : i32
    %c0_i32_0 = arith.constant 0 : i32
    %c0_i32_1 = arith.constant 0 : i32
    return %c0_i32, %c0_i32_0 : i32, i32
  }
  func.func @transform_3(%arg0: i32) -> (i32, i32) {
    %c0_i32 = arith.constant 0 : i32
    %c0_i32_0 = arith.constant 0 : i32
    %c0_i32_1 = arith.constant 0 : i32
    return %c0_i32, %c0_i32_0 : i32, i32
  }
  func.func @transform_4(%arg0: i32) -> (i32, i32) {
    %c0_i32 = arith.constant 0 : i32
    %c0_i32_0 = arith.constant 0 : i32
    %c0_i32_1 = arith.constant 0 : i32
    return %c0_i32, %c0_i32_0 : i32, i32
  }
  func.func @transform_5(%arg0: i32) -> (i32, i32) {
    %c0_i32 = arith.constant 0 : i32
    %c0_i32_0 = arith.constant 0 : i32
    return %c0_i32, %arg0 : i32, i32
  }
}

module attributes {stable_mosaic.version = 11 : i64} {
  func.func @_matmul_gdn_kernel(%arg0: i32, %arg1: memref<72x128xbf16, #tpu.memory_space<vmem>>, %arg2: memref<32x72xbf16, #tpu.memory_space<vmem>>, %arg3: memref<32x1xf32, #tpu.memory_space<vmem>>, %arg4: memref<32x32xf32, #tpu.memory_space<vmem>>, %arg5: memref<32x1xf32, #tpu.memory_space<vmem>>, %arg6: memref<32x128xf32, #tpu.memory_space<vmem>>) attributes {dimension_semantics = [#tpu.dimension_semantics<parallel>], iteration_bounds = array<i64: 1>, scalar_prefetch = 0 : i64, scratch_operands = 0 : i64, tpu.core_type = #tpu.core_type<tc>, window_params = [{transform_indices = @transform_0, window_bounds = array<i64: 72, 128>}, {pipeline_mode = #tpu.pipeline_mode<synchronous>, transform_indices = @transform_1, window_bounds = array<i64: 32, 72>}, {pipeline_mode = #tpu.pipeline_mode<synchronous>, transform_indices = @transform_2, window_bounds = array<i64: 32, 1>}, {pipeline_mode = #tpu.pipeline_mode<synchronous>, transform_indices = @transform_3, window_bounds = array<i64: 32, 32>}, {pipeline_mode = #tpu.pipeline_mode<synchronous>, transform_indices = @transform_4, window_bounds = array<i64: 32, 1>}, {transform_indices = @transform_5, window_bounds = array<i64: 32, 128>}]} {
    %c0 = arith.constant 0 : index
    %c0_0 = arith.constant 0 : index
    %0 = vector.load %arg2[%c0, %c0_0] : memref<32x72xbf16, #tpu.memory_space<vmem>>, vector<32x72xbf16>
    %c0_1 = arith.constant 0 : index
    %c0_2 = arith.constant 0 : index
    %1 = vector.load %arg1[%c0_1, %c0_2] : memref<72x128xbf16, #tpu.memory_space<vmem>>, vector<72x128xbf16>
    %cst = arith.constant dense<0.000000e+00> : vector<32x128xf32>
    %2 = tpu.matmul %0, %1, %cst {dimension_numbers = #tpu.dot_dimension_numbers<[1], [0], [0], [1], [0, 0, 1, 1], [], []>} : vector<32x72xbf16>, vector<72x128xbf16>, vector<32x128xf32> -> vector<32x128xf32>
    %c0_3 = arith.constant 0 : index
    %c0_4 = arith.constant 0 : index
    %3 = vector.load %arg3[%c0_3, %c0_4] : memref<32x1xf32, #tpu.memory_space<vmem>>, vector<32x1xf32>
    %4 = vector.broadcast %3 : vector<32x1xf32> to vector<32x128xf32>
    %5 = arith.addf %2, %4 : vector<32x128xf32>
    %c0_5 = arith.constant 0 : index
    %c0_6 = arith.constant 0 : index
    %6 = vector.load %arg4[%c0_5, %c0_6] : memref<32x32xf32, #tpu.memory_space<vmem>>, vector<32x32xf32>
    %7 = arith.mulf %5, %5 : vector<32x128xf32>
    %cst_7 = arith.constant dense<0.000000e+00> : vector<32x128xf32>
    %8 = tpu.matmul %6, %7, %cst_7 {dimension_numbers = #tpu.dot_dimension_numbers<[1], [0], [0], [1], [0, 0, 1, 1], [], []>} : vector<32x32xf32>, vector<32x128xf32>, vector<32x128xf32> -> vector<32x128xf32>
    %c0_8 = arith.constant 0 : index
    %c0_9 = arith.constant 0 : index
    %9 = vector.load %arg5[%c0_8, %c0_9] : memref<32x1xf32, #tpu.memory_space<vmem>>, vector<32x1xf32>
    %10 = vector.broadcast %9 : vector<32x1xf32> to vector<32x128xf32>
    %11 = arith.addf %8, %10 : vector<32x128xf32>
    %12 = math.sqrt %11 : vector<32x128xf32>
    %13 = arith.mulf %5, %12 : vector<32x128xf32>
    %c0_10 = arith.constant 0 : index
    %c0_11 = arith.constant 0 : index
    %14 = vector.load %arg6[%c0_10, %c0_11] : memref<32x128xf32, #tpu.memory_space<vmem>>, vector<32x128xf32>
    tpu.vector_store %arg6[%c0_10, %c0_11], %13 {strides = array<i32>} : memref<32x128xf32, #tpu.memory_space<vmem>>, vector<32x128xf32>,
    return
  }
  func.func @transform_0(%arg0: i32) -> (i32, i32) {
    %c0_i32 = arith.constant 0 : i32
    %c0_i32_0 = arith.constant 0 : i32
    return %c0_i32, %arg0 : i32, i32
  }
  func.func @transform_1(%arg0: i32) -> (i32, i32) {
    %c0_i32 = arith.constant 0 : i32
    %c0_i32_0 = arith.constant 0 : i32
    %c0_i32_1 = arith.constant 0 : i32
    return %c0_i32, %c0_i32_0 : i32, i32
  }
  func.func @transform_2(%arg0: i32) -> (i32, i32) {
    %c0_i32 = arith.constant 0 : i32
    %c0_i32_0 = arith.constant 0 : i32
    %c0_i32_1 = arith.constant 0 : i32
    return %c0_i32, %c0_i32_0 : i32, i32
  }
  func.func @transform_3(%arg0: i32) -> (i32, i32) {
    %c0_i32 = arith.constant 0 : i32
    %c0_i32_0 = arith.constant 0 : i32
    %c0_i32_1 = arith.constant 0 : i32
    return %c0_i32, %c0_i32_0 : i32, i32
  }
  func.func @transform_4(%arg0: i32) -> (i32, i32) {
    %c0_i32 = arith.constant 0 : i32
    %c0_i32_0 = arith.constant 0 : i32
    %c0_i32_1 = arith.constant 0 : i32
    return %c0_i32, %c0_i32_0 : i32, i32
  }
  func.func @transform_5(%arg0: i32) -> (i32, i32) {
    %c0_i32 = arith.constant 0 : i32
    %c0_i32_0 = arith.constant 0 : i32
    return %c0_i32, %arg0 : i32, i32
  }
}

module attributes {stable_mosaic.version = 11 : i64} {
  func.func @_matmul_gdn_kernel(%arg0: i32, %arg1: memref<72x512xbf16, #tpu.memory_space<vmem>>, %arg2: memref<32x72xbf16, #tpu.memory_space<vmem>>, %arg3: memref<32x1xf32, #tpu.memory_space<vmem>>, %arg4: memref<32x32xf32, #tpu.memory_space<vmem>>, %arg5: memref<32x1xf32, #tpu.memory_space<vmem>>, %arg6: memref<32x512xf32, #tpu.memory_space<vmem>>) attributes {dimension_semantics = [#tpu.dimension_semantics<parallel>], iteration_bounds = array<i64: 1>, scalar_prefetch = 0 : i64, scratch_operands = 0 : i64, tpu.core_type = #tpu.core_type<tc>, window_params = [{transform_indices = @transform_0, window_bounds = array<i64: 72, 512>}, {pipeline_mode = #tpu.pipeline_mode<synchronous>, transform_indices = @transform_1, window_bounds = array<i64: 32, 72>}, {pipeline_mode = #tpu.pipeline_mode<synchronous>, transform_indices = @transform_2, window_bounds = array<i64: 32, 1>}, {pipeline_mode = #tpu.pipeline_mode<synchronous>, transform_indices = @transform_3, window_bounds = array<i64: 32, 32>}, {pipeline_mode = #tpu.pipeline_mode<synchronous>, transform_indices = @transform_4, window_bounds = array<i64: 32, 1>}, {transform_indices = @transform_5, window_bounds = array<i64: 32, 512>}]} {
    %c0 = arith.constant 0 : index
    %c0_0 = arith.constant 0 : index
    %0 = vector.load %arg2[%c0, %c0_0] : memref<32x72xbf16, #tpu.memory_space<vmem>>, vector<32x72xbf16>
    %c0_1 = arith.constant 0 : index
    %c0_2 = arith.constant 0 : index
    %1 = vector.load %arg1[%c0_1, %c0_2] : memref<72x512xbf16, #tpu.memory_space<vmem>>, vector<72x512xbf16>
    %cst = arith.constant dense<0.000000e+00> : vector<32x512xf32>
    %2 = tpu.matmul %0, %1, %cst {dimension_numbers = #tpu.dot_dimension_numbers<[1], [0], [0], [1], [0, 0, 1, 1], [], []>} : vector<32x72xbf16>, vector<72x512xbf16>, vector<32x512xf32> -> vector<32x512xf32>
    %c0_3 = arith.constant 0 : index
    %c0_4 = arith.constant 0 : index
    %3 = vector.load %arg3[%c0_3, %c0_4] : memref<32x1xf32, #tpu.memory_space<vmem>>, vector<32x1xf32>
    %4 = vector.broadcast %3 : vector<32x1xf32> to vector<32x512xf32>
    %5 = arith.addf %2, %4 : vector<32x512xf32>
    %c0_5 = arith.constant 0 : index
    %c0_6 = arith.constant 0 : index
    %6 = vector.load %arg4[%c0_5, %c0_6] : memref<32x32xf32, #tpu.memory_space<vmem>>, vector<32x32xf32>
    %7 = arith.mulf %5, %5 : vector<32x512xf32>
    %cst_7 = arith.constant dense<0.000000e+00> : vector<32x512xf32>
    %8 = tpu.matmul %6, %7, %cst_7 {dimension_numbers = #tpu.dot_dimension_numbers<[1], [0], [0], [1], [0, 0, 1, 1], [], []>} : vector<32x32xf32>, vector<32x512xf32>, vector<32x512xf32> -> vector<32x512xf32>
    %c0_8 = arith.constant 0 : index
    %c0_9 = arith.constant 0 : index
    %9 = vector.load %arg5[%c0_8, %c0_9] : memref<32x1xf32, #tpu.memory_space<vmem>>, vector<32x1xf32>
    %10 = vector.broadcast %9 : vector<32x1xf32> to vector<32x512xf32>
    %11 = arith.addf %8, %10 : vector<32x512xf32>
    %12 = math.sqrt %11 : vector<32x512xf32>
    %13 = arith.mulf %5, %12 : vector<32x512xf32>
    %c0_10 = arith.constant 0 : index
    %c0_11 = arith.constant 0 : index
    %14 = vector.load %arg6[%c0_10, %c0_11] : memref<32x512xf32, #tpu.memory_space<vmem>>, vector<32x512xf32>
    tpu.vector_store %arg6[%c0_10, %c0_11], %13 {strides = array<i32>} : memref<32x512xf32, #tpu.memory_space<vmem>>, vector<32x512xf32>,
    return
  }
  func.func @transform_0(%arg0: i32) -> (i32, i32) {
    %c0_i32 = arith.constant 0 : i32
    %c0_i32_0 = arith.constant 0 : i32
    return %c0_i32, %arg0 : i32, i32
  }
  func.func @transform_1(%arg0: i32) -> (i32, i32) {
    %c0_i32 = arith.constant 0 : i32
    %c0_i32_0 = arith.constant 0 : i32
    %c0_i32_1 = arith.constant 0 : i32
    return %c0_i32, %c0_i32_0 : i32, i32
  }
  func.func @transform_2(%arg0: i32) -> (i32, i32) {
    %c0_i32 = arith.constant 0 : i32
    %c0_i32_0 = arith.constant 0 : i32
    %c0_i32_1 = arith.constant 0 : i32
    return %c0_i32, %c0_i32_0 : i32, i32
  }
  func.func @transform_3(%arg0: i32) -> (i32, i32) {
    %c0_i32 = arith.constant 0 : i32
    %c0_i32_0 = arith.constant 0 : i32
    %c0_i32_1 = arith.constant 0 : i32
    return %c0_i32, %c0_i32_0 : i32, i32
  }
  func.func @transform_4(%arg0: i32) -> (i32, i32) {
    %c0_i32 = arith.constant 0 : i32
    %c0_i32_0 = arith.constant 0 : i32
    %c0_i32_1 = arith.constant 0 : i32
    return %c0_i32, %c0_i32_0 : i32, i32
  }
  func.func @transform_5(%arg0: i32) -> (i32, i32) {
    %c0_i32 = arith.constant 0 : i32
    %c0_i32_0 = arith.constant 0 : i32
    return %c0_i32, %arg0 : i32, i32
  }
}

module attributes {stable_mosaic.version = 11 : i64} {
  func.func @_matmul_bias_kernel(%arg0: i32, %arg1: memref<72x512xbf16, #tpu.memory_space<vmem>>, %arg2: memref<12x72xbf16, #tpu.memory_space<vmem>>, %arg3: memref<12x1xf32, #tpu.memory_space<vmem>>, %arg4: memref<12x512xf32, #tpu.memory_space<vmem>>) attributes {dimension_semantics = [#tpu.dimension_semantics<parallel>], iteration_bounds = array<i64: 4>, scalar_prefetch = 0 : i64, scratch_operands = 0 : i64, tpu.core_type = #tpu.core_type<tc>, window_params = [{transform_indices = @transform_0, window_bounds = array<i64: 72, 512>}, {pipeline_mode = #tpu.pipeline_mode<synchronous>, transform_indices = @transform_1, window_bounds = array<i64: 12, 72>}, {pipeline_mode = #tpu.pipeline_mode<synchronous>, transform_indices = @transform_2, window_bounds = array<i64: 12, 1>}, {transform_indices = @transform_3, window_bounds = array<i64: 12, 512>}]} {
    %c0 = arith.constant 0 : index
    %c0_0 = arith.constant 0 : index
    %0 = vector.load %arg2[%c0, %c0_0] : memref<12x72xbf16, #tpu.memory_space<vmem>>, vector<12x72xbf16>
    %c0_1 = arith.constant 0 : index
    %c0_2 = arith.constant 0 : index
    %1 = vector.load %arg1[%c0_1, %c0_2] : memref<72x512xbf16, #tpu.memory_space<vmem>>, vector<72x512xbf16>
    %cst = arith.constant dense<0.000000e+00> : vector<12x512xf32>
    %2 = tpu.matmul %0, %1, %cst {dimension_numbers = #tpu.dot_dimension_numbers<[1], [0], [0], [1], [0, 0, 1, 1], [], []>} : vector<12x72xbf16>, vector<72x512xbf16>, vector<12x512xf32> -> vector<12x512xf32>
    %c0_3 = arith.constant 0 : index
    %c0_4 = arith.constant 0 : index
    %3 = vector.load %arg3[%c0_3, %c0_4] : memref<12x1xf32, #tpu.memory_space<vmem>>, vector<12x1xf32>
    %4 = vector.broadcast %3 : vector<12x1xf32> to vector<12x512xf32>
    %5 = arith.addf %2, %4 : vector<12x512xf32>
    %c0_5 = arith.constant 0 : index
    %c0_6 = arith.constant 0 : index
    %6 = vector.load %arg4[%c0_5, %c0_6] : memref<12x512xf32, #tpu.memory_space<vmem>>, vector<12x512xf32>
    tpu.vector_store %arg4[%c0_5, %c0_6], %5 {strides = array<i32>} : memref<12x512xf32, #tpu.memory_space<vmem>>, vector<12x512xf32>,
    return
  }
  func.func @transform_0(%arg0: i32) -> (i32, i32) {
    %c0_i32 = arith.constant 0 : i32
    %c0_i32_0 = arith.constant 0 : i32
    return %c0_i32, %arg0 : i32, i32
  }
  func.func @transform_1(%arg0: i32) -> (i32, i32) {
    %c0_i32 = arith.constant 0 : i32
    %c0_i32_0 = arith.constant 0 : i32
    %c0_i32_1 = arith.constant 0 : i32
    return %c0_i32, %c0_i32_0 : i32, i32
  }
  func.func @transform_2(%arg0: i32) -> (i32, i32) {
    %c0_i32 = arith.constant 0 : i32
    %c0_i32_0 = arith.constant 0 : i32
    %c0_i32_1 = arith.constant 0 : i32
    return %c0_i32, %c0_i32_0 : i32, i32
  }
  func.func @transform_3(%arg0: i32) -> (i32, i32) {
    %c0_i32 = arith.constant 0 : i32
    %c0_i32_0 = arith.constant 0 : i32
    return %c0_i32, %arg0 : i32, i32
  }
}

</mosaic_0001>

<bundles_post_ra>
// kernel: tile.46
= control target key start
LH: loop header
LB: loop body
LE: loop exit
PB: predicated region body
PF: predicated region fallthrough
CT: control target
= control target key end

     0   :  { %2 = vsyncpa [#allocation1], 0  ;;  %s44_s6 = smov [#allocation0]   ;;  %s70_s0 = inlined_call_operand.hbm [shape: f32[3], index: 0, kind: input, shape index: {}]   ;;  %s71_s1 = inlined_call_operand.vmem [shape: f32[4,3], index: 1, kind: output, shape index: {}]  }
   0x1   :  { %s9_s7 = sshll.u32 %s44_s6, 4  ;;  %s20_s10 = scalar_lea.hbm %s70_s0, 16  ;;  %s10_s7 = int_to_ptr.vmem [resolvable:$true] %s9_s7 }
   0x2   :  { %p21_p0 = scmp.ne.s32.totalorder %s70_s0, %s20_s10  ;;  %p24_p1 = scmp.lt.u32.totalorder %s20_s10, %s70_s0 }
   0x4   :  { %p26_p2 = pnand %p24_p1, %p21_p0 }
   0x6   :  { %29 = shalt.err (!%p26_p2)
}
   0x7   :  { %s30_s15 = scalar_lea.vmem %s10_s7, 16  ;;  %s34_s16 = scalar_lea.vmem %s10_s7, 32 }
   0x8   :  { %p31_p3 = scmp.ne.s32.totalorder %s10_s7, %s30_s15  ;;  %p35_p4 = scmp.lt.s32.totalorder %s10_s7, %s10_s7 }
   0x9   :  { %p36_p5 = scmp.lt.s32.totalorder %s34_s16, %s30_s15 }
   0xb   :  { %p37_p6 = por %p36_p5, %p35_p4 }
   0xd   :  { %p38_p7 = pnand %p37_p6, %p31_p3 }
   0xf   :  { %41 = shalt.err (!%p38_p7)
}
  0x10   :  { %12 = dma.hbm_to_vmem [thread:$0]  %s70_s0, 16, %s10_s7, [#allocation1]  }
  0x11   :  { %42 = dma.done.wait [#allocation1], 16  }
  0x12   :  { %43 = vsyncadd [#allocation1], 4294967280  ;;  %v16_v0 = vld [vmem:[#allocation0] ss:$0 sm:$0xff] }
  0x13   :  { %17 = vst [vmem:[%s71_s1] sm:$0xf] %v16_v0 }
  0x14   :  { %18 = vsyncpa [#allocation1], 1 }

// kernel: tile.5
= control target key start
LH: loop header
LB: loop body
LE: loop exit
PB: predicated region body
PF: predicated region fallthrough
CT: control target
= control target key end

     0   :  { %vm7_vm0 = vcmask 7168   ;;  %s26_s10 = smov 126   ;;  %s49_s0 = inlined_call_operand.vmem [shape: f32[4,3], index: 0, kind: input, shape index: {}]   ;;  %s50_s1 = inlined_call_operand.vmem [shape: f32[12,1], index: 1, kind: output, shape index: {}]  }
   0x1   :  { %v4_v0 = vld [vmem:[%s49_s0] sm:$0xf]  ;;  %s25_s0 = smov 127  }
   0x2   :  { %5 = vst [vmem:[#allocation0] sm:$0xf] %v4_v0 }
   0x9   :  { %v9_v1 = vld [vmem:[#allocation0] sm:$0xf]  }
   0xa   :  { %v6_v2 = vld [vmem:[#allocation0] sm:$0xf]   ;;  %10 = vrot.lane.b32.xlu0 %v9_v1, %s25_s0 }
   0xb   :  { %8 = vst.msk [vmem:[%s50_s1] ss:$3 sm:$0xf] %vm7_vm0, %v6_v2   ;;  %v15_v3 = vld [vmem:[#allocation0] sm:$0xf]  }
   0xe   :  { %16 = vrot.lane.b32.xlu0 %v15_v3, %s26_s10 }
  0x7c   :  { %v11_v4 = vpop.permute.xlu0 %10  }
  0x7d   :  { %21 = vst.msk [vmem:[%s50_s1 + $0x1] ss:$3 sm:$0xf] %vm7_vm0, %v11_v4  }
  0x80   :  { %v17_v5 = vpop.permute.xlu0 %16  }
  0x81   :  { %22 = vst.msk [vmem:[%s50_s1 + $0x2] ss:$3 sm:$0xf] %vm7_vm0, %v17_v5  }

// kernel: tile.42
= control target key start
LH: loop header
LB: loop body
LE: loop exit
PB: predicated region body
PF: predicated region fallthrough
CT: control target
= control target key end

     0   :  { %2 = vsyncpa [#allocation1], 0  ;;  %s44_s6 = smov [#allocation0]   ;;  %s70_s0 = inlined_call_operand.hbm [shape: f32[8], index: 0, kind: input, shape index: {}]   ;;  %s71_s1 = inlined_call_operand.vmem [shape: f32[4,8], index: 1, kind: output, shape index: {}]  }
   0x1   :  { %s9_s7 = sshll.u32 %s44_s6, 4  ;;  %s20_s10 = scalar_lea.hbm %s70_s0, 16  ;;  %s10_s7 = int_to_ptr.vmem [resolvable:$true] %s9_s7 }
   0x2   :  { %p21_p0 = scmp.ne.s32.totalorder %s70_s0, %s20_s10  ;;  %p24_p1 = scmp.lt.u32.totalorder %s20_s10, %s70_s0 }
   0x4   :  { %p26_p2 = pnand %p24_p1, %p21_p0 }
   0x6   :  { %29 = shalt.err (!%p26_p2)
}
   0x7   :  { %s30_s15 = scalar_lea.vmem %s10_s7, 16  ;;  %s34_s16 = scalar_lea.vmem %s10_s7, 32 }
   0x8   :  { %p31_p3 = scmp.ne.s32.totalorder %s10_s7, %s30_s15  ;;  %p35_p4 = scmp.lt.s32.totalorder %s10_s7, %s10_s7 }
   0x9   :  { %p36_p5 = scmp.lt.s32.totalorder %s34_s16, %s30_s15 }
   0xb   :  { %p37_p6 = por %p36_p5, %p35_p4 }
   0xd   :  { %p38_p7 = pnand %p37_p6, %p31_p3 }
   0xf   :  { %41 = shalt.err (!%p38_p7)
}
  0x10   :  { %12 = dma.hbm_to_vmem [thread:$0]  %s70_s0, 16, %s10_s7, [#allocation1]  }
  0x11   :  { %42 = dma.done.wait [#allocation1], 16  }
  0x12   :  { %43 = vsyncadd [#allocation1], 4294967280  ;;  %v16_v0 = vld [vmem:[#allocation0] ss:$0 sm:$0xff] }
  0x13   :  { %17 = vst [vmem:[%s71_s1] sm:$0xf] %v16_v0 }
  0x14   :  { %18 = vsyncpa [#allocation1], 1 }

// kernel: tile.4
= control target key start
LH: loop header
LB: loop body
LE: loop exit
PB: predicated region body
PF: predicated region fallthrough
CT: control target
= control target key end

     0   :  { %s66_s8 = smov 125   ;;  %vm7_vm0 = vcmask 7168   ;;  %s67_s11 = smov 126   ;;  %s117_s0 = inlined_call_operand.vmem [shape: f32[4,8], index: 0, kind: input, shape index: {}]   ;;  %s118_s1 = inlined_call_operand.vmem [shape: f32[32,1], index: 1, kind: output, shape index: {}]  }
   0x1   :  { %v4_v0 = vld [vmem:[%s117_s0] sm:$0xf]  ;;  %s65_s0 = smov 127   ;;  %s68_s12 = smov 124  }
   0x2   :  { %5 = vst [vmem:[#allocation0] sm:$0xf] %v4_v0  ;;  %s69_s13 = smov 123   ;;  %s70_s14 = smov 122  }
   0x3   :  { %s71_s15 = smov 121  }
   0x9   :  { %v9_v1 = vld [vmem:[#allocation0] sm:$0xf]  }
   0xa   :  { %v21_v2 = vld [vmem:[#allocation0] sm:$0xf]   ;;  %10 = vrot.lane.b32.xlu0 %v9_v1, %s65_s0 }
   0xb   :  { %22 = vrot.lane.b32.xlu1 %v21_v2, %s66_s8  ;;  %v15_v3 = vld [vmem:[#allocation0] sm:$0xf]  }
   0xc   :  { %v27_v4 = vld [vmem:[#allocation0] sm:$0xf]  }
   0xd   :  { %v6_v5 = vld [vmem:[#allocation0] sm:$0xf]  }
   0xe   :  { %8 = vst.msk [vmem:[%s118_s1] ss:$8 sm:$0xf] %vm7_vm0, %v6_v5   ;;  %16 = vrot.lane.b32.xlu0 %v15_v3, %s67_s11  ;;  %v33_v6 = vld [vmem:[#allocation0] sm:$0xf]  }
   0xf   :  { %28 = vrot.lane.b32.xlu1 %v27_v4, %s68_s12  ;;  %v39_v7 = vld [vmem:[#allocation0] sm:$0xf]  }
  0x10   :  { %v45_v8 = vld [vmem:[#allocation0] sm:$0xf]  }
  0x12   :  { %34 = vrot.lane.b32.xlu0 %v33_v6, %s69_s13 }
  0x13   :  { %40 = vrot.lane.b32.xlu1 %v39_v7, %s70_s14 }
  0x16   :  { %46 = vrot.lane.b32.xlu0 %v45_v8, %s71_s15 }
  0x7c   :  { %v11_v9 = vpop.permute.xlu0 %10  }
  0x7d   :  { %v23_v10 = vpop.permute.xlu1 %22   ;;  %51 = vst.msk [vmem:[%s118_s1 + $0x1] ss:$8 sm:$0xf] %vm7_vm0, %v11_v9  }
  0x7e   :  { %53 = vst.msk [vmem:[%s118_s1 + $0x3] ss:$8 sm:$0xf] %vm7_vm0, %v23_v10  }
  0x80   :  { %v17_v11 = vpop.permute.xlu0 %16  }
  0x81   :  { %v29_v12 = vpop.permute.xlu1 %28   ;;  %52 = vst.msk [vmem:[%s118_s1 + $0x2] ss:$8 sm:$0xf] %vm7_vm0, %v17_v11  }
  0x82   :  { %54 = vst.msk [vmem:[%s118_s1 + $0x4] ss:$8 sm:$0xf] %vm7_vm0, %v29_v12  }
  0x84   :  { %v35_v13 = vpop.permute.xlu0 %34  }
  0x85   :  { %v41_v14 = vpop.permute.xlu1 %40   ;;  %55 = vst.msk [vmem:[%s118_s1 + $0x5] ss:$8 sm:$0xf] %vm7_vm0, %v35_v13  }
  0x86   :  { %56 = vst.msk [vmem:[%s118_s1 + $0x6] ss:$8 sm:$0xf] %vm7_vm0, %v41_v14  }
  0x88   :  { %v47_v15 = vpop.permute.xlu0 %46  }
  0x89   :  { %57 = vst.msk [vmem:[%s118_s1 + $0x7] ss:$8 sm:$0xf] %vm7_vm0, %v47_v15  }

// kernel: scale_hyperprior_forward.16
= control target key start
LH: loop header
LB: loop body
LE: loop exit
PB: predicated region body
PF: predicated region fallthrough
CT: control target
= control target key end

     0   :  { %s903_s18 = smov 0   ;;  %s905_s19 = smov 0   ;;  %s1033_s0 = inlined_call_operand.vmem [shape: bf16[75,2048], index: 0, kind: input, shape index: {}]   ;;  %s1034_s1 = inlined_call_operand.vmem [shape: bf16[8,75], index: 1, kind: input, shape index: {}]   ;;  %s1035_s2 = inlined_call_operand.vmem [shape: f32[8,1], index: 2, kind: input, shape index: {}]   ;;  %s1036_s3 = inlined_call_operand.vmem [shape: f32[8,8], index: 3, kind: input, shape index: {}]   ;;  %s1037_s4 = inlined_call_operand.vmem [shape: f32[8,1], index: 4, kind: input, shape index: {}]   ;;  %s1038_s5 = inlined_call_operand.vmem [shape: f32[8,2048], index: 5, kind: output, shape index: {}]  }
   0x1   :  { %s907_s20 = smov 0  }
   0x2 LB: > { %s742_s21 = sadd.s32 4294967295, %s868_s20   ;;  %s920_s22 = sadd.s32 1, %s868_s20   ;;  %s868_s20 = sphi %s907_s20, %s1041_s20   ;;  %s864_s19 = sphi %s905_s19, %s1040_s19   ;;  %s860_s18 = sphi %s903_s18, %s1039_s18  }
   0x3   : > { %s19_s23 = ssub.s32 %s868_s20, %s920_s22  ;;  %s22_s24 = sadd.s32 1, %s864_s19 }
   0x4   : > { %p20_p0 = scmp.eq.s32.totalorder %s19_s23, 0  ;;  %p29_p1 = scmp.ne.s32.totalorder %s864_s19, %s860_s18 }
   0x5   : > { %p30_p2 = scmp.eq.s32.totalorder %s868_s20, 0  ;;  %p745_p4 = scmp.ge.s32.totalorder %s868_s20, 4 }
   0x6   : > { %s929_s25 = scalar_select %p20_p0, %s864_s19, %s22_s24  }
   0x7   : > { %p31_p3 = por %p30_p2, %p29_p1  ;;  %177 = sbr.rel (%p745_p4) target bundleno = 28 (0x1c), region = 32 }
   0xe   : > { %180 = sbr.rel (!%p31_p3) target bundleno = 28 (0x1c), region = 36  ;;  %s182_s26 = sand.u32 (%p31_p3), 1, %s864_s19  }
   0xf   : > { %s777_s27 = sshll.u32 (%p31_p3), %s868_s20, 4  ;;  %s778_s28 = smul.u32 (%p31_p3), 160, %s182_s26 }
  0x10   : > { %s937_s6 = scalar_lea.vmem (%p31_p3), %s1033_s0, %s777_s27 }
  0x11   : > { %v200_v0 = vld [vmem:[%s937_s6] sm:$0xff] (%p31_p3)  ;;  %v202_v1 = vld [vmem:[%s937_s6 + $0x8] sm:$0xff] (%p31_p3)  ;;  %s945_s7 = scalar_lea.vmem (%p31_p3), [#allocation2], %s778_s28 }
  0x12   : > { %v204_v2 = vld [vmem:[%s937_s6 + $0x40] sm:$0xff] (%p31_p3)  ;;  %v206_v3 = vld [vmem:[%s937_s6 + $0x48] sm:$0xff] (%p31_p3)  ;;  %201 = vst [vmem:[%s945_s7] sm:$0xff] (%p31_p3), %v200_v0  ;;  %203 = vst [vmem:[%s945_s7 + $0x8] sm:$0xff] (%p31_p3), %v202_v1 }
  0x13   : > { %v208_v4 = vld [vmem:[%s937_s6 + $0x80] sm:$0xff] (%p31_p3)  ;;  %v210_v5 = vld [vmem:[%s937_s6 + $0x88] sm:$0xff] (%p31_p3)  ;;  %205 = vst [vmem:[%s945_s7 + $0x10] sm:$0xff] (%p31_p3), %v204_v2  ;;  %207 = vst [vmem:[%s945_s7 + $0x18] sm:$0xff] (%p31_p3), %v206_v3 }
  0x14   : > { %209 = vst [vmem:[%s945_s7 + $0x20] sm:$0xff] (%p31_p3), %v208_v4  ;;  %211 = vst [vmem:[%s945_s7 + $0x28] sm:$0xff] (%p31_p3), %v210_v5  ;;  %v212_v6 = vld [vmem:[%s937_s6 + $0xc0] sm:$0xff] (%p31_p3)  ;;  %v214_v7 = vld [vmem:[%s937_s6 + $0xc8] sm:$0xff] (%p31_p3) }
  0x15   : > { %v216_v8 = vld [vmem:[%s937_s6 + $0x100] sm:$0xff]  ;;  %213 = vst [vmem:[%s945_s7 + $0x30] sm:$0xff] %v212_v6  ;;  %215 = vst [vmem:[%s945_s7 + $0x38] sm:$0xff] %v214_v7  ;;  %v218_v9 = vld [vmem:[%s937_s6 + $0x108] sm:$0xff] }
  0x16   : > { %217 = vst [vmem:[%s945_s7 + $0x40] sm:$0xff] %v216_v8  ;;  %v220_v10 = vld [vmem:[%s937_s6 + $0x140] sm:$0xff]  ;;  %v222_v11 = vld [vmem:[%s937_s6 + $0x148] sm:$0xff]  ;;  %219 = vst [vmem:[%s945_s7 + $0x48] sm:$0xff] %v218_v9 }
  0x17   : > { %221 = vst [vmem:[%s945_s7 + $0x50] sm:$0xff] %v220_v10  ;;  %223 = vst [vmem:[%s945_s7 + $0x58] sm:$0xff] %v222_v11  ;;  %v224_v12 = vld [vmem:[%s937_s6 + $0x180] sm:$0xff]  ;;  %v226_v13 = vld [vmem:[%s937_s6 + $0x188] sm:$0xff] }
  0x18   : > { %v228_v14 = vld [vmem:[%s937_s6 + $0x1c0] sm:$0xff]  ;;  %225 = vst [vmem:[%s945_s7 + $0x60] sm:$0xff] %v224_v12  ;;  %227 = vst [vmem:[%s945_s7 + $0x68] sm:$0xff] %v226_v13  ;;  %v230_v15 = vld [vmem:[%s937_s6 + $0x1c8] sm:$0xff] }
  0x19   : > { %229 = vst [vmem:[%s945_s7 + $0x70] sm:$0xff] %v228_v14  ;;  %v232_v16 = vld [vmem:[%s937_s6 + $0x200] sm:$0xff]  ;;  %v234_v17 = vld [vmem:[%s937_s6 + $0x208] sm:$0xff]  ;;  %231 = vst [vmem:[%s945_s7 + $0x78] sm:$0xff] %v230_v15 }
  0x1a   : > { %233 = vst [vmem:[%s945_s7 + $0x80] sm:$0xff] %v232_v16  ;;  %235 = vst [vmem:[%s945_s7 + $0x88] sm:$0xff] %v234_v17  ;;  %v236_v18 = vld [vmem:[%s937_s6 + $0x240] sm:$0xff]  ;;  %v238_v19 = vld [vmem:[%s937_s6 + $0x248] sm:$0xff] }
  0x1b   : > { %237 = vst [vmem:[%s945_s7 + $0x90] sm:$0xff] %v236_v18  ;;  %239 = vst [vmem:[%s945_s7 + $0x98] sm:$0xff] %v238_v19 }
  0x1c PF: > { %p748_p5 = scmp.ge.s32.totalorder %s868_s20, 1  ;;  %p244_p6 = scmp.lt.s32.totalorder %s868_s20, 5 }
  0x1e   : > { %p245_p7 = pnand %p748_p5, %p244_p6 }
  0x1f   : > { %s251_s8 = sand.u32 (!%p245_p7), 1, %s860_s18   ;;  %v307_v20 = vld [vmem:[%s1035_s2] sm:$0xff] (!%p245_p7)  ;;  %v870_v21 = vmov (!%p245_p7), 0   ;;  %vm413_vm0 = vcmask (!%p245_p7), 1044480   ;;  %vm414_vm1 = vcmask (!%p245_p7), 1045504   ;;  %v871_v32 = vmov (!%p245_p7), 65535  }
  0x20   : > { %248 = sbr.rel (%p245_p7) target bundleno = 507 (0x1fb), region = 59  ;;  %461 = vmatprep.mubr.bf16.mxu0 (!%p245_p7), %v870_v21  ;;  %502 = vmatprep.mubr.bf16.mxu1 (!%p245_p7), %v870_v21  ;;  %v516_v22 = vld [vmem:[%s1037_s4] sm:$0xff] (!%p245_p7)  ;;  %v415_v33 = vsel (!%p245_p7), %vm413_vm0, 4294967295, %v871_v32  ;;  %vm409_vm2 = vcmask (!%p245_p7), 613376   ;;  %v872_v51 = vmov (!%p245_p7), 0.0   ;;  %vm522_vm3 = vcmask (!%p245_p7), 64512  }
  0x21   : > { %s779_s11 = smul.u32 (!%p245_p7), 160, %s251_s8  ;;  %807 = vset.pattern.permute.xlu0 (!%p245_p7), %v870_v21  ;;  %v416_v41 = vsel (!%p245_p7), %vm414_vm1, %v415_v33, 0  ;;  %v286_v50 = vld [vmem:[%s1034_s1] sm:$0xf] (!%p245_p7)  ;;  %s749_s23 = sshll.u32 (!%p245_p7), %s742_s21, 2 }
  0x22   : > { %310 = vperm.xlu0 (!%p245_p7), %807, %v307_v20   ;;  %v511_v5 = vld [vmem:[%s1036_s3] sm:$0xff] (!%p245_p7)  ;;  %p280_p8 = scmp.lt.s32.totalorder (!%p245_p7), %s749_s23, 15 }
  0x23   : > { %s990_s14 = scalar_lea.vmem (!%p245_p7), [#allocation2], %s779_s11 }
  0x24   : > { %v808_v23 = vld [vmem:[%s990_s14 + $0x4] ss:$16 sps:$4 sm:$0xff] (!%p245_p7)   ;;  %v810_v24 = vld [vmem:[%s990_s14 + $0xc] ss:$16 sps:$4 sm:$0xff] (!%p245_p7)   ;;  %v812_v25 = vld [vmem:[%s990_s14] ss:$16 sps:$4 sm:$0xff] (!%p245_p7)  }
  0x25   : > { %429 = vmatprep.subr.bf16.mxu0 (!%p245_p7), %v808_v23  ;;  %v813_v26 = vld [vmem:[%s990_s14 + $0x8] ss:$16 sps:$4 sm:$0xff] (!%p245_p7)   ;;  %470 = vmatprep.subr.bf16.mxu1 (!%p245_p7), %v810_v24  ;;  %v814_v27 = vld [vmem:[%s990_s14 + $0x24] ss:$16 sps:$4 sm:$0xff] (!%p245_p7)   ;;  %v816_v28 = vld [vmem:[%s990_s14 + $0x2c] ss:$16 sps:$4 sm:$0xff] (!%p245_p7)  }
  0x26   : > { %519 = vperm.xlu0 (!%p245_p7), %807, %v516_v22   ;;  %430 = vmatpush1.bf16.msra.mxu0 (!%p245_p7), %v812_v25  ;;  %v818_v29 = vld [vmem:[%s990_s14 + $0x20] ss:$16 sps:$4 sm:$0xff] (!%p245_p7)   ;;  %v819_v30 = vld [vmem:[%s990_s14 + $0x28] ss:$16 sps:$4 sm:$0xff] (!%p245_p7)   ;;  %v820_v31 = vld [vmem:[%s990_s14 + $0x44] ss:$16 sps:$4 sm:$0xff] (!%p245_p7)  }
  0x27   : > { %471 = vmatpush1.bf16.msra.mxu1 %v813_v26  ;;  %431 = vmatprep.subr.bf16.mxu0 %v814_v27  ;;  %v822_v34 = vld [vmem:[%s990_s14 + $0x4c] ss:$16 sps:$4 sm:$0xff]   ;;  %v824_v35 = vld [vmem:[%s990_s14 + $0x40] ss:$16 sps:$4 sm:$0xff]   ;;  %v825_v36 = vld [vmem:[%s990_s14 + $0x48] ss:$16 sps:$4 sm:$0xff]  }
  0x28   : > { %472 = vmatprep.subr.bf16.mxu1 %v816_v28  ;;  %v826_v37 = vld [vmem:[%s990_s14 + $0x64] ss:$16 sps:$4 sm:$0xff]   ;;  %v828_v38 = vld [vmem:[%s990_s14 + $0x6c] ss:$16 sps:$4 sm:$0xff]   ;;  %v830_v39 = vld [vmem:[%s990_s14 + $0x60] ss:$16 sps:$4 sm:$0xff]  }
  0x29   : > { %v831_v40 = vld [vmem:[%s990_s14 + $0x68] ss:$16 sps:$4 sm:$0xff]   ;;  %v832_v42 = vld [vmem:[%s990_s14 + $0x84] ss:$16 sps:$4 sm:$0x3f]   ;;  %s1043_s23 = smov (!%p280_p8, %s749_s23), 15 }
  0x2a   : > { %432 = vmatpush1.bf16.msra.mxu0 %v818_v29  ;;  %v834_v43 = vld [vmem:[%s990_s14 + $0x8c] ss:$16 sps:$4 sm:$0x3f]   ;;  %v421_v44 = vand.u32 %v832_v42, %v416_v41  ;;  %v836_v45 = vld [vmem:[%s990_s14 + $0x80] ss:$16 sps:$4 sm:$0x3f]  }
  0x2b   : > { %473 = vmatpush1.bf16.msra.mxu1 %v819_v30  ;;  %433 = vmatprep.subr.bf16.mxu0 %v820_v31  ;;  %v837_v46 = vld [vmem:[%s990_s14 + $0x88] ss:$16 sps:$4 sm:$0x3f]   ;;  %v427_v47 = vand.u32 %v834_v43, %v416_v41  ;;  %v418_v48 = vand.u32 %v836_v45, %v416_v41  ;;  %s750_s24 = sshll.u32 %s1043_s23, 3 }
  0x2c   : > { %474 = vmatprep.subr.bf16.mxu1 %v822_v34  ;;  %v424_v49 = vand.u32 %v837_v46, %v416_v41  ;;  %s283_s20 = scalar_lea.vmem %s1038_s5, %s750_s24 }
  0x2e   : > { %434 = vmatpush1.bf16.msra.mxu0 %v824_v35 }
  0x2f   : > { %475 = vmatpush1.bf16.msra.mxu1 %v825_v36  ;;  %435 = vmatprep.subr.bf16.mxu0 %v826_v37 }
  0x30   : > { %476 = vmatprep.subr.bf16.mxu1 %v828_v38 }
  0x32   : > { %436 = vmatpush1.bf16.msra.mxu0 %v830_v39 }
  0x33   : > { %477 = vmatpush1.bf16.msra.mxu1 %v831_v40  ;;  %437 = vmatprep.subr.bf16.mxu0 %v421_v44 }
  0x34   : > { %478 = vmatprep.subr.bf16.mxu1 %v427_v47 }
  0x36   : > { %438 = vmatpush1.bf16.msra.mxu0 %v418_v48 }
  0x37   : > { %479 = vmatpush1.bf16.msra.mxu1 %v424_v49 }
  0x39   : > { %771 = vmatmul.mubr.msk.bf16.vlgmr.msra.gmra.mrb[0].mxu0 %vm409_vm2, %v286_v50 }
  0x3a   : > { %772 = vmatmul.mubr.msk.bf16.vlgmr.msra.gmra.mrb[0].mxu1 %vm409_vm2, %v286_v50  ;;  %590 = vmatprep.mubr.f32.mxu0 %v872_v51 }
  0x3b   : > { %661 = vmatprep.mubr.f32.mxu1 %v872_v51 }
  0xa1   : > { %v311_v52 = vpop.permute.xlu0 %310 }
  0xa5   : > { %v520_v6 = vpop.permute.xlu0 %519 }
 0x10c   : > { %v463_v53 = vpop.f32.mrb[0].mxu0 }
 0x10d   : > { %v504_v54 = vpop.f32.mrb[0].mxu1  ;;  %v464_v55 = vadd.f32 %v463_v53, %v311_v52  ;;  %v465_v57 = vpop.f32.mrb[1].mxu0 }
 0x10e   : > { %v505_v56 = vadd.f32 %v504_v54, %v311_v52  ;;  %v506_v58 = vpop.f32.mrb[1].mxu1  ;;  %v466_v59 = vadd.f32 %v465_v57, %v311_v52  ;;  %v467_v61 = vpop.f32.mrb[2].mxu0 }
 0x10f   : > { %v507_v60 = vadd.f32 %v506_v58, %v311_v52  ;;  %v508_v62 = vpop.f32.mrb[2].mxu1  ;;  %v468_v63 = vpop.f32.mrb[3].mxu0  ;;  %v512_v3 = vmul.f32 %v464_v55, %v464_v55 }
 0x110   : > { %v509_v0 = vpop.f32.mrb[3].mxu1  ;;  %v513_v1 = vmul.f32 %v466_v59, %v466_v59  ;;  %v514_v4 = vmul.f32 %v505_v56, %v505_v56 }
 0x111   : > { %v515_v2 = vmul.f32 %v507_v60, %v507_v60 }
 0x112   : > { %526 = vmatprep.subr.mxu0 %v513_v1 }
 0x113   : > { %597 = vmatprep.subr.mxu1 %v515_v2  ;;  %527 = vmatpush1.msra.mxu0 %v512_v3 }
 0x114   : > { %598 = vmatpush1.msra.mxu1 %v514_v4  ;;  %773 = vmatmul.mubr.msk.f32.vlgmr.msra.gmra.mrb[4].mxu0 %vm522_vm3, %v511_v5 }
 0x115   : > { %774 = vmatmul.mubr.msk.f32.vlgmr.msra.gmra.mrb[4].mxu1 %vm522_vm3, %v511_v5 }
 0x1e7   : > { %v592_v7 = vpop.f32.mrb[4].mxu0 }
 0x1e8   : > { %v663_v8 = vpop.f32.mrb[4].mxu1  ;;  %v593_v9 = vadd.f32 %v592_v7, %v520_v6  ;;  %v594_v11 = vpop.f32.mrb[5].mxu0 }
 0x1e9   : > { %v664_v10 = vadd.f32 %v663_v8, %v520_v6  ;;  %v665_v12 = vpop.f32.mrb[5].mxu1  ;;  %v595_v13 = vadd.f32 %v594_v11, %v520_v6 }
 0x1ea   : > { %v666_v14 = vadd.f32 %v665_v12, %v520_v6  ;;  %838 = vrsqrt.f32 %v593_v9 }
 0x1eb   : > { %840 = vrsqrt.f32 %v664_v10 }
 0x1ec   : > { %842 = vrsqrt.f32 %v595_v13 }
 0x1ed   : > { %844 = vrsqrt.f32 %v666_v14 }
 0x1f4   : > { %v839_v15 = vpop.eup %838 }
 0x1f5   : > { %v841_v16 = vpop.eup %840  ;;  %v672_v17 = vmul.f32 %v839_v15, %v464_v55 }
 0x1f6   : > { %v843_v18 = vpop.eup %842  ;;  %v674_v19 = vmul.f32 %v841_v16, %v505_v56 }
 0x1f7   : > { %v845_v20 = vpop.eup %844  ;;  %676 = vst [vmem:[%s283_s20] sm:$0xff] %v672_v17  ;;  %v673_v21 = vmul.f32 %v843_v18, %v466_v59 }
 0x1f8   : > { %678 = vst [vmem:[%s283_s20 + $0x10] sm:$0xff] %v674_v19  ;;  %v675_v22 = vmul.f32 %v845_v20, %v507_v60 }
 0x1f9   : > { %677 = vst [vmem:[%s283_s20 + $0x8] sm:$0xff] %v673_v21 }
 0x1fa   : > { %679 = vst [vmem:[%s283_s20 + $0x18] sm:$0xff] %v675_v22 }
 0x1fb PF: > { %p12_p9 = scmp.ge.s32.totalorder %s920_s22, 6   ;;  %s1039_s18 = smov %s864_s19 }
 0x1fc   : > { %s1040_s19 = smov %s929_s25  ;;  %s1041_s20 = smov %s920_s22 }
 0x1fd   :  { %14 = sbr.rel (!%p12_p9) target bundleno = 2 (0x2), region = 98 }

// kernel: scale_hyperprior_forward.17
= control target key start
LH: loop header
LB: loop body
LE: loop exit
PB: predicated region body
PF: predicated region fallthrough
CT: control target
= control target key end

     0   :  { %v755_v1 = vmov 0   ;;  %vm334_vm0 = vcmask 588800   ;;  %vm338_vm1 = vcmask 1043456   ;;  %v756_v62 = vmov 0.0   ;;  %s961_s0 = inlined_call_operand.vmem [shape: bf16[200,512], index: 0, kind: input, shape index: {}]   ;;  %s962_s1 = inlined_call_operand.vmem [shape: bf16[8,200], index: 1, kind: input, shape index: {}]   ;;  %s963_s2 = inlined_call_operand.vmem [shape: f32[8,1], index: 2, kind: input, shape index: {}]   ;;  %s964_s4 = inlined_call_operand.vmem [shape: f32[8,1], index: 4, kind: input, shape index: {}]   ;;  %s965_s3 = inlined_call_operand.vmem [shape: f32[8,8], index: 3, kind: input, shape index: {}]   ;;  %s966_s5 = inlined_call_operand.vmem [shape: f32[8,512], index: 5, kind: output, shape index: {}]  }
   0x1   :  { %v669_v0 = vld [vmem:[%s961_s0 + $0x4] ss:$16 sps:$4 sm:$0xff]   ;;  %668 = vset.pattern.permute.xlu0 %v755_v1  ;;  %v671_v2 = vld [vmem:[%s961_s0 + $0xc] ss:$16 sps:$4 sm:$0xff]   ;;  %v673_v3 = vld [vmem:[%s961_s0] ss:$16 sps:$4 sm:$0xff]  }
   0x2   :  { %351 = vmatprep.subr.bf16.mxu0 %v669_v0  ;;  %v674_v4 = vld [vmem:[%s961_s0 + $0x8] ss:$16 sps:$4 sm:$0xff]   ;;  %392 = vmatprep.subr.bf16.mxu1 %v671_v2  ;;  %v675_v5 = vld [vmem:[%s961_s0 + $0x24] ss:$16 sps:$4 sm:$0xff]   ;;  %v677_v6 = vld [vmem:[%s961_s0 + $0x2c] ss:$16 sps:$4 sm:$0xff]  }
   0x3   :  { %352 = vmatpush1.bf16.msra.mxu0 %v673_v3  ;;  %393 = vmatpush1.bf16.msra.mxu1 %v674_v4  ;;  %v679_v7 = vld [vmem:[%s961_s0 + $0x20] ss:$16 sps:$4 sm:$0xff]   ;;  %v680_v8 = vld [vmem:[%s961_s0 + $0x28] ss:$16 sps:$4 sm:$0xff]   ;;  %v681_v9 = vld [vmem:[%s961_s0 + $0x44] ss:$16 sps:$4 sm:$0xff]  }
   0x4   :  { %353 = vmatprep.subr.bf16.mxu0 %v675_v5  ;;  %394 = vmatprep.subr.bf16.mxu1 %v677_v6  ;;  %v683_v10 = vld [vmem:[%s961_s0 + $0x4c] ss:$16 sps:$4 sm:$0xff]   ;;  %v685_v11 = vld [vmem:[%s961_s0 + $0x40] ss:$16 sps:$4 sm:$0xff]   ;;  %v686_v12 = vld [vmem:[%s961_s0 + $0x48] ss:$16 sps:$4 sm:$0xff]  }
   0x5   :  { %v687_v13 = vld [vmem:[%s961_s0 + $0x64] ss:$16 sps:$4 sm:$0xff]   ;;  %v689_v14 = vld [vmem:[%s961_s0 + $0x6c] ss:$16 sps:$4 sm:$0xff]   ;;  %v691_v15 = vld [vmem:[%s961_s0 + $0x60] ss:$16 sps:$4 sm:$0xff]  }
   0x6   :  { %v692_v16 = vld [vmem:[%s961_s0 + $0x68] ss:$16 sps:$4 sm:$0xff]   ;;  %v693_v17 = vld [vmem:[%s961_s0 + $0x84] ss:$16 sps:$4 sm:$0xff]   ;;  %v695_v18 = vld [vmem:[%s961_s0 + $0x8c] ss:$16 sps:$4 sm:$0xff]  }
   0x7   :  { %354 = vmatpush1.bf16.msra.mxu0 %v679_v7  ;;  %395 = vmatpush1.bf16.msra.mxu1 %v680_v8  ;;  %v697_v19 = vld [vmem:[%s961_s0 + $0x80] ss:$16 sps:$4 sm:$0xff]   ;;  %v698_v20 = vld [vmem:[%s961_s0 + $0x88] ss:$16 sps:$4 sm:$0xff]   ;;  %v699_v21 = vld [vmem:[%s961_s0 + $0xa4] ss:$16 sps:$4 sm:$0xff]  }
   0x8   :  { %355 = vmatprep.subr.bf16.mxu0 %v681_v9  ;;  %396 = vmatprep.subr.bf16.mxu1 %v683_v10  ;;  %v701_v22 = vld [vmem:[%s961_s0 + $0xac] ss:$16 sps:$4 sm:$0xff]   ;;  %v703_v23 = vld [vmem:[%s961_s0 + $0xa0] ss:$16 sps:$4 sm:$0xff]   ;;  %v704_v24 = vld [vmem:[%s961_s0 + $0xa8] ss:$16 sps:$4 sm:$0xff]  }
   0x9   :  { %v705_v25 = vld [vmem:[%s961_s0 + $0xc4] ss:$16 sps:$4 sm:$0xff]   ;;  %v707_v26 = vld [vmem:[%s961_s0 + $0xcc] ss:$16 sps:$4 sm:$0xff]   ;;  %v709_v27 = vld [vmem:[%s961_s0 + $0xc0] ss:$16 sps:$4 sm:$0xff]  }
   0xa   :  { %v710_v28 = vld [vmem:[%s961_s0 + $0xc8] ss:$16 sps:$4 sm:$0xff]   ;;  %v711_v29 = vld [vmem:[%s961_s0 + $0xe4] ss:$16 sps:$4 sm:$0xff]   ;;  %v713_v30 = vld [vmem:[%s961_s0 + $0xec] ss:$16 sps:$4 sm:$0xff]  }
   0xb   :  { %356 = vmatpush1.bf16.msra.mxu0 %v685_v11  ;;  %397 = vmatpush1.bf16.msra.mxu1 %v686_v12  ;;  %v715_v31 = vld [vmem:[%s961_s0 + $0xe0] ss:$16 sps:$4 sm:$0xff]   ;;  %v716_v32 = vld [vmem:[%s961_s0 + $0xe8] ss:$16 sps:$4 sm:$0xff]   ;;  %v717_v33 = vld [vmem:[%s961_s0 + $0x104] ss:$16 sps:$4 sm:$0xff]  }
   0xc   :  { %357 = vmatprep.subr.bf16.mxu0 %v687_v13  ;;  %398 = vmatprep.subr.bf16.mxu1 %v689_v14  ;;  %v719_v34 = vld [vmem:[%s961_s0 + $0x10c] ss:$16 sps:$4 sm:$0xff]   ;;  %v721_v35 = vld [vmem:[%s961_s0 + $0x100] ss:$16 sps:$4 sm:$0xff]   ;;  %v722_v36 = vld [vmem:[%s961_s0 + $0x108] ss:$16 sps:$4 sm:$0xff]  }
   0xd   :  { %v21_v37 = vld [vmem:[%s962_s1] sm:$0xff]  ;;  %v725_v39 = vld [vmem:[%s961_s0 + $0x12c] ss:$16 sps:$4 sm:$0xff]   ;;  %v728_v43 = vld [vmem:[%s961_s0 + $0x128] ss:$16 sps:$4 sm:$0xff]   ;;  %vm444_vm2 = vcmask 64512  }
   0xe   :  { %v723_v38 = vld [vmem:[%s961_s0 + $0x124] ss:$16 sps:$4 sm:$0xff]   ;;  %v607_v41 = vcombine.high %v21_v37, %v21_v37  ;;  %v727_v42 = vld [vmem:[%s961_s0 + $0x120] ss:$16 sps:$4 sm:$0xff]   ;;  %v731_v46 = vld [vmem:[%s961_s0 + $0x14c] ss:$16 sps:$4 sm:$0xff]   ;;  %v606_v61 = vcombine.low %v21_v37, %v21_v37 }
   0xf   :  { %358 = vmatpush1.bf16.msra.mxu0 %v691_v15  ;;  %399 = vmatpush1.bf16.msra.mxu1 %v692_v16  ;;  %v72_v40 = vld [vmem:[%s963_s2] sm:$0xff]  ;;  %v734_v48 = vld [vmem:[%s961_s0 + $0x148] ss:$16 sps:$4 sm:$0xff]   ;;  %v737_v50 = vld [vmem:[%s961_s0 + $0x16c] ss:$16 sps:$4 sm:$0xff]  }
  0x10   :  { %359 = vmatprep.subr.bf16.mxu0 %v693_v17  ;;  %400 = vmatprep.subr.bf16.mxu1 %v695_v18  ;;  %v438_v44 = vld [vmem:[%s964_s4] sm:$0xff]  ;;  %v71_v52 = vld [vmem:[%s961_s0 + $0x188] sm:$0xff] }
  0x11   :  { %75 = vperm.xlu0 %668, %v72_v40   ;;  %v729_v45 = vld [vmem:[%s961_s0 + $0x144] ss:$16 sps:$4 sm:$0xff]   ;;  %661 = vmatprep.mubr.msk.bf16.mxu0 %vm334_vm0, %v607_v41  ;;  %v733_v47 = vld [vmem:[%s961_s0 + $0x140] ss:$16 sps:$4 sm:$0xff]   ;;  %v740_v54 = vld [vmem:[%s961_s0 + $0x168] ss:$16 sps:$4 sm:$0xff]   ;;  %v659_v56 = vcombine.high %v71_v52, %v71_v52  ;;  %v658_v58 = vcombine.low %v71_v52, %v71_v52 }
  0x12   :  { %663 = vmatprep.mubr.msk.bf16.mxu1 %vm334_vm0, %v607_v41  ;;  %v735_v49 = vld [vmem:[%s961_s0 + $0x164] ss:$16 sps:$4 sm:$0xff]   ;;  %v739_v53 = vld [vmem:[%s961_s0 + $0x160] ss:$16 sps:$4 sm:$0xff]  }
  0x13   :  { %360 = vmatpush1.bf16.msra.mxu0 %v697_v19  ;;  %401 = vmatpush1.bf16.msra.mxu1 %v698_v20  ;;  %v70_v51 = vld [vmem:[%s961_s0 + $0x180] sm:$0xff]  ;;  %v346_v60 = vsel %vm338_vm1, %v658_v58, 0 }
  0x14   :  { %361 = vmatprep.subr.bf16.mxu0 %v699_v21  ;;  %402 = vmatprep.subr.bf16.mxu1 %v701_v22  ;;  %v657_v55 = vcombine.high %v70_v51, %v70_v51  ;;  %v656_v57 = vcombine.low %v70_v51, %v70_v51  ;;  %v433_v16 = vld [vmem:[%s965_s3] sm:$0xff] }
  0x15   :  { %441 = vperm.xlu0 %668, %v438_v44  }
  0x16   :  { %v340_v59 = vsel %vm338_vm1, %v656_v57, 0 }
  0x17   :  { %362 = vmatpush1.bf16.msra.mxu0 %v703_v23  ;;  %403 = vmatpush1.bf16.msra.mxu1 %v704_v24 }
  0x18   :  { %363 = vmatprep.subr.bf16.mxu0 %v705_v25  ;;  %404 = vmatprep.subr.bf16.mxu1 %v707_v26 }
  0x1b   :  { %364 = vmatpush1.bf16.msra.mxu0 %v709_v27  ;;  %405 = vmatpush1.bf16.msra.mxu1 %v710_v28 }
  0x1c   :  { %365 = vmatprep.subr.bf16.mxu0 %v711_v29  ;;  %406 = vmatprep.subr.bf16.mxu1 %v713_v30 }
  0x1f   :  { %366 = vmatpush1.bf16.msra.mxu0 %v715_v31  ;;  %407 = vmatpush1.bf16.msra.mxu1 %v716_v32 }
  0x20   :  { %367 = vmatprep.subr.bf16.mxu0 %v717_v33  ;;  %408 = vmatprep.subr.bf16.mxu1 %v719_v34 }
  0x23   :  { %368 = vmatpush1.bf16.msra.mxu0 %v721_v35  ;;  %409 = vmatpush1.bf16.msra.mxu1 %v722_v36 }
  0x24   :  { %369 = vmatprep.subr.bf16.mxu0 %v723_v38  ;;  %410 = vmatprep.subr.bf16.mxu1 %v725_v39 }
  0x27   :  { %370 = vmatpush1.bf16.msra.mxu0 %v727_v42  ;;  %411 = vmatpush1.bf16.msra.mxu1 %v728_v43 }
  0x28   :  { %371 = vmatprep.subr.bf16.mxu0 %v729_v45  ;;  %412 = vmatprep.subr.bf16.mxu1 %v731_v46 }
  0x2b   :  { %372 = vmatpush1.bf16.msra.mxu0 %v733_v47  ;;  %413 = vmatpush1.bf16.msra.mxu1 %v734_v48 }
  0x2c   :  { %373 = vmatprep.subr.bf16.mxu0 %v735_v49  ;;  %414 = vmatprep.subr.bf16.mxu1 %v737_v50 }
  0x2f   :  { %374 = vmatpush1.bf16.msra.mxu0 %v739_v53  ;;  %415 = vmatpush1.bf16.msra.mxu1 %v740_v54 }
  0x30   :  { %660 = vmatprep.subr.msk.bf16.mxu0 %vm338_vm1, %v657_v55  ;;  %662 = vmatprep.subr.msk.bf16.mxu1 %vm338_vm1, %v659_v56 }
  0x33   :  { %376 = vmatpush1.bf16.msra.mxu0 %v340_v59  ;;  %417 = vmatpush1.bf16.msra.mxu1 %v346_v60 }
  0x36   :  { %384 = vmatmul.mubr.bf16.vlgmr.msra.gmra.mrb[0].mxu0 %v606_v61  ;;  %425 = vmatmul.mubr.bf16.vlgmr.msra.gmra.mrb[0].mxu1 %v606_v61 }
  0x37   :  { %512 = vmatprep.mubr.f32.mxu0 %v756_v62  ;;  %583 = vmatprep.mubr.f32.mxu1 %v756_v62 }
  0x90   :  { %v76_v63 = vpop.permute.xlu0 %75 }
  0x94   :  { %v442_v17 = vpop.permute.xlu0 %441 }
 0x109   :  { %v385_v0 = vpop.f32.mrb[0].mxu0  ;;  %v426_v1 = vpop.f32.mrb[0].mxu1 }
 0x10a   :  { %v386_v2 = vadd.f32 %v385_v0, %v76_v63  ;;  %v427_v3 = vadd.f32 %v426_v1, %v76_v63  ;;  %v387_v4 = vpop.f32.mrb[1].mxu0  ;;  %v428_v5 = vpop.f32.mrb[1].mxu1 }
 0x10b   :  { %v388_v6 = vadd.f32 %v387_v4, %v76_v63  ;;  %v429_v7 = vadd.f32 %v428_v5, %v76_v63  ;;  %v389_v8 = vpop.f32.mrb[2].mxu0  ;;  %v430_v9 = vpop.f32.mrb[2].mxu1 }
 0x10c   :  { %v390_v10 = vpop.f32.mrb[3].mxu0  ;;  %v431_v11 = vpop.f32.mrb[3].mxu1  ;;  %v434_v14 = vmul.f32 %v386_v2, %v386_v2  ;;  %v436_v15 = vmul.f32 %v427_v3, %v427_v3 }
 0x10d   :  { %v435_v12 = vmul.f32 %v388_v6, %v388_v6  ;;  %v437_v13 = vmul.f32 %v429_v7, %v429_v7 }
 0x10f   :  { %448 = vmatprep.subr.mxu0 %v435_v12  ;;  %519 = vmatprep.subr.mxu1 %v437_v13 }
 0x110   :  { %449 = vmatpush1.msra.mxu0 %v434_v14  ;;  %520 = vmatpush1.msra.mxu1 %v436_v15 }
 0x111   :  { %664 = vmatmul.mubr.msk.f32.vlgmr.msra.gmra.mrb[4].mxu0 %vm444_vm2, %v433_v16  ;;  %665 = vmatmul.mubr.msk.f32.vlgmr.msra.gmra.mrb[4].mxu1 %vm444_vm2, %v433_v16 }
 0x1e4   :  { %v514_v18 = vpop.f32.mrb[4].mxu0  ;;  %v585_v19 = vpop.f32.mrb[4].mxu1 }
 0x1e5   :  { %v515_v20 = vadd.f32 %v514_v18, %v442_v17  ;;  %v586_v21 = vadd.f32 %v585_v19, %v442_v17  ;;  %v516_v22 = vpop.f32.mrb[5].mxu0  ;;  %v587_v23 = vpop.f32.mrb[5].mxu1 }
 0x1e6   :  { %v517_v24 = vadd.f32 %v516_v22, %v442_v17  ;;  %v588_v25 = vadd.f32 %v587_v23, %v442_v17 }
 0x1e7   :  { %747 = vrsqrt.f32 %v515_v20 }
 0x1e8   :  { %749 = vrsqrt.f32 %v586_v21 }
 0x1e9   :  { %751 = vrsqrt.f32 %v517_v24 }
 0x1ea   :  { %753 = vrsqrt.f32 %v588_v25 }
 0x1f1   :  { %v748_v26 = vpop.eup %747 }
 0x1f2   :  { %v750_v27 = vpop.eup %749  ;;  %v594_v28 = vmul.f32 %v748_v26, %v386_v2 }
 0x1f3   :  { %v752_v29 = vpop.eup %751  ;;  %v596_v30 = vmul.f32 %v750_v27, %v427_v3 }
 0x1f4   :  { %v754_v31 = vpop.eup %753  ;;  %598 = vst [vmem:[%s966_s5] sm:$0xff] %v594_v28  ;;  %v595_v32 = vmul.f32 %v752_v29, %v388_v6 }
 0x1f5   :  { %600 = vst [vmem:[%s966_s5 + $0x10] sm:$0xff] %v596_v30  ;;  %v597_v33 = vmul.f32 %v754_v31, %v429_v7 }
 0x1f6   :  { %599 = vst [vmem:[%s966_s5 + $0x8] sm:$0xff] %v595_v32 }
 0x1f7   :  { %601 = vst [vmem:[%s966_s5 + $0x18] sm:$0xff] %v597_v33 }

// kernel: scale_hyperprior_forward.18
= control target key start
LH: loop header
LB: loop body
LE: loop exit
PB: predicated region body
PF: predicated region fallthrough
CT: control target
= control target key end

     0   :  { %v316_v0 = vmov 0   ;;  %vm134_vm0 = vcmask 588800   ;;  %vm138_vm1 = vcmask 1043456   ;;  %v317_v20 = vmov 0.0   ;;  %s403_s0 = inlined_call_operand.vmem [shape: bf16[200,128], index: 0, kind: input, shape index: {}]   ;;  %s404_s1 = inlined_call_operand.vmem [shape: bf16[8,200], index: 1, kind: input, shape index: {}]   ;;  %s405_s2 = inlined_call_operand.vmem [shape: f32[8,1], index: 2, kind: input, shape index: {}]   ;;  %s406_s4 = inlined_call_operand.vmem [shape: f32[8,1], index: 4, kind: input, shape index: {}]   ;;  %s407_s3 = inlined_call_operand.vmem [shape: f32[8,8], index: 3, kind: input, shape index: {}]   ;;  %s408_s5 = inlined_call_operand.vmem [shape: f32[8,128], index: 5, kind: output, shape index: {}]  }
   0x1   :  { %142 = vmatprep.subr.bf16.mxu0 %v316_v0  ;;  %v299_v1 = vld [vmem:[%s403_s0] sm:$0xff]   ;;  %298 = vset.pattern.permute.xlu0 %v316_v0  ;;  %v300_v2 = vld [vmem:[%s403_s0 + $0x8] sm:$0xff]   ;;  %v301_v3 = vld [vmem:[%s403_s0 + $0x10] sm:$0xff]   ;;  %vm318_vm2 = vmmov 0   ;;  %vm190_vm3 = vcmask 64512  }
   0x2   :  { %143 = vmatpush1.bf16.msra.mxu0 %v299_v1  ;;  %v302_v4 = vld [vmem:[%s403_s0 + $0x18] sm:$0xff]   ;;  %v21_v5 = vld [vmem:[%s404_s1] sm:$0xff]  ;;  %v304_v10 = vld [vmem:[%s403_s0 + $0x28] sm:$0xff]   ;;  %290 = vmatprep.subr.mxu1 %v317_v20 }
   0x3   :  { %144 = vmatprep.subr.bf16.mxu0 %v316_v0  ;;  %v272_v6 = vcombine.high %v21_v5, %v21_v5  ;;  %v47_v7 = vld [vmem:[%s405_s2] sm:$0xff]  ;;  %v305_v11 = vld [vmem:[%s403_s0 + $0x30] sm:$0xff]   ;;  %v306_v12 = vld [vmem:[%s403_s0 + $0x38] sm:$0xff]   ;;  %v271_v19 = vcombine.low %v21_v5, %v21_v5  ;;  %292 = vmatprep.mubr.msk.f32.mxu1 %vm318_vm2, %v317_v20 }
   0x4   :  { %v303_v8 = vld [vmem:[%s403_s0 + $0x20] sm:$0xff]   ;;  %50 = vperm.xlu0 %298, %v47_v7   ;;  %v308_v14 = vld [vmem:[%s403_s0 + $0x48] sm:$0xff]   ;;  %v309_v15 = vld [vmem:[%s403_s0 + $0x50] sm:$0xff]  }
   0x5   :  { %286 = vmatprep.mubr.msk.bf16.mxu0 %vm134_vm0, %v272_v6  ;;  %v184_v9 = vld [vmem:[%s406_s4] sm:$0xff]  ;;  %v310_v16 = vld [vmem:[%s403_s0 + $0x58] sm:$0xff]  }
   0x6   :  { %145 = vmatpush1.bf16.msra.mxu0 %v300_v2  ;;  %v307_v13 = vld [vmem:[%s403_s0 + $0x40] sm:$0xff]  }
   0x7   :  { %146 = vmatprep.subr.bf16.mxu0 %v316_v0  ;;  %v311_v17 = vld [vmem:[%s403_s0 + $0x60] ss:$0 sps:$4 sm:$0xff]  }
   0x8   :  { %187 = vperm.xlu0 %298, %v184_v9   ;;  %v140_v18 = vsel %vm138_vm1, %v311_v17, 0  ;;  %v182_v28 = vld [vmem:[%s407_s3] sm:$0xff] }
   0xa   :  { %147 = vmatpush1.bf16.msra.mxu0 %v301_v3 }
   0xb   :  { %148 = vmatprep.subr.bf16.mxu0 %v316_v0 }
   0xe   :  { %149 = vmatpush1.bf16.msra.mxu0 %v302_v4 }
   0xf   :  { %150 = vmatprep.subr.bf16.mxu0 %v316_v0 }
  0x12   :  { %151 = vmatpush1.bf16.msra.mxu0 %v303_v8 }
  0x13   :  { %152 = vmatprep.subr.bf16.mxu0 %v316_v0 }
  0x16   :  { %153 = vmatpush1.bf16.msra.mxu0 %v304_v10 }
  0x17   :  { %154 = vmatprep.subr.bf16.mxu0 %v316_v0 }
  0x1a   :  { %155 = vmatpush1.bf16.msra.mxu0 %v305_v11 }
  0x1b   :  { %156 = vmatprep.subr.bf16.mxu0 %v316_v0 }
  0x1e   :  { %157 = vmatpush1.bf16.msra.mxu0 %v306_v12 }
  0x1f   :  { %158 = vmatprep.subr.bf16.mxu0 %v316_v0 }
  0x22   :  { %159 = vmatpush1.bf16.msra.mxu0 %v307_v13 }
  0x23   :  { %160 = vmatprep.subr.bf16.mxu0 %v316_v0 }
  0x26   :  { %161 = vmatpush1.bf16.msra.mxu0 %v308_v14 }
  0x27   :  { %162 = vmatprep.subr.bf16.mxu0 %v316_v0 }
  0x2a   :  { %163 = vmatpush1.bf16.msra.mxu0 %v309_v15 }
  0x2b   :  { %164 = vmatprep.subr.bf16.mxu0 %v316_v0 }
  0x2e   :  { %165 = vmatpush1.bf16.msra.mxu0 %v310_v16 }
  0x2f   :  { %166 = vmatprep.subr.bf16.mxu0 %v316_v0 }
  0x32   :  { %167 = vmatpush1.bf16.msra.mxu0 %v140_v18 }
  0x35   :  { %175 = vmatmul.mubr.bf16.vlgmr.msra.gmra.mrb[0].mxu0 %v271_v19 }
  0x83   :  { %v51_v21 = vpop.permute.xlu0 %50 }
  0x87   :  { %v188_v29 = vpop.permute.xlu0 %187 }
 0x108   :  { %v176_v22 = vpop.f32.mrb[0].mxu0 }
 0x109   :  { %v177_v23 = vadd.f32 %v176_v22, %v51_v21  ;;  %v178_v24 = vpop.f32.mrb[1].mxu0 }
 0x10a   :  { %v179_v25 = vpop.f32.mrb[2].mxu0 }
 0x10b   :  { %v180_v26 = vpop.f32.mrb[3].mxu0  ;;  %v183_v27 = vmul.f32 %v177_v23, %v177_v23 }
 0x10d   :  { %291 = vmatpush3.msra.mxu1 %v183_v27 }
 0x10e   :  { %293 = vmatmul.mubr.msk.f32.vlgmr.msra.gmra.mrb[0].mxu1 %vm190_vm3, %v182_v28 }
 0x1e1   :  { %v260_v30 = vpop.f32.mrb[0].mxu1 }
 0x1e2   :  { %v261_v31 = vadd.f32 %v260_v30, %v188_v29  ;;  %v294_v32 = vpop.f32.mrb[1].mxu1 }
 0x1e4   :  { %314 = vrsqrt.f32 %v261_v31 }
 0x1ee   :  { %v315_v33 = vpop.eup %314 }
 0x1ef   :  { %v265_v34 = vmul.f32 %v315_v33, %v177_v23 }
 0x1f1   :  { %266 = vst [vmem:[%s408_s5] sm:$0xff] %v265_v34 }

// kernel: scale_hyperprior_forward.19
= control target key start
LH: loop header
LB: loop body
LE: loop exit
PB: predicated region body
PF: predicated region fallthrough
CT: control target
= control target key end

     0   :  { %v227_v0 = vmov 0   ;;  %vm138_vm0 = vcmask 588800   ;;  %vm142_vm1 = vcmask 1043456   ;;  %s305_s0 = inlined_call_operand.vmem [shape: bf16[200,128], index: 0, kind: input, shape index: {}]   ;;  %s306_s2 = inlined_call_operand.vmem [shape: f32[12,1], index: 2, kind: input, shape index: {}]   ;;  %s307_s1 = inlined_call_operand.vmem [shape: bf16[12,200], index: 1, kind: input, shape index: {}]   ;;  %s308_s3 = inlined_call_operand.vmem [shape: f32[12,128], index: 3, kind: output, shape index: {}]  }
   0x1   :  { %146 = vmatprep.subr.bf16.mxu0 %v227_v0  ;;  %v211_v1 = vld [vmem:[%s305_s0] sm:$0xff]   ;;  %210 = vset.pattern.permute.xlu0 %v227_v0  ;;  %v212_v2 = vld [vmem:[%s305_s0 + $0x8] sm:$0xff]   ;;  %v213_v3 = vld [vmem:[%s305_s0 + $0x10] sm:$0xff]  }
   0x2   :  { %147 = vmatpush1.bf16.msra.mxu0 %v211_v1  ;;  %v214_v4 = vld [vmem:[%s305_s0 + $0x18] sm:$0xff]   ;;  %v42_v5 = vld [vmem:[%s306_s2] sm:$0xff]  ;;  %v43_v8 = vld [vmem:[%s306_s2 + $0x8] sm:$0xf] }
   0x3   :  { %148 = vmatprep.subr.bf16.mxu0 %v227_v0  ;;  %v215_v6 = vld [vmem:[%s305_s0 + $0x20] sm:$0xff]   ;;  %46 = vperm.xlu0 %210, %v42_v5   ;;  %v216_v9 = vld [vmem:[%s305_s0 + $0x28] sm:$0xff]   ;;  %v217_v10 = vld [vmem:[%s305_s0 + $0x30] sm:$0xff]  }
   0x4   :  { %v226_v7 = vld [vmem:[%s307_s1 + $0x4] ss:$8 sps:$4 sm:$0x3f]   ;;  %v218_v11 = vld [vmem:[%s305_s0 + $0x38] sm:$0xff]   ;;  %v221_v14 = vld [vmem:[%s305_s0 + $0x50] sm:$0xff]  }
   0x5   :  { %208 = vmatprep.mubr.msk.bf16.mxu0 %vm138_vm0, %v226_v7  ;;  %v219_v12 = vld [vmem:[%s305_s0 + $0x40] sm:$0xff]   ;;  %v220_v13 = vld [vmem:[%s305_s0 + $0x48] sm:$0xff]   ;;  %v222_v15 = vld [vmem:[%s305_s0 + $0x58] sm:$0xff]  }
   0x6   :  { %149 = vmatpush1.bf16.msra.mxu0 %v212_v2  ;;  %v223_v16 = vld [vmem:[%s305_s0 + $0x60] ss:$0 sps:$4 sm:$0xff]  }
   0x7   :  { %150 = vmatprep.subr.bf16.mxu0 %v227_v0  ;;  %51 = vperm.xlu0 %210, %v43_v8   ;;  %v144_v17 = vsel %vm142_vm1, %v223_v16, 0  ;;  %v224_v18 = vld [vmem:[%s307_s1] ss:$8 sps:$4 sm:$0x3f]  }
   0xa   :  { %151 = vmatpush1.bf16.msra.mxu0 %v213_v3 }
   0xb   :  { %152 = vmatprep.subr.bf16.mxu0 %v227_v0 }
   0xe   :  { %153 = vmatpush1.bf16.msra.mxu0 %v214_v4 }
   0xf   :  { %154 = vmatprep.subr.bf16.mxu0 %v227_v0 }
  0x12   :  { %155 = vmatpush1.bf16.msra.mxu0 %v215_v6 }
  0x13   :  { %156 = vmatprep.subr.bf16.mxu0 %v227_v0 }
  0x16   :  { %157 = vmatpush1.bf16.msra.mxu0 %v216_v9 }
  0x17   :  { %158 = vmatprep.subr.bf16.mxu0 %v227_v0 }
  0x1a   :  { %159 = vmatpush1.bf16.msra.mxu0 %v217_v10 }
  0x1b   :  { %160 = vmatprep.subr.bf16.mxu0 %v227_v0 }
  0x1e   :  { %161 = vmatpush1.bf16.msra.mxu0 %v218_v11 }
  0x1f   :  { %162 = vmatprep.subr.bf16.mxu0 %v227_v0 }
  0x22   :  { %163 = vmatpush1.bf16.msra.mxu0 %v219_v12 }
  0x23   :  { %164 = vmatprep.subr.bf16.mxu0 %v227_v0 }
  0x26   :  { %165 = vmatpush1.bf16.msra.mxu0 %v220_v13 }
  0x27   :  { %166 = vmatprep.subr.bf16.mxu0 %v227_v0 }
  0x2a   :  { %167 = vmatpush1.bf16.msra.mxu0 %v221_v14 }
  0x2b   :  { %168 = vmatprep.subr.bf16.mxu0 %v227_v0 }
  0x2e   :  { %169 = vmatpush1.bf16.msra.mxu0 %v222_v15 }
  0x2f   :  { %170 = vmatprep.subr.bf16.mxu0 %v227_v0 }
  0x32   :  { %171 = vmatpush1.bf16.msra.mxu0 %v144_v17 }
  0x35   :  { %179 = vmatmul.mubr.bf16.vlgmr.msra.gmra.mrb[0].mxu0 %v224_v18 }
  0x82   :  { %v47_v19 = vpop.permute.xlu0 %46 }
  0x86   :  { %v52_v23 = vpop.permute.xlu0 %51 }
 0x108   :  { %v180_v20 = vpop.f32.mrb[0].mxu0 }
 0x109   :  { %v181_v21 = vadd.f32 %v180_v20, %v47_v19  ;;  %v182_v22 = vpop.f32.mrb[1].mxu0 }
 0x10a   :  { %v183_v24 = vpop.f32.mrb[2].mxu0 }
 0x10b   :  { %187 = vst [vmem:[%s308_s3] sm:$0xff] %v181_v21  ;;  %v184_v25 = vadd.f32 %v183_v24, %v52_v23  ;;  %v185_v26 = vpop.f32.mrb[3].mxu0 }
 0x10d   :  { %188 = vst [vmem:[%s308_s3 + $0x8] sm:$0xf] %v184_v25 }

// kernel: scale_hyperprior_forward.20
= control target key start
LH: loop header
LB: loop body
LE: loop exit
PB: predicated region body
PF: predicated region fallthrough
CT: control target
= control target key end

     0   :  { %v176_v0 = vmov 0.0   ;;  %vm177_vm0 = vmmov 0   ;;  %v178_v2 = vmov 0   ;;  %vm81_vm1 = vcmask 1045504   ;;  %s229_s0 = inlined_call_operand.vmem [shape: bf16[108,128], index: 0, kind: input, shape index: {}]   ;;  %s230_s2 = inlined_call_operand.vmem [shape: f32[8,1], index: 2, kind: input, shape index: {}]   ;;  %s231_s1 = inlined_call_operand.vmem [shape: bf16[8,108], index: 1, kind: input, shape index: {}]   ;;  %s232_s3 = inlined_call_operand.vmem [shape: f32[8,128], index: 3, kind: output, shape index: {}]  }
   0x1   :  { %147 = vmatprep.subr.bf16.mxu0 %v176_v0  ;;  %v169_v1 = vld [vmem:[%s229_s0] sm:$0xff]   ;;  %161 = vmatprep.mubr.msk.bf16.mxu0 %vm177_vm0, %v176_v0  ;;  %v170_v3 = vld [vmem:[%s229_s0 + $0x8] sm:$0xff]   ;;  %v171_v4 = vld [vmem:[%s229_s0 + $0x10] sm:$0xff]   ;;  %vm77_vm2 = vcmask 883712  }
   0x2   :  { %168 = vset.pattern.permute.xlu0 %v178_v2  ;;  %148 = vmatpush3.bf16.msra.mxu0 %v169_v1  ;;  %v30_v5 = vld [vmem:[%s230_s2] sm:$0xff]  ;;  %v172_v6 = vld [vmem:[%s229_s0 + $0x18] sm:$0xff]   ;;  %v174_v8 = vld [vmem:[%s229_s0 + $0x28] sm:$0xff]  }
   0x3   :  { %149 = vmatprep.subr.bf16.mxu0 %v176_v0  ;;  %33 = vperm.xlu0 %168, %v30_v5   ;;  %v173_v7 = vld [vmem:[%s229_s0 + $0x20] sm:$0xff]   ;;  %v175_v9 = vld [vmem:[%s229_s0 + $0x30] sm:$0x3f]  }
   0x4   :  { %v83_v10 = vsel %vm81_vm1, %v175_v9, 0  ;;  %v15_v11 = vld [vmem:[%s231_s1] sm:$0xf] }
   0x6   :  { %150 = vmatpush3.bf16.msra.mxu0 %v170_v3 }
   0x7   :  { %151 = vmatprep.subr.bf16.mxu0 %v176_v0 }
   0xa   :  { %152 = vmatpush3.bf16.msra.mxu0 %v171_v4 }
   0xb   :  { %153 = vmatprep.subr.bf16.mxu0 %v176_v0 }
   0xe   :  { %154 = vmatpush3.bf16.msra.mxu0 %v172_v6 }
   0xf   :  { %155 = vmatprep.subr.bf16.mxu0 %v176_v0 }
  0x12   :  { %156 = vmatpush3.bf16.msra.mxu0 %v173_v7 }
  0x13   :  { %157 = vmatprep.subr.bf16.mxu0 %v176_v0 }
  0x16   :  { %158 = vmatpush3.bf16.msra.mxu0 %v174_v8 }
  0x17   :  { %159 = vmatprep.subr.bf16.mxu0 %v176_v0 }
  0x1a   :  { %160 = vmatpush3.bf16.msra.mxu0 %v83_v10 }
  0x1d   :  { %162 = vmatmul.mubr.msk.bf16.vlgmr.msra.gmra.mrb[0].mxu0 %vm77_vm2, %v15_v11 }
  0x82   :  { %v34_v12 = vpop.permute.xlu0 %33 }
  0xf0   :  { %v119_v13 = vpop.f32.mrb[0].mxu0 }
  0xf1   :  { %v120_v14 = vadd.f32 %v119_v13, %v34_v12  ;;  %v163_v15 = vpop.f32.mrb[1].mxu0 }
  0xf2   :  { %v122_v16 = vpop.f32.mrb[2].mxu0 }
  0xf3   :  { %v125_v17 = vmax.f32 %v120_v14, 0.0  ;;  %v164_v18 = vpop.f32.mrb[3].mxu0 }
  0xf5   :  { %126 = vst [vmem:[%s232_s3] sm:$0xff] %v125_v17 }

// kernel: scale_hyperprior_forward.21
= control target key start
LH: loop header
LB: loop body
LE: loop exit
PB: predicated region body
PF: predicated region fallthrough
CT: control target
= control target key end

     0   :  { %v215_v0 = vmov 0   ;;  %vm128_vm0 = vcmask 588800   ;;  %vm132_vm1 = vcmask 1043456   ;;  %s284_s0 = inlined_call_operand.vmem [shape: bf16[200,128], index: 0, kind: input, shape index: {}]   ;;  %s285_s1 = inlined_call_operand.vmem [shape: bf16[8,200], index: 1, kind: input, shape index: {}]   ;;  %s286_s2 = inlined_call_operand.vmem [shape: f32[8,1], index: 2, kind: input, shape index: {}]   ;;  %s287_s3 = inlined_call_operand.vmem [shape: f32[8,128], index: 3, kind: output, shape index: {}]  }
   0x1   :  { %136 = vmatprep.subr.bf16.mxu0 %v215_v0  ;;  %v200_v1 = vld [vmem:[%s284_s0] sm:$0xff]   ;;  %199 = vset.pattern.permute.xlu0 %v215_v0  ;;  %v201_v2 = vld [vmem:[%s284_s0 + $0x8] sm:$0xff]   ;;  %v202_v3 = vld [vmem:[%s284_s0 + $0x10] sm:$0xff]  }
   0x2   :  { %137 = vmatpush1.bf16.msra.mxu0 %v200_v1  ;;  %v203_v4 = vld [vmem:[%s284_s0 + $0x18] sm:$0xff]   ;;  %v15_v5 = vld [vmem:[%s285_s1] sm:$0xff]  ;;  %v205_v9 = vld [vmem:[%s284_s0 + $0x28] sm:$0xff]  }
   0x3   :  { %138 = vmatprep.subr.bf16.mxu0 %v215_v0  ;;  %v183_v6 = vcombine.high %v15_v5, %v15_v5  ;;  %v41_v7 = vld [vmem:[%s286_s2] sm:$0xff]  ;;  %v206_v10 = vld [vmem:[%s284_s0 + $0x30] sm:$0xff]   ;;  %v207_v11 = vld [vmem:[%s284_s0 + $0x38] sm:$0xff]   ;;  %v182_v18 = vcombine.low %v15_v5, %v15_v5 }
   0x4   :  { %v204_v8 = vld [vmem:[%s284_s0 + $0x20] sm:$0xff]   ;;  %44 = vperm.xlu0 %199, %v41_v7   ;;  %v209_v13 = vld [vmem:[%s284_s0 + $0x48] sm:$0xff]   ;;  %v210_v14 = vld [vmem:[%s284_s0 + $0x50] sm:$0xff]  }
   0x5   :  { %197 = vmatprep.mubr.msk.bf16.mxu0 %vm128_vm0, %v183_v6  ;;  %v208_v12 = vld [vmem:[%s284_s0 + $0x40] sm:$0xff]   ;;  %v211_v15 = vld [vmem:[%s284_s0 + $0x58] sm:$0xff]  }
   0x6   :  { %139 = vmatpush1.bf16.msra.mxu0 %v201_v2  ;;  %v212_v16 = vld [vmem:[%s284_s0 + $0x60] ss:$0 sps:$4 sm:$0xff]  }
   0x7   :  { %140 = vmatprep.subr.bf16.mxu0 %v215_v0  ;;  %v134_v17 = vsel %vm132_vm1, %v212_v16, 0 }
   0xa   :  { %141 = vmatpush1.bf16.msra.mxu0 %v202_v3 }
   0xb   :  { %142 = vmatprep.subr.bf16.mxu0 %v215_v0 }
   0xe   :  { %143 = vmatpush1.bf16.msra.mxu0 %v203_v4 }
   0xf   :  { %144 = vmatprep.subr.bf16.mxu0 %v215_v0 }
  0x12   :  { %145 = vmatpush1.bf16.msra.mxu0 %v204_v8 }
  0x13   :  { %146 = vmatprep.subr.bf16.mxu0 %v215_v0 }
  0x16   :  { %147 = vmatpush1.bf16.msra.mxu0 %v205_v9 }
  0x17   :  { %148 = vmatprep.subr.bf16.mxu0 %v215_v0 }
  0x1a   :  { %149 = vmatpush1.bf16.msra.mxu0 %v206_v10 }
  0x1b   :  { %150 = vmatprep.subr.bf16.mxu0 %v215_v0 }
  0x1e   :  { %151 = vmatpush1.bf16.msra.mxu0 %v207_v11 }
  0x1f   :  { %152 = vmatprep.subr.bf16.mxu0 %v215_v0 }
  0x22   :  { %153 = vmatpush1.bf16.msra.mxu0 %v208_v12 }
  0x23   :  { %154 = vmatprep.subr.bf16.mxu0 %v215_v0 }
  0x26   :  { %155 = vmatpush1.bf16.msra.mxu0 %v209_v13 }
  0x27   :  { %156 = vmatprep.subr.bf16.mxu0 %v215_v0 }
  0x2a   :  { %157 = vmatpush1.bf16.msra.mxu0 %v210_v14 }
  0x2b   :  { %158 = vmatprep.subr.bf16.mxu0 %v215_v0 }
  0x2e   :  { %159 = vmatpush1.bf16.msra.mxu0 %v211_v15 }
  0x2f   :  { %160 = vmatprep.subr.bf16.mxu0 %v215_v0 }
  0x32   :  { %161 = vmatpush1.bf16.msra.mxu0 %v134_v17 }
  0x35   :  { %169 = vmatmul.mubr.bf16.vlgmr.msra.gmra.mrb[0].mxu0 %v182_v18 }
  0x83   :  { %v45_v19 = vpop.permute.xlu0 %44 }
 0x108   :  { %v170_v20 = vpop.f32.mrb[0].mxu0 }
 0x109   :  { %v171_v21 = vadd.f32 %v170_v20, %v45_v19  ;;  %v172_v22 = vpop.f32.mrb[1].mxu0 }
 0x10a   :  { %v173_v23 = vpop.f32.mrb[2].mxu0 }
 0x10b   :  { %v176_v24 = vmax.f32 %v171_v21, 0.0  ;;  %v174_v25 = vpop.f32.mrb[3].mxu0 }
 0x10d   :  { %177 = vst [vmem:[%s287_s3] sm:$0xff] %v176_v24 }

// kernel: scale_hyperprior_forward.22
= control target key start
LH: loop header
LB: loop body
LE: loop exit
PB: predicated region body
PF: predicated region fallthrough
CT: control target
= control target key end

     0   :  { %v214_v0 = vmov 0   ;;  %vm128_vm0 = vcmask 588800   ;;  %vm132_vm1 = vcmask 1043456   ;;  %s283_s0 = inlined_call_operand.vmem [shape: bf16[200,128], index: 0, kind: input, shape index: {}]   ;;  %s284_s1 = inlined_call_operand.vmem [shape: bf16[8,200], index: 1, kind: input, shape index: {}]   ;;  %s285_s2 = inlined_call_operand.vmem [shape: f32[8,1], index: 2, kind: input, shape index: {}]   ;;  %s286_s3 = inlined_call_operand.vmem [shape: f32[8,128], index: 3, kind: output, shape index: {}]  }
   0x1   :  { %136 = vmatprep.subr.bf16.mxu0 %v214_v0  ;;  %v199_v1 = vld [vmem:[%s283_s0] sm:$0xff]   ;;  %198 = vset.pattern.permute.xlu0 %v214_v0  ;;  %v200_v2 = vld [vmem:[%s283_s0 + $0x8] sm:$0xff]   ;;  %v201_v3 = vld [vmem:[%s283_s0 + $0x10] sm:$0xff]  }
   0x2   :  { %137 = vmatpush1.bf16.msra.mxu0 %v199_v1  ;;  %v202_v4 = vld [vmem:[%s283_s0 + $0x18] sm:$0xff]   ;;  %v15_v5 = vld [vmem:[%s284_s1] sm:$0xff]  ;;  %v204_v9 = vld [vmem:[%s283_s0 + $0x28] sm:$0xff]  }
   0x3   :  { %138 = vmatprep.subr.bf16.mxu0 %v214_v0  ;;  %v182_v6 = vcombine.high %v15_v5, %v15_v5  ;;  %v41_v7 = vld [vmem:[%s285_s2] sm:$0xff]  ;;  %v205_v10 = vld [vmem:[%s283_s0 + $0x30] sm:$0xff]   ;;  %v206_v11 = vld [vmem:[%s283_s0 + $0x38] sm:$0xff]   ;;  %v181_v18 = vcombine.low %v15_v5, %v15_v5 }
   0x4   :  { %v203_v8 = vld [vmem:[%s283_s0 + $0x20] sm:$0xff]   ;;  %44 = vperm.xlu0 %198, %v41_v7   ;;  %v208_v13 = vld [vmem:[%s283_s0 + $0x48] sm:$0xff]   ;;  %v209_v14 = vld [vmem:[%s283_s0 + $0x50] sm:$0xff]  }
   0x5   :  { %196 = vmatprep.mubr.msk.bf16.mxu0 %vm128_vm0, %v182_v6  ;;  %v207_v12 = vld [vmem:[%s283_s0 + $0x40] sm:$0xff]   ;;  %v210_v15 = vld [vmem:[%s283_s0 + $0x58] sm:$0xff]  }
   0x6   :  { %139 = vmatpush1.bf16.msra.mxu0 %v200_v2  ;;  %v211_v16 = vld [vmem:[%s283_s0 + $0x60] ss:$0 sps:$4 sm:$0xff]  }
   0x7   :  { %140 = vmatprep.subr.bf16.mxu0 %v214_v0  ;;  %v134_v17 = vsel %vm132_vm1, %v211_v16, 0 }
   0xa   :  { %141 = vmatpush1.bf16.msra.mxu0 %v201_v3 }
   0xb   :  { %142 = vmatprep.subr.bf16.mxu0 %v214_v0 }
   0xe   :  { %143 = vmatpush1.bf16.msra.mxu0 %v202_v4 }
   0xf   :  { %144 = vmatprep.subr.bf16.mxu0 %v214_v0 }
  0x12   :  { %145 = vmatpush1.bf16.msra.mxu0 %v203_v8 }
  0x13   :  { %146 = vmatprep.subr.bf16.mxu0 %v214_v0 }
  0x16   :  { %147 = vmatpush1.bf16.msra.mxu0 %v204_v9 }
  0x17   :  { %148 = vmatprep.subr.bf16.mxu0 %v214_v0 }
  0x1a   :  { %149 = vmatpush1.bf16.msra.mxu0 %v205_v10 }
  0x1b   :  { %150 = vmatprep.subr.bf16.mxu0 %v214_v0 }
  0x1e   :  { %151 = vmatpush1.bf16.msra.mxu0 %v206_v11 }
  0x1f   :  { %152 = vmatprep.subr.bf16.mxu0 %v214_v0 }
  0x22   :  { %153 = vmatpush1.bf16.msra.mxu0 %v207_v12 }
  0x23   :  { %154 = vmatprep.subr.bf16.mxu0 %v214_v0 }
  0x26   :  { %155 = vmatpush1.bf16.msra.mxu0 %v208_v13 }
  0x27   :  { %156 = vmatprep.subr.bf16.mxu0 %v214_v0 }
  0x2a   :  { %157 = vmatpush1.bf16.msra.mxu0 %v209_v14 }
  0x2b   :  { %158 = vmatprep.subr.bf16.mxu0 %v214_v0 }
  0x2e   :  { %159 = vmatpush1.bf16.msra.mxu0 %v210_v15 }
  0x2f   :  { %160 = vmatprep.subr.bf16.mxu0 %v214_v0 }
  0x32   :  { %161 = vmatpush1.bf16.msra.mxu0 %v134_v17 }
  0x35   :  { %169 = vmatmul.mubr.bf16.vlgmr.msra.gmra.mrb[0].mxu0 %v181_v18 }
  0x83   :  { %v45_v19 = vpop.permute.xlu0 %44 }
 0x108   :  { %v170_v20 = vpop.f32.mrb[0].mxu0 }
 0x109   :  { %v171_v21 = vadd.f32 %v170_v20, %v45_v19  ;;  %v172_v22 = vpop.f32.mrb[1].mxu0 }
 0x10a   :  { %v173_v23 = vpop.f32.mrb[2].mxu0 }
 0x10b   :  { %176 = vst [vmem:[%s286_s3] sm:$0xff] %v171_v21  ;;  %v174_v24 = vpop.f32.mrb[3].mxu0 }

// kernel: scale_hyperprior_forward.23
= control target key start
LH: loop header
LB: loop body
LE: loop exit
PB: predicated region body
PF: predicated region fallthrough
CT: control target
= control target key end

     0   :  { %v202_v1 = vmov 0   ;;  %vm89_vm0 = vcmask 588800   ;;  %vm96_vm1 = vcmask 1043456   ;;  %s270_s0 = inlined_call_operand.vmem [shape: bf16[72,128], index: 0, kind: input, shape index: {}]   ;;  %s271_s1 = inlined_call_operand.vmem [shape: bf16[32,72], index: 1, kind: input, shape index: {}]   ;;  %s272_s2 = inlined_call_operand.vmem [shape: f32[32,1], index: 2, kind: input, shape index: {}]   ;;  %s273_s3 = inlined_call_operand.vmem [shape: f32[32,128], index: 3, kind: output, shape index: {}]  }
   0x1   :  { %v195_v0 = vld [vmem:[%s270_s0] sm:$0xff]   ;;  %194 = vset.pattern.permute.xlu1 %v202_v1  ;;  %193 = vset.pattern.permute.xlu0 %v202_v1  ;;  %v196_v2 = vld [vmem:[%s270_s0 + $0x8] sm:$0xff]   ;;  %v197_v3 = vld [vmem:[%s270_s0 + $0x10] sm:$0xff]  }
   0x2   :  { %177 = vmatprep.subr.bf16.mxu0 %v195_v0  ;;  %v200_v4 = vld [vmem:[%s271_s1] sm:$0xff]   ;;  %v30_v5 = vld [vmem:[%s272_s2 + $0x10] sm:$0xff]  ;;  %v198_v7 = vld [vmem:[%s270_s0 + $0x18] sm:$0xff]  }
   0x3   :  { %178 = vmatpush3.bf16.msra.mxu0 %v195_v0  ;;  %187 = vmatprep.mubr.msk.bf16.mxu0 %vm89_vm0, %v200_v4  ;;  %v28_v6 = vld [vmem:[%s272_s2] sm:$0xff]  ;;  %v31_v8 = vld [vmem:[%s272_s2 + $0x18] sm:$0xff]  ;;  %v29_v9 = vld [vmem:[%s272_s2 + $0x8] sm:$0xff] }
   0x4   :  { %179 = vmatprep.subr.bf16.mxu0 %v196_v2  ;;  %44 = vperm.xlu1 %194, %v30_v5   ;;  %v199_v10 = vld [vmem:[%s270_s0 + $0x20] ss:$0 sps:$4 sm:$0xff]   ;;  %v201_v12 = vld [vmem:[%s271_s1 + $0x8] sm:$0xff]  }
   0x5   :  { %34 = vperm.xlu0 %193, %v28_v6   ;;  %v98_v11 = vsel %vm96_vm1, %v199_v10, 0 }
   0x7   :  { %180 = vmatpush3.bf16.msra.mxu0 %v196_v2 }
   0x8   :  { %181 = vmatprep.subr.bf16.mxu0 %v197_v3  ;;  %49 = vperm.xlu1 %194, %v31_v8  }
   0x9   :  { %39 = vperm.xlu0 %193, %v29_v9  }
   0xb   :  { %182 = vmatpush3.bf16.msra.mxu0 %v197_v3 }
   0xc   :  { %183 = vmatprep.subr.bf16.mxu0 %v198_v7 }
   0xf   :  { %184 = vmatpush3.bf16.msra.mxu0 %v198_v7 }
  0x10   :  { %191 = vmatprep.subr.msk.bf16.mxu0 %vm96_vm1, %v199_v10 }
  0x13   :  { %186 = vmatpush3.bf16.msra.mxu0 %v98_v11 }
  0x16   :  { %188 = vmatmul.mubr.msk.bf16.vlgmr.msra.gmra.mrb[0].mxu0 %vm89_vm0, %v201_v12 }
  0x83   :  { %v45_v13 = vpop.permute.xlu1 %44 }
  0x84   :  { %v35_v14 = vpop.permute.xlu0 %34 }
  0x87   :  { %v50_v18 = vpop.permute.xlu1 %49 }
  0x88   :  { %v40_v21 = vpop.permute.xlu0 %39 }
  0xe9   :  { %v189_v15 = vpop.f32.mrb[0].mxu0 }
  0xea   :  { %v143_v16 = vadd.f32 %v189_v15, %v45_v13  ;;  %v134_v17 = vpop.f32.mrb[1].mxu0 }
  0xeb   :  { %v135_v19 = vadd.f32 %v134_v17, %v35_v14  ;;  %v190_v20 = vpop.f32.mrb[2].mxu0 }
  0xec   :  { %v151_v22 = vmax.f32 %v143_v16, 0.0  ;;  %v146_v23 = vadd.f32 %v190_v20, %v50_v18  ;;  %v137_v24 = vpop.f32.mrb[3].mxu0 }
  0xed   :  { %v149_v25 = vmax.f32 %v135_v19, 0.0  ;;  %v138_v26 = vadd.f32 %v137_v24, %v40_v21 }
  0xee   :  { %155 = vst [vmem:[%s273_s3 + $0x10] sm:$0xff] %v151_v22  ;;  %v152_v27 = vmax.f32 %v146_v23, 0.0 }
  0xef   :  { %153 = vst [vmem:[%s273_s3] sm:$0xff] %v149_v25  ;;  %v150_v28 = vmax.f32 %v138_v26, 0.0 }
  0xf0   :  { %156 = vst [vmem:[%s273_s3 + $0x18] sm:$0xff] %v152_v27 }
  0xf1   :  { %154 = vst [vmem:[%s273_s3 + $0x8] sm:$0xff] %v150_v28 }

// kernel: scale_hyperprior_forward.25
= control target key start
LH: loop header
LB: loop body
LE: loop exit
PB: predicated region body
PF: predicated region fallthrough
CT: control target
= control target key end

     0   :  { %v164_v0 = vmov 0.0   ;;  %vm165_vm0 = vmmov 0   ;;  %v166_v2 = vmov 0   ;;  %vm74_vm1 = vcmask 1043456   ;;  %s217_s0 = inlined_call_operand.vmem [shape: bf16[72,128], index: 0, kind: input, shape index: {}]   ;;  %s218_s2 = inlined_call_operand.vmem [shape: f32[12,1], index: 2, kind: input, shape index: {}]   ;;  %s219_s1 = inlined_call_operand.vmem [shape: bf16[12,72], index: 1, kind: input, shape index: {}]   ;;  %s220_s3 = inlined_call_operand.vmem [shape: f32[12,128], index: 3, kind: output, shape index: {}]  }
   0x1   :  { %140 = vmatprep.subr.bf16.mxu0 %v164_v0  ;;  %v158_v1 = vld [vmem:[%s217_s0] sm:$0xff]   ;;  %150 = vmatprep.mubr.msk.bf16.mxu0 %vm165_vm0, %v164_v0  ;;  %v159_v3 = vld [vmem:[%s217_s0 + $0x8] sm:$0xff]   ;;  %v160_v5 = vld [vmem:[%s217_s0 + $0x10] sm:$0xff]   ;;  %vm70_vm2 = vcmask 588800  }
   0x2   :  { %157 = vset.pattern.permute.xlu0 %v166_v2  ;;  %141 = vmatpush3.bf16.msra.mxu0 %v158_v1  ;;  %v26_v4 = vld [vmem:[%s218_s2] sm:$0xff]  ;;  %v27_v6 = vld [vmem:[%s218_s2 + $0x8] sm:$0xf]  ;;  %v161_v7 = vld [vmem:[%s217_s0 + $0x18] sm:$0xff]  }
   0x3   :  { %142 = vmatprep.subr.bf16.mxu0 %v164_v0  ;;  %30 = vperm.xlu0 %157, %v26_v4   ;;  %v162_v8 = vld [vmem:[%s217_s0 + $0x20] ss:$0 sps:$4 sm:$0xff]  }
   0x4   :  { %v76_v9 = vsel %vm74_vm1, %v162_v8, 0  ;;  %v163_v10 = vld [vmem:[%s219_s1] sm:$0x3f]  }
   0x6   :  { %143 = vmatpush3.bf16.msra.mxu0 %v159_v3 }
   0x7   :  { %144 = vmatprep.subr.bf16.mxu0 %v164_v0  ;;  %35 = vperm.xlu0 %157, %v27_v6  }
   0xa   :  { %145 = vmatpush3.bf16.msra.mxu0 %v160_v5 }
   0xb   :  { %146 = vmatprep.subr.bf16.mxu0 %v164_v0 }
   0xe   :  { %147 = vmatpush3.bf16.msra.mxu0 %v161_v7 }
   0xf   :  { %148 = vmatprep.subr.bf16.mxu0 %v164_v0 }
  0x12   :  { %149 = vmatpush3.bf16.msra.mxu0 %v76_v9 }
  0x15   :  { %151 = vmatmul.mubr.msk.bf16.vlgmr.msra.gmra.mrb[0].mxu0 %vm70_vm2, %v163_v10 }
  0x82   :  { %v31_v11 = vpop.permute.xlu0 %30 }
  0x86   :  { %v36_v15 = vpop.permute.xlu0 %35 }
  0xe8   :  { %v112_v12 = vpop.f32.mrb[0].mxu0 }
  0xe9   :  { %v113_v13 = vadd.f32 %v112_v12, %v31_v11  ;;  %v152_v14 = vpop.f32.mrb[1].mxu0 }
  0xea   :  { %v115_v16 = vpop.f32.mrb[2].mxu0 }
  0xeb   :  { %v119_v17 = vmax.f32 %v113_v13, 0.0  ;;  %v116_v18 = vadd.f32 %v115_v16, %v36_v15  ;;  %v153_v19 = vpop.f32.mrb[3].mxu0 }
  0xed   :  { %121 = vst [vmem:[%s220_s3] sm:$0xff] %v119_v17  ;;  %v120_v20 = vmax.f32 %v116_v18, 0.0 }
  0xef   :  { %122 = vst [vmem:[%s220_s3 + $0x8] sm:$0xf] %v120_v20 }

// kernel: scale_hyperprior_forward.26
= control target key start
LH: loop header
LB: loop body
LE: loop exit
PB: predicated region body
PF: predicated region fallthrough
CT: control target
= control target key end

     0   :  { %v437_v1 = vmov 0   ;;  %vm114_vm0 = vcmask 883712   ;;  %vm121_vm1 = vcmask 1045504   ;;  %vm206_vm2 = vcmask 261120   ;;  %s559_s0 = inlined_call_operand.vmem [shape: bf16[108,128], index: 0, kind: input, shape index: {}]   ;;  %s560_s1 = inlined_call_operand.vmem [shape: bf16[32,108], index: 1, kind: input, shape index: {}]   ;;  %s561_s2 = inlined_call_operand.vmem [shape: f32[32,1], index: 2, kind: input, shape index: {}]   ;;  %s562_s4 = inlined_call_operand.vmem [shape: f32[32,1], index: 4, kind: input, shape index: {}]   ;;  %s563_s3 = inlined_call_operand.vmem [shape: f32[32,32], index: 3, kind: input, shape index: {}]   ;;  %s564_s5 = inlined_call_operand.vmem [shape: f32[32,128], index: 5, kind: output, shape index: {}]  }
   0x1   :  { %v420_v0 = vld [vmem:[%s559_s0] sm:$0xff]   ;;  %418 = vset.pattern.permute.xlu0 %v437_v1  ;;  %419 = vset.pattern.permute.xlu1 %v437_v1  ;;  %v421_v2 = vld [vmem:[%s559_s0 + $0x8] sm:$0xff]   ;;  %v422_v3 = vld [vmem:[%s559_s0 + $0x10] sm:$0xff]  }
   0x2   :  { %376 = vmatprep.subr.bf16.mxu0 %v420_v0  ;;  %v427_v4 = vld [vmem:[%s560_s1] sm:$0xff]   ;;  %v423_v5 = vld [vmem:[%s559_s0 + $0x18] sm:$0xff]   ;;  %v41_v7 = vld [vmem:[%s561_s2 + $0x10] sm:$0xff] }
   0x3   :  { %377 = vmatpush3.bf16.msra.mxu0 %v420_v0  ;;  %390 = vmatprep.mubr.msk.bf16.mxu0 %vm114_vm0, %v427_v4  ;;  %v39_v6 = vld [vmem:[%s561_s2] sm:$0xff]  ;;  %v40_v8 = vld [vmem:[%s561_s2 + $0x8] sm:$0xff]  ;;  %v42_v9 = vld [vmem:[%s561_s2 + $0x18] sm:$0xff] }
   0x4   :  { %378 = vmatprep.subr.bf16.mxu0 %v421_v2  ;;  %45 = vperm.xlu0 %418, %v39_v6   ;;  %v424_v10 = vld [vmem:[%s559_s0 + $0x20] sm:$0xff]   ;;  %v183_v12 = vld [vmem:[%s562_s4 + $0x8] sm:$0xff]  ;;  %v184_v14 = vld [vmem:[%s562_s4 + $0x10] sm:$0xff] }
   0x5   :  { %55 = vperm.xlu1 %419, %v41_v7   ;;  %v182_v11 = vld [vmem:[%s562_s4] sm:$0xff]  ;;  %v425_v13 = vld [vmem:[%s559_s0 + $0x28] sm:$0xff]   ;;  %v185_v15 = vld [vmem:[%s562_s4 + $0x18] sm:$0xff] }
   0x6   :  { %v426_v16 = vld [vmem:[%s559_s0 + $0x30] sm:$0x3f]   ;;  %v428_v18 = vld [vmem:[%s560_s1 + $0x8] sm:$0xff]   ;;  %v174_v19 = vld [vmem:[%s563_s3] sm:$0xff] }
   0x7   :  { %379 = vmatpush3.bf16.msra.mxu0 %v421_v2  ;;  %v123_v17 = vsel %vm121_vm1, %v426_v16, 0  ;;  %402 = vmatprep.mubr.msk.f32.mxu1 %vm206_vm2, %v174_v19  ;;  %v175_v38 = vld [vmem:[%s563_s3 + $0x8] sm:$0xff]  ;;  %v176_v39 = vld [vmem:[%s563_s3 + $0x10] sm:$0xff]  ;;  %v177_v40 = vld [vmem:[%s563_s3 + $0x18] sm:$0xff] }
   0x8   :  { %380 = vmatprep.subr.bf16.mxu0 %v422_v3  ;;  %50 = vperm.xlu0 %418, %v40_v8  }
   0x9   :  { %60 = vperm.xlu1 %419, %v42_v9  }
   0xb   :  { %381 = vmatpush3.bf16.msra.mxu0 %v422_v3 }
   0xc   :  { %382 = vmatprep.subr.bf16.mxu0 %v423_v5  ;;  %188 = vperm.xlu0 %418, %v182_v11  }
   0xd   :  { %193 = vperm.xlu1 %419, %v183_v12  }
   0xf   :  { %383 = vmatpush3.bf16.msra.mxu0 %v423_v5 }
  0x10   :  { %384 = vmatprep.subr.bf16.mxu0 %v424_v10  ;;  %198 = vperm.xlu0 %418, %v184_v14  }
  0x11   :  { %203 = vperm.xlu1 %419, %v185_v15  }
  0x13   :  { %385 = vmatpush3.bf16.msra.mxu0 %v424_v10 }
  0x14   :  { %386 = vmatprep.subr.bf16.mxu0 %v425_v13 }
  0x17   :  { %387 = vmatpush3.bf16.msra.mxu0 %v425_v13 }
  0x18   :  { %416 = vmatprep.subr.msk.bf16.mxu0 %vm121_vm1, %v426_v16 }
  0x1b   :  { %389 = vmatpush3.bf16.msra.mxu0 %v123_v17 }
  0x1e   :  { %391 = vmatmul.mubr.msk.bf16.vlgmr.msra.gmra.mrb[0].mxu0 %vm114_vm0, %v428_v18 }
  0x83   :  { %v46_v21 = vpop.permute.xlu0 %45 }
  0x84   :  { %v56_v20 = vpop.permute.xlu1 %55 }
  0x87   :  { %v51_v27 = vpop.permute.xlu0 %50 }
  0x88   :  { %v61_v24 = vpop.permute.xlu1 %60 }
  0x8b   :  { %v189_v42 = vpop.permute.xlu0 %188 }
  0x8c   :  { %v194_v41 = vpop.permute.xlu1 %193 }
  0x8f   :  { %v199_v49 = vpop.permute.xlu0 %198 }
  0x90   :  { %v204_v47 = vpop.permute.xlu1 %203 }
  0xf1   :  { %v392_v22 = vpop.f32.mrb[0].mxu0 }
  0xf2   :  { %v159_v23 = vpop.f32.mrb[1].mxu0  ;;  %v527_v30 = vadd.f32 %v392_v22, %v56_v20 }
  0xf3   :  { %v160_v25 = vadd.f32 %v159_v23, %v46_v21  ;;  %v393_v26 = vpop.f32.mrb[2].mxu0 }
  0xf4   :  { %v525_v28 = vadd.f32 %v393_v26, %v61_v24  ;;  %v162_v29 = vpop.f32.mrb[3].mxu0  ;;  %v180_v35 = vmul.f32 %v527_v30, %v527_v30 }
  0xf5   :  { %v163_v31 = vadd.f32 %v162_v29, %v51_v27  ;;  %v178_v32 = vmul.f32 %v160_v25, %v160_v25 }
  0xf6   :  { %v181_v33 = vmul.f32 %v525_v28, %v525_v28 }
  0xf7   :  { %v179_v34 = vmul.f32 %v163_v31, %v163_v31 }
  0xf8   :  { %v412_v37 = vpack.c.bf16 %v181_v33, %v180_v35 }
  0xf9   :  { %v408_v36 = vpack.c.bf16 %v179_v34, %v178_v32 }
  0xfb   :  { %409 = vmatprep.subr.bf16.mxu1 %v408_v36 }
  0xfc   :  { %411 = vmatpush3.bf16.msra.mxu1 %v408_v36 }
  0xfd   :  { %413 = vmatprep.subr.bf16.mxu1 %v412_v37 }
 0x100   :  { %415 = vmatpush3.bf16.msra.mxu1 %v412_v37 }
 0x103   :  { %403 = vmatmul.mubr.msk.f32.vlgmr.msra.gmra.mrb[0].mxu1 %vm206_vm2, %v175_v38 }
 0x104   :  { %405 = vmatprep.mubr.msk.f32.mxu1 %vm206_vm2, %v176_v39 }
 0x107   :  { %406 = vmatmul.mubr.msk.f32.gmra.mrb[2].mxu1 %vm206_vm2, %v177_v40 }
 0x1d6   :  { %v404_v43 = vpop.f32.mrb[0].mxu1 }
 0x1d7   :  { %v291_v44 = vadd.f32 %v404_v43, %v194_v41  ;;  %v285_v45 = vpop.f32.mrb[1].mxu1 }
 0x1d8   :  { %v286_v46 = vadd.f32 %v285_v45, %v189_v42 }
 0x1d9   :  { %429 = vrsqrt.f32 %v291_v44  ;;  %vm313_vm3 = vcmp.eq.f32.partialorder %v291_v44, inf  ;;  %v316_v56 = vand.u32 2147483648, %v291_v44  ;;  %vm315_vm4 = vcmp.eq.f32.partialorder %v291_v44, 0.0 }
 0x1da   :  { %431 = vrsqrt.f32 %v286_v46  ;;  %v407_v48 = vpop.f32.mrb[2].mxu1  ;;  %vm306_vm5 = vcmp.eq.f32.partialorder %v286_v46, inf  ;;  %v309_v59 = vand.u32 2147483648, %v286_v46  ;;  %vm308_vm6 = vcmp.eq.f32.partialorder %v286_v46, 0.0 }
 0x1db   :  { %v301_v50 = vadd.f32 %v407_v48, %v204_v47  ;;  %v295_v51 = vpop.f32.mrb[3].mxu1 }
 0x1dc   :  { %v296_v52 = vadd.f32 %v295_v51, %v199_v49 }
 0x1dd   :  { %433 = vrsqrt.f32 %v301_v50  ;;  %vm327_vm7 = vcmp.eq.f32.partialorder %v301_v50, inf  ;;  %v330_v4 = vand.u32 2147483648, %v301_v50  ;;  %vm329_vm8 = vcmp.eq.f32.partialorder %v301_v50, 0.0 }
 0x1de   :  { %435 = vrsqrt.f32 %v296_v52  ;;  %vm320_vm9 = vcmp.eq.f32.partialorder %v296_v52, inf  ;;  %v323_v7 = vand.u32 2147483648, %v296_v52  ;;  %vm322_vm10 = vcmp.eq.f32.partialorder %v296_v52, 0.0 }
 0x1e3   :  { %v430_v53 = vpop.eup %429 }
 0x1e4   :  { %v432_v54 = vpop.eup %431  ;;  %v312_v55 = vmul.f32 %v430_v53, %v291_v44 }
 0x1e5   :  { %v305_v57 = vmul.f32 %v432_v54, %v286_v46 }
 0x1e6   :  { %v314_v58 = vsel %vm313_vm3, %v291_v44, %v312_v55 }
 0x1e7   :  { %v434_v60 = vpop.eup %433  ;;  %v317_v61 = vsel %vm315_vm4, %v316_v56, %v314_v58  ;;  %v307_v62 = vsel %vm306_vm5, %v286_v46, %v305_v57 }
 0x1e8   :  { %v436_v63 = vpop.eup %435  ;;  %v333_v0 = vmul.f32 %v317_v61, %v163_v31  ;;  %v310_v1 = vsel %vm308_vm6, %v309_v59, %v307_v62  ;;  %v326_v2 = vmul.f32 %v434_v60, %v301_v50 }
 0x1e9   :  { %v332_v3 = vmul.f32 %v310_v1, %v160_v25  ;;  %v319_v5 = vmul.f32 %v436_v63, %v296_v52 }
 0x1ea   :  { %337 = vst [vmem:[%s564_s5 + $0x8] sm:$0xff] %v333_v0  ;;  %v328_v6 = vsel %vm327_vm7, %v301_v50, %v326_v2 }
 0x1eb   :  { %336 = vst [vmem:[%s564_s5] sm:$0xff] %v332_v3  ;;  %v331_v8 = vsel %vm329_vm8, %v330_v4, %v328_v6  ;;  %v321_v9 = vsel %vm320_vm9, %v296_v52, %v319_v5 }
 0x1ec   :  { %v335_v10 = vmul.f32 %v331_v8, %v525_v28  ;;  %v324_v11 = vsel %vm322_vm10, %v323_v7, %v321_v9 }
 0x1ed   :  { %v334_v12 = vmul.f32 %v324_v11, %v527_v30 }
 0x1ee   :  { %339 = vst [vmem:[%s564_s5 + $0x18] sm:$0xff] %v335_v10 }
 0x1ef   :  { %338 = vst [vmem:[%s564_s5 + $0x10] sm:$0xff] %v334_v12 }

// kernel: scale_hyperprior_forward.27
= control target key start
LH: loop header
LB: loop body
LE: loop exit
PB: predicated region body
PF: predicated region fallthrough
CT: control target
= control target key end

     0   :  { %v408_v1 = vmov 0   ;;  %vm95_vm0 = vcmask 588800   ;;  %vm102_vm1 = vcmask 1043456   ;;  %vm187_vm2 = vcmask 261120   ;;  %s524_s0 = inlined_call_operand.vmem [shape: bf16[72,128], index: 0, kind: input, shape index: {}]   ;;  %s525_s1 = inlined_call_operand.vmem [shape: bf16[32,72], index: 1, kind: input, shape index: {}]   ;;  %s526_s2 = inlined_call_operand.vmem [shape: f32[32,1], index: 2, kind: input, shape index: {}]   ;;  %s527_s4 = inlined_call_operand.vmem [shape: f32[32,1], index: 4, kind: input, shape index: {}]   ;;  %s528_s3 = inlined_call_operand.vmem [shape: f32[32,32], index: 3, kind: input, shape index: {}]   ;;  %s529_s5 = inlined_call_operand.vmem [shape: f32[32,128], index: 5, kind: output, shape index: {}]  }
   0x1   :  { %v393_v0 = vld [vmem:[%s524_s0] sm:$0xff]   ;;  %391 = vset.pattern.permute.xlu0 %v408_v1  ;;  %392 = vset.pattern.permute.xlu1 %v408_v1  ;;  %v394_v2 = vld [vmem:[%s524_s0 + $0x8] sm:$0xff]   ;;  %v395_v3 = vld [vmem:[%s524_s0 + $0x10] sm:$0xff]  }
   0x2   :  { %353 = vmatprep.subr.bf16.mxu0 %v393_v0  ;;  %v398_v4 = vld [vmem:[%s525_s1] sm:$0xff]   ;;  %v36_v6 = vld [vmem:[%s526_s2 + $0x10] sm:$0xff]  ;;  %v396_v7 = vld [vmem:[%s524_s0 + $0x18] sm:$0xff]  }
   0x3   :  { %354 = vmatpush3.bf16.msra.mxu0 %v393_v0  ;;  %v34_v5 = vld [vmem:[%s526_s2] sm:$0xff]  ;;  %363 = vmatprep.mubr.msk.bf16.mxu0 %vm95_vm0, %v398_v4  ;;  %v35_v8 = vld [vmem:[%s526_s2 + $0x8] sm:$0xff]  ;;  %v37_v9 = vld [vmem:[%s526_s2 + $0x18] sm:$0xff] }
   0x4   :  { %355 = vmatprep.subr.bf16.mxu0 %v394_v2  ;;  %40 = vperm.xlu0 %391, %v34_v5   ;;  %v397_v10 = vld [vmem:[%s524_s0 + $0x20] ss:$0 sps:$4 sm:$0xff]   ;;  %v164_v12 = vld [vmem:[%s527_s4 + $0x8] sm:$0xff]  ;;  %v165_v14 = vld [vmem:[%s527_s4 + $0x10] sm:$0xff] }
   0x5   :  { %50 = vperm.xlu1 %392, %v36_v6   ;;  %v163_v11 = vld [vmem:[%s527_s4] sm:$0xff]  ;;  %v104_v13 = vsel %vm102_vm1, %v397_v10, 0  ;;  %v399_v15 = vld [vmem:[%s525_s1 + $0x8] sm:$0xff]   ;;  %v166_v16 = vld [vmem:[%s527_s4 + $0x18] sm:$0xff] }
   0x6   :  { %v155_v17 = vld [vmem:[%s528_s3] sm:$0xff]  ;;  %v156_v36 = vld [vmem:[%s528_s3 + $0x8] sm:$0xff]  ;;  %v157_v37 = vld [vmem:[%s528_s3 + $0x10] sm:$0xff] }
   0x7   :  { %356 = vmatpush3.bf16.msra.mxu0 %v394_v2  ;;  %375 = vmatprep.mubr.msk.f32.mxu1 %vm187_vm2, %v155_v17  ;;  %v158_v38 = vld [vmem:[%s528_s3 + $0x18] sm:$0xff] }
   0x8   :  { %357 = vmatprep.subr.bf16.mxu0 %v395_v3  ;;  %45 = vperm.xlu0 %391, %v35_v8  }
   0x9   :  { %55 = vperm.xlu1 %392, %v37_v9  }
   0xb   :  { %358 = vmatpush3.bf16.msra.mxu0 %v395_v3 }
   0xc   :  { %359 = vmatprep.subr.bf16.mxu0 %v396_v7  ;;  %169 = vperm.xlu0 %391, %v163_v11  }
   0xd   :  { %174 = vperm.xlu1 %392, %v164_v12  }
   0xf   :  { %360 = vmatpush3.bf16.msra.mxu0 %v396_v7 }
  0x10   :  { %389 = vmatprep.subr.msk.bf16.mxu0 %vm102_vm1, %v397_v10  ;;  %179 = vperm.xlu0 %391, %v165_v14  }
  0x11   :  { %184 = vperm.xlu1 %392, %v166_v16  }
  0x13   :  { %362 = vmatpush3.bf16.msra.mxu0 %v104_v13 }
  0x16   :  { %364 = vmatmul.mubr.msk.bf16.vlgmr.msra.gmra.mrb[0].mxu0 %vm95_vm0, %v399_v15 }
  0x83   :  { %v41_v19 = vpop.permute.xlu0 %40 }
  0x84   :  { %v51_v18 = vpop.permute.xlu1 %50 }
  0x87   :  { %v46_v25 = vpop.permute.xlu0 %45 }
  0x88   :  { %v56_v22 = vpop.permute.xlu1 %55 }
  0x8b   :  { %v170_v40 = vpop.permute.xlu0 %169 }
  0x8c   :  { %v175_v39 = vpop.permute.xlu1 %174 }
  0x8f   :  { %v180_v47 = vpop.permute.xlu0 %179 }
  0x90   :  { %v185_v45 = vpop.permute.xlu1 %184 }
  0xe9   :  { %v365_v20 = vpop.f32.mrb[0].mxu0 }
  0xea   :  { %v140_v21 = vpop.f32.mrb[1].mxu0  ;;  %v492_v28 = vadd.f32 %v365_v20, %v51_v18 }
  0xeb   :  { %v141_v23 = vadd.f32 %v140_v21, %v41_v19  ;;  %v366_v24 = vpop.f32.mrb[2].mxu0 }
  0xec   :  { %v490_v26 = vadd.f32 %v366_v24, %v56_v22  ;;  %v143_v27 = vpop.f32.mrb[3].mxu0  ;;  %v161_v33 = vmul.f32 %v492_v28, %v492_v28 }
  0xed   :  { %v144_v29 = vadd.f32 %v143_v27, %v46_v25  ;;  %v159_v30 = vmul.f32 %v141_v23, %v141_v23 }
  0xee   :  { %v162_v31 = vmul.f32 %v490_v26, %v490_v26 }
  0xef   :  { %v160_v32 = vmul.f32 %v144_v29, %v144_v29 }
  0xf0   :  { %v385_v35 = vpack.c.bf16 %v162_v31, %v161_v33 }
  0xf1   :  { %v381_v34 = vpack.c.bf16 %v160_v32, %v159_v30 }
  0xf3   :  { %382 = vmatprep.subr.bf16.mxu1 %v381_v34 }
  0xf4   :  { %384 = vmatpush3.bf16.msra.mxu1 %v381_v34 }
  0xf5   :  { %386 = vmatprep.subr.bf16.mxu1 %v385_v35 }
  0xf8   :  { %388 = vmatpush3.bf16.msra.mxu1 %v385_v35 }
  0xfb   :  { %376 = vmatmul.mubr.msk.f32.vlgmr.msra.gmra.mrb[0].mxu1 %vm187_vm2, %v156_v36 }
  0xfc   :  { %378 = vmatprep.mubr.msk.f32.mxu1 %vm187_vm2, %v157_v37 }
  0xff   :  { %379 = vmatmul.mubr.msk.f32.gmra.mrb[2].mxu1 %vm187_vm2, %v158_v38 }
 0x1ce   :  { %v377_v41 = vpop.f32.mrb[0].mxu1 }
 0x1cf   :  { %v272_v42 = vadd.f32 %v377_v41, %v175_v39  ;;  %v266_v43 = vpop.f32.mrb[1].mxu1 }
 0x1d0   :  { %v267_v44 = vadd.f32 %v266_v43, %v170_v40 }
 0x1d1   :  { %400 = vrsqrt.f32 %v272_v42  ;;  %vm294_vm3 = vcmp.eq.f32.partialorder %v272_v42, inf  ;;  %v297_v54 = vand.u32 2147483648, %v272_v42  ;;  %vm296_vm4 = vcmp.eq.f32.partialorder %v272_v42, 0.0 }
 0x1d2   :  { %402 = vrsqrt.f32 %v267_v44  ;;  %v380_v46 = vpop.f32.mrb[2].mxu1  ;;  %vm287_vm5 = vcmp.eq.f32.partialorder %v267_v44, inf  ;;  %v290_v57 = vand.u32 2147483648, %v267_v44  ;;  %vm289_vm6 = vcmp.eq.f32.partialorder %v267_v44, 0.0 }
 0x1d3   :  { %v282_v48 = vadd.f32 %v380_v46, %v185_v45  ;;  %v276_v49 = vpop.f32.mrb[3].mxu1 }
 0x1d4   :  { %v277_v50 = vadd.f32 %v276_v49, %v180_v47 }
 0x1d5   :  { %404 = vrsqrt.f32 %v282_v48  ;;  %vm308_vm7 = vcmp.eq.f32.partialorder %v282_v48, inf  ;;  %v311_v2 = vand.u32 2147483648, %v282_v48  ;;  %vm310_vm8 = vcmp.eq.f32.partialorder %v282_v48, 0.0 }
 0x1d6   :  { %406 = vrsqrt.f32 %v277_v50  ;;  %vm301_vm9 = vcmp.eq.f32.partialorder %v277_v50, inf  ;;  %v304_v5 = vand.u32 2147483648, %v277_v50  ;;  %vm303_vm10 = vcmp.eq.f32.partialorder %v277_v50, 0.0 }
 0x1db   :  { %v401_v51 = vpop.eup %400 }
 0x1dc   :  { %v403_v52 = vpop.eup %402  ;;  %v293_v53 = vmul.f32 %v401_v51, %v272_v42 }
 0x1dd   :  { %v286_v55 = vmul.f32 %v403_v52, %v267_v44 }
 0x1de   :  { %v295_v56 = vsel %vm294_vm3, %v272_v42, %v293_v53 }
 0x1df   :  { %v405_v58 = vpop.eup %404  ;;  %v298_v59 = vsel %vm296_vm4, %v297_v54, %v295_v56  ;;  %v288_v60 = vsel %vm287_vm5, %v267_v44, %v286_v55 }
 0x1e0   :  { %v407_v61 = vpop.eup %406  ;;  %v314_v62 = vmul.f32 %v298_v59, %v144_v29  ;;  %v291_v63 = vsel %vm289_vm6, %v290_v57, %v288_v60  ;;  %v307_v0 = vmul.f32 %v405_v58, %v282_v48 }
 0x1e1   :  { %v313_v1 = vmul.f32 %v291_v63, %v141_v23  ;;  %v300_v3 = vmul.f32 %v407_v61, %v277_v50 }
 0x1e2   :  { %318 = vst [vmem:[%s529_s5 + $0x8] sm:$0xff] %v314_v62  ;;  %v309_v4 = vsel %vm308_vm7, %v282_v48, %v307_v0 }
 0x1e3   :  { %317 = vst [vmem:[%s529_s5] sm:$0xff] %v313_v1  ;;  %v312_v6 = vsel %vm310_vm8, %v311_v2, %v309_v4  ;;  %v302_v7 = vsel %vm301_vm9, %v277_v50, %v300_v3 }
 0x1e4   :  { %v316_v8 = vmul.f32 %v312_v6, %v490_v26  ;;  %v305_v9 = vsel %vm303_vm10, %v304_v5, %v302_v7 }
 0x1e5   :  { %v315_v10 = vmul.f32 %v305_v9, %v492_v28 }
 0x1e6   :  { %320 = vst [vmem:[%s529_s5 + $0x18] sm:$0xff] %v316_v8 }
 0x1e7   :  { %319 = vst [vmem:[%s529_s5 + $0x10] sm:$0xff] %v315_v10 }

// kernel: scale_hyperprior_forward.28
= control target key start
LH: loop header
LB: loop body
LE: loop exit
PB: predicated region body
PF: predicated region fallthrough
CT: control target
= control target key end

     0   :  { %v794_v1 = vmov 0   ;;  %vm174_vm0 = vcmask 1043456   ;;  %vm167_vm1 = vcmask 588800   ;;  %v795_v35 = vmov 0.0   ;;  %s1227_s0 = inlined_call_operand.vmem [shape: bf16[72,512], index: 0, kind: input, shape index: {}]   ;;  %s1228_s1 = inlined_call_operand.vmem [shape: bf16[32,72], index: 1, kind: input, shape index: {}]   ;;  %s1229_s2 = inlined_call_operand.vmem [shape: f32[32,1], index: 2, kind: input, shape index: {}]   ;;  %s1230_s4 = inlined_call_operand.vmem [shape: f32[32,1], index: 4, kind: input, shape index: {}]   ;;  %s1231_s3 = inlined_call_operand.vmem [shape: f32[32,32], index: 3, kind: input, shape index: {}]   ;;  %s1232_s5 = inlined_call_operand.vmem [shape: f32[32,512], index: 5, kind: output, shape index: {}]  }
   0x1   :  { %v732_v0 = vld [vmem:[%s1227_s0 + $0x4] ss:$16 sps:$4 sm:$0xff]   ;;  %219 = vmatprep.mubr.bf16.mxu0 %v794_v1  ;;  %272 = vmatprep.mubr.bf16.mxu1 %v794_v1  ;;  %v734_v2 = vld [vmem:[%s1227_s0 + $0xc] ss:$16 sps:$4 sm:$0xff]   ;;  %v736_v3 = vld [vmem:[%s1227_s0] ss:$16 sps:$4 sm:$0xff]  }
   0x2   :  { %730 = vset.pattern.permute.xlu0 %v794_v1  ;;  %731 = vset.pattern.permute.xlu1 %v794_v1  ;;  %v737_v4 = vld [vmem:[%s1227_s0 + $0x8] ss:$16 sps:$4 sm:$0xff]   ;;  %v738_v5 = vld [vmem:[%s1227_s0 + $0x24] ss:$16 sps:$4 sm:$0xff]   ;;  %v740_v6 = vld [vmem:[%s1227_s0 + $0x2c] ss:$16 sps:$4 sm:$0xff]  }
   0x3   :  { %187 = vmatprep.subr.bf16.mxu0 %v732_v0  ;;  %240 = vmatprep.subr.bf16.mxu1 %v734_v2  ;;  %v742_v7 = vld [vmem:[%s1227_s0 + $0x20] ss:$16 sps:$4 sm:$0xff]   ;;  %v743_v8 = vld [vmem:[%s1227_s0 + $0x28] ss:$16 sps:$4 sm:$0xff]   ;;  %v744_v9 = vld [vmem:[%s1227_s0 + $0x44] ss:$16 sps:$4 sm:$0xff]  }
   0x4   :  { %188 = vmatpush1.bf16.msra.mxu0 %v736_v3  ;;  %241 = vmatpush1.bf16.msra.mxu1 %v737_v4  ;;  %v746_v10 = vld [vmem:[%s1227_s0 + $0x4c] ss:$16 sps:$4 sm:$0xff]   ;;  %v748_v11 = vld [vmem:[%s1227_s0 + $0x40] ss:$16 sps:$4 sm:$0xff]   ;;  %v749_v12 = vld [vmem:[%s1227_s0 + $0x48] ss:$16 sps:$4 sm:$0xff]  }
   0x5   :  { %189 = vmatprep.subr.bf16.mxu0 %v738_v5  ;;  %242 = vmatprep.subr.bf16.mxu1 %v740_v6  ;;  %v750_v13 = vld [vmem:[%s1227_s0 + $0x64] ss:$16 sps:$4 sm:$0xff]   ;;  %v752_v14 = vld [vmem:[%s1227_s0 + $0x6c] ss:$16 sps:$4 sm:$0xff]   ;;  %v754_v15 = vld [vmem:[%s1227_s0 + $0x60] ss:$16 sps:$4 sm:$0xff]  }
   0x6   :  { %v41_v16 = vld [vmem:[%s1227_s0 + $0x80] sm:$0xff]  ;;  %v42_v17 = vld [vmem:[%s1227_s0 + $0x88] sm:$0xff]  ;;  %v45_v24 = vld [vmem:[%s1229_s2 + $0x10] sm:$0xff]  ;;  %vm337_vm2 = vcmask 261120  }
   0x7   :  { %v755_v18 = vld [vmem:[%s1227_s0 + $0x68] ss:$16 sps:$4 sm:$0xff]   ;;  %v695_v19 = vcombine.high %v41_v16, %v41_v16  ;;  %v697_v20 = vcombine.high %v42_v17, %v42_v17  ;;  %v694_v21 = vcombine.low %v41_v16, %v41_v16  ;;  %v696_v22 = vcombine.low %v42_v17, %v42_v17  ;;  %v43_v23 = vld [vmem:[%s1229_s2] sm:$0xff]  ;;  %59 = vperm.xlu1 %731, %v45_v24   ;;  %v315_v32 = vld [vmem:[%s1230_s4 + $0x10] sm:$0xff] }
   0x8   :  { %190 = vmatpush1.bf16.msra.mxu0 %v742_v7  ;;  %243 = vmatpush1.bf16.msra.mxu1 %v743_v8  ;;  %v44_v25 = vld [vmem:[%s1229_s2 + $0x8] sm:$0xff]  ;;  %v46_v26 = vld [vmem:[%s1229_s2 + $0x18] sm:$0xff]  ;;  %v760_v29 = vld [vmem:[%s1228_s1] sm:$0xff]  }
   0x9   :  { %191 = vmatprep.subr.bf16.mxu0 %v744_v9  ;;  %244 = vmatprep.subr.bf16.mxu1 %v746_v10  ;;  %v176_v27 = vsel %vm174_vm0, %v694_v21, 0  ;;  %v182_v28 = vsel %vm174_vm0, %v696_v22, 0  ;;  %v313_v30 = vld [vmem:[%s1230_s4] sm:$0xff]  ;;  %v314_v31 = vld [vmem:[%s1230_s4 + $0x8] sm:$0xff]  ;;  %v316_v33 = vld [vmem:[%s1230_s4 + $0x18] sm:$0xff] }
   0xa   :  { %49 = vperm.xlu0 %730, %v43_v23   ;;  %v761_v34 = vld [vmem:[%s1228_s1 + $0x8] sm:$0xff]  }
   0xb   :  { %64 = vperm.xlu1 %731, %v46_v26  }
   0xc   :  { %192 = vmatpush1.bf16.msra.mxu0 %v748_v11  ;;  %245 = vmatpush1.bf16.msra.mxu1 %v749_v12 }
   0xd   :  { %193 = vmatprep.subr.bf16.mxu0 %v750_v13  ;;  %246 = vmatprep.subr.bf16.mxu1 %v752_v14 }
   0xe   :  { %54 = vperm.xlu0 %730, %v44_v25  }
   0xf   :  { %324 = vperm.xlu1 %731, %v314_v31  }
  0x10   :  { %194 = vmatpush1.bf16.msra.mxu0 %v754_v15  ;;  %247 = vmatpush1.bf16.msra.mxu1 %v755_v18 }
  0x11   :  { %698 = vmatprep.subr.msk.bf16.mxu0 %vm174_vm0, %v695_v19  ;;  %701 = vmatprep.subr.msk.bf16.mxu1 %vm174_vm0, %v697_v20 }
  0x12   :  { %319 = vperm.xlu0 %730, %v313_v30  }
  0x13   :  { %334 = vperm.xlu1 %731, %v316_v33   ;;  %v294_v33 = vld [vmem:[%s1231_s3 + $0x8] sm:$0xff] }
  0x14   :  { %196 = vmatpush1.bf16.msra.mxu0 %v176_v27  ;;  %249 = vmatpush1.bf16.msra.mxu1 %v182_v28 }
  0x16   :  { %329 = vperm.xlu0 %730, %v315_v32   ;;  %v293_v32 = vld [vmem:[%s1231_s3] sm:$0xff] }
  0x17   :  { %699 = vmatmul.mubr.msk.bf16.vlgmr.msra.gmra.mrb[0].mxu0 %vm167_vm1, %v760_v29  ;;  %702 = vmatmul.mubr.msk.bf16.vlgmr.msra.gmra.mrb[0].mxu1 %vm167_vm1, %v760_v29 }
  0x18   :  { %229 = vmatprep.mubr.bf16.mxu0 %v794_v1  ;;  %282 = vmatprep.mubr.bf16.mxu1 %v794_v1 }
  0x1f   :  { %700 = vmatmul.mubr.msk.bf16.gmra.mrb[4].mxu0 %vm167_vm1, %v761_v34  ;;  %703 = vmatmul.mubr.msk.bf16.gmra.mrb[4].mxu1 %vm167_vm1, %v761_v34  ;;  %v295_v34 = vld [vmem:[%s1231_s3 + $0x10] sm:$0xff] }
  0x20   :  { %414 = vmatprep.mubr.f32.mxu0 %v795_v35  ;;  %503 = vmatprep.mubr.f32.mxu1 %v795_v35 }
  0x86   :  { %v60_v38 = vpop.permute.xlu1 %59 }
  0x89   :  { %v50_v36 = vpop.permute.xlu0 %49 }
  0x8a   :  { %v65_v61 = vpop.permute.xlu1 %64 }
  0x8d   :  { %v55_v37 = vpop.permute.xlu0 %54 }
  0xea   :  { %v221_v39 = vpop.f32.mrb[0].mxu0  ;;  %v274_v40 = vpop.f32.mrb[0].mxu1 }
  0xeb   :  { %v223_v41 = vpop.f32.mrb[1].mxu0  ;;  %v276_v42 = vpop.f32.mrb[1].mxu1  ;;  %v922_v47 = vadd.f32 %v221_v39, %v50_v36  ;;  %v928_v52 = vadd.f32 %v274_v40, %v50_v36 }
  0xec   :  { %v918_v43 = vadd.f32 %v223_v41, %v50_v36  ;;  %v920_v44 = vadd.f32 %v276_v42, %v50_v36  ;;  %v225_v45 = vpop.f32.mrb[2].mxu0  ;;  %v278_v46 = vpop.f32.mrb[2].mxu1  ;;  %v296_v36 = vld [vmem:[%s1231_s3 + $0x18] sm:$0xff] }
  0xed   :  { %v924_v48 = vadd.f32 %v225_v45, %v55_v37  ;;  %v926_v49 = vadd.f32 %v278_v46, %v55_v37  ;;  %v227_v50 = vpop.f32.mrb[3].mxu0  ;;  %v280_v51 = vpop.f32.mrb[3].mxu1  ;;  %v297_v62 = vmul.f32 %v922_v47, %v922_v47  ;;  %v299_v63 = vmul.f32 %v928_v52, %v928_v52 }
  0xee   :  { %v930_v53 = vadd.f32 %v227_v50, %v55_v37  ;;  %v932_v54 = vadd.f32 %v280_v51, %v55_v37  ;;  %v298_v55 = vmul.f32 %v918_v43, %v918_v43  ;;  %v300_v57 = vmul.f32 %v920_v44, %v920_v44  ;;  %v320_v37 = vpop.permute.xlu0 %319 }
  0xef   :  { %v301_v56 = vmul.f32 %v924_v48, %v924_v48  ;;  %v303_v58 = vmul.f32 %v926_v49, %v926_v49 }
  0xf0   :  { %v302_v59 = vmul.f32 %v930_v53, %v930_v53  ;;  %v304_v60 = vmul.f32 %v932_v54, %v932_v54 }
  0xf1   :  { %v714_v4 = vpack.c.bf16 %v301_v56, %v297_v62  ;;  %v722_v7 = vpack.c.bf16 %v303_v58, %v299_v63 }
  0xf2   :  { %v231_v0 = vpop.f32.mrb[4].mxu0  ;;  %v284_v1 = vpop.f32.mrb[4].mxu1  ;;  %v712_v2 = vpack.c.bf16 %v302_v59, %v298_v55  ;;  %v720_v3 = vpack.c.bf16 %v304_v60, %v300_v57 }
  0xf3   :  { %v233_v5 = vpop.f32.mrb[5].mxu0  ;;  %v286_v6 = vpop.f32.mrb[5].mxu1  ;;  %v954_v12 = vadd.f32 %v231_v0, %v60_v38  ;;  %v956_v13 = vadd.f32 %v284_v1, %v60_v38 }
  0xf4   :  { %v950_v8 = vadd.f32 %v233_v5, %v60_v38  ;;  %v952_v9 = vadd.f32 %v286_v6, %v60_v38  ;;  %v235_v10 = vpop.f32.mrb[6].mxu0  ;;  %v288_v11 = vpop.f32.mrb[6].mxu1  ;;  %713 = vmatprep.subr.bf16.mxu0 %v712_v2  ;;  %721 = vmatprep.subr.bf16.mxu1 %v720_v3 }
  0xf5   :  { %v958_v14 = vadd.f32 %v235_v10, %v65_v61  ;;  %v960_v15 = vadd.f32 %v288_v11, %v65_v61  ;;  %v237_v16 = vpop.f32.mrb[7].mxu0  ;;  %v290_v17 = vpop.f32.mrb[7].mxu1  ;;  %715 = vmatpush1.bf16.msra.mxu0 %v714_v4  ;;  %723 = vmatpush1.bf16.msra.mxu1 %v722_v7  ;;  %v305_v26 = vmul.f32 %v954_v12, %v954_v12 }
  0xf6   :  { %v962_v18 = vadd.f32 %v237_v16, %v65_v61  ;;  %v964_v19 = vadd.f32 %v290_v17, %v65_v61  ;;  %v306_v22 = vmul.f32 %v950_v8, %v950_v8  ;;  %v308_v23 = vmul.f32 %v952_v9, %v952_v9  ;;  %v325_v57 = vpop.permute.xlu1 %324  ;;  %v330_v3 = vpop.permute.xlu0 %329 }
  0xf7   :  { %v309_v20 = vmul.f32 %v958_v14, %v958_v14  ;;  %v311_v21 = vmul.f32 %v960_v15, %v960_v15  ;;  %v307_v27 = vmul.f32 %v956_v13, %v956_v13 }
  0xf8   :  { %v310_v24 = vmul.f32 %v962_v18, %v962_v18  ;;  %v312_v25 = vmul.f32 %v964_v19, %v964_v19 }
  0xf9   :  { %v718_v30 = vpack.c.bf16 %v309_v20, %v305_v26  ;;  %v726_v31 = vpack.c.bf16 %v311_v21, %v307_v27 }
  0xfa   :  { %v716_v28 = vpack.c.bf16 %v310_v24, %v306_v22  ;;  %v724_v29 = vpack.c.bf16 %v312_v25, %v308_v23 }
  0xfc   :  { %717 = vmatprep.subr.bf16.mxu0 %v716_v28  ;;  %725 = vmatprep.subr.bf16.mxu1 %v724_v29 }
  0xfd   :  { %719 = vmatpush1.bf16.msra.mxu0 %v718_v30  ;;  %727 = vmatpush1.bf16.msra.mxu1 %v726_v31 }
 0x100   :  { %704 = vmatmul.mubr.msk.f32.vlgmr.msra.gmra.mrb[8].mxu0 %vm337_vm2, %v293_v32  ;;  %708 = vmatmul.mubr.msk.f32.vlgmr.msra.gmra.mrb[8].mxu1 %vm337_vm2, %v293_v32 }
 0x101   :  { %420 = vmatprep.mubr.f32.mxu0 %v795_v35  ;;  %509 = vmatprep.mubr.f32.mxu1 %v795_v35 }
 0x104   :  { %705 = vmatmul.mubr.msk.f32.gmra.mrb[10].mxu0 %vm337_vm2, %v294_v33  ;;  %709 = vmatmul.mubr.msk.f32.gmra.mrb[10].mxu1 %vm337_vm2, %v294_v33 }
 0x105   :  { %426 = vmatprep.mubr.f32.mxu0 %v795_v35  ;;  %515 = vmatprep.mubr.f32.mxu1 %v795_v35 }
 0x108   :  { %706 = vmatmul.mubr.msk.f32.gmra.mrb[12].mxu0 %vm337_vm2, %v295_v34  ;;  %710 = vmatmul.mubr.msk.f32.gmra.mrb[12].mxu1 %vm337_vm2, %v295_v34 }
 0x109   :  { %432 = vmatprep.mubr.f32.mxu0 %v795_v35  ;;  %521 = vmatprep.mubr.f32.mxu1 %v795_v35 }
 0x10c   :  { %707 = vmatmul.mubr.msk.f32.gmra.mrb[14].mxu0 %vm337_vm2, %v296_v36  ;;  %711 = vmatmul.mubr.msk.f32.gmra.mrb[14].mxu1 %vm337_vm2, %v296_v36 }
 0x1d3   :  { %v416_v38 = vpop.f32.mrb[8].mxu0  ;;  %v505_v39 = vpop.f32.mrb[8].mxu1 }
 0x1d4   :  { %v1008_v40 = vadd.f32 %v416_v38, %v320_v37  ;;  %v1010_v41 = vadd.f32 %v505_v39, %v320_v37  ;;  %v418_v42 = vpop.f32.mrb[9].mxu0  ;;  %v507_v45 = vpop.f32.mrb[9].mxu1 }
 0x1d5   :  { %v1012_v46 = vadd.f32 %v418_v42, %v320_v37  ;;  %v1014_v35 = vadd.f32 %v507_v45, %v320_v37 }
 0x1d6   :  { %762 = vrsqrt.f32 %v1008_v40  ;;  %vm530_vm3 = vcmp.eq.f32.partialorder %v1008_v40, inf  ;;  %vm532_vm4 = vcmp.eq.f32.partialorder %v1008_v40, 0.0  ;;  %v533_v2 = vand.u32 2147483648, %v1008_v40 }
 0x1d7   :  { %764 = vrsqrt.f32 %v1010_v41  ;;  %v422_v50 = vpop.f32.mrb[10].mxu0  ;;  %v511_v51 = vpop.f32.mrb[10].mxu1  ;;  %vm544_vm5 = vcmp.eq.f32.partialorder %v1010_v41, inf  ;;  %vm546_vm6 = vcmp.eq.f32.partialorder %v1010_v41, 0.0  ;;  %v547_v4 = vand.u32 2147483648, %v1010_v41 }
 0x1d8   :  { %766 = vrsqrt.f32 %v1012_v46  ;;  %v424_v55 = vpop.f32.mrb[11].mxu0  ;;  %v513_v56 = vpop.f32.mrb[11].mxu1  ;;  %v1020_v58 = vadd.f32 %v422_v50, %v325_v57  ;;  %v1022_v59 = vadd.f32 %v511_v51, %v325_v57  ;;  %vm537_vm7 = vcmp.eq.f32.partialorder %v1012_v46, inf }
 0x1d9   :  { %768 = vrsqrt.f32 %v1014_v35  ;;  %v1024_v60 = vadd.f32 %v424_v55, %v325_v57  ;;  %v1026_v61 = vadd.f32 %v513_v56, %v325_v57  ;;  %vm539_vm8 = vcmp.eq.f32.partialorder %v1012_v46, 0.0  ;;  %v335_v56 = vpop.permute.xlu1 %334 }
 0x1da   :  { %770 = vrsqrt.f32 %v1020_v58  ;;  %v540_v5 = vand.u32 2147483648, %v1012_v46  ;;  %vm551_vm9 = vcmp.eq.f32.partialorder %v1014_v35, inf  ;;  %vm553_vm10 = vcmp.eq.f32.partialorder %v1014_v35, 0.0 }
 0x1db   :  { %v428_v62 = vpop.f32.mrb[12].mxu0  ;;  %v517_v63 = vpop.f32.mrb[12].mxu1  ;;  %772 = vrsqrt.f32 %v1022_v59  ;;  %v554_v11 = vand.u32 2147483648, %v1014_v35  ;;  %vm558_vm11 = vcmp.eq.f32.partialorder %v1020_v58, inf  ;;  %vm560_vm12 = vcmp.eq.f32.partialorder %v1020_v58, 0.0 }
 0x1dc   :  { %v430_v0 = vpop.f32.mrb[13].mxu0  ;;  %v519_v1 = vpop.f32.mrb[13].mxu1  ;;  %774 = vrsqrt.f32 %v1024_v60  ;;  %v1045_v16 = vadd.f32 %v428_v62, %v330_v3  ;;  %v1047_v17 = vadd.f32 %v517_v63, %v330_v3  ;;  %v561_v24 = vand.u32 2147483648, %v1020_v58 }
 0x1dd   :  { %776 = vrsqrt.f32 %v1026_v61  ;;  %vm572_vm13 = vcmp.eq.f32.partialorder %v1022_v59, inf  ;;  %vm574_vm14 = vcmp.eq.f32.partialorder %v1022_v59, 0.0  ;;  %v575_v27 = vand.u32 2147483648, %v1022_v59 }
 0x1de   :  { %vm565_vm15 = vcmp.eq.f32.partialorder %v1024_v60, inf  ;;  %778 = vrsqrt.f32 %v1045_v16  ;;  %vm567_vm0 = vcmp.eq.f32.partialorder %v1024_v60, 0.0  ;;  %v1066_v31 = vadd.f32 %v430_v0, %v330_v3 }
 0x1df   :  { %v434_v6 = vpop.f32.mrb[14].mxu0  ;;  %v523_v7 = vpop.f32.mrb[14].mxu1  ;;  %780 = vrsqrt.f32 %v1047_v17  ;;  %v568_v36 = vand.u32 2147483648, %v1024_v60  ;;  %v1081_v42 = vadd.f32 %v519_v1, %v330_v3  ;;  %vm579_vm1 = vcmp.eq.f32.partialorder %v1026_v61, inf }
 0x1e0   :  { %v763_v10 = vpop.eup %762  ;;  %v436_v20 = vpop.f32.mrb[15].mxu0  ;;  %782 = vrsqrt.f32 %v1066_v31  ;;  %vm581_vm2 = vcmp.eq.f32.partialorder %v1026_v61, 0.0 }
 0x1e1   :  { %v1049_v21 = vpop.f32.mrb[15].mxu1  ;;  %v765_v22 = vpop.eup %764  ;;  %v529_v23 = vmul.f32 %v763_v10, %v1008_v40  ;;  %784 = vrsqrt.f32 %v1081_v42 }
 0x1e2   :  { %v767_v25 = vpop.eup %766  ;;  %v543_v26 = vmul.f32 %v765_v22, %v1010_v41 }
 0x1e3   :  { %v769_v28 = vpop.eup %768  ;;  %v531_v29 = vsel %vm530_vm3, %v1008_v40, %v529_v23  ;;  %v536_v30 = vmul.f32 %v767_v25, %v1012_v46  ;;  %vm586_vm3 = vcmp.eq.f32.partialorder %v1045_v16, inf }
 0x1e4   :  { %v534_v32 = vsel %vm532_vm4, %v533_v2, %v531_v29  ;;  %v545_v33 = vsel %vm544_vm5, %v1010_v41, %v543_v26  ;;  %v550_v34 = vmul.f32 %v769_v28, %v1014_v35  ;;  %v771_v40 = vpop.eup %770  ;;  %vm588_vm4 = vcmp.eq.f32.partialorder %v1045_v16, 0.0 }
 0x1e5   :  { %v640_v37 = vmul.f32 %v534_v32, %v922_v47  ;;  %v548_v38 = vsel %vm546_vm6, %v547_v4, %v545_v33  ;;  %v538_v39 = vsel %vm537_vm7, %v1012_v46, %v536_v30  ;;  %v773_v47 = vpop.eup %772  ;;  %v1124_v4 = vadd.f32 %v523_v7, %v335_v56 }
 0x1e6   :  { %v642_v45 = vmul.f32 %v548_v38, %v928_v52  ;;  %v541_v50 = vsel %vm539_vm8, %v540_v5, %v538_v39  ;;  %v552_v51 = vsel %vm551_vm9, %v1014_v35, %v550_v34  ;;  %v557_v52 = vmul.f32 %v771_v40, %v1020_v58  ;;  %v775_v46 = vpop.eup %774 }
 0x1e7   :  { %656 = vst [vmem:[%s1232_s5] sm:$0xff] %v640_v37  ;;  %v641_v41 = vmul.f32 %v541_v50, %v918_v43  ;;  %v555_v55 = vsel %vm553_vm10, %v554_v11, %v552_v51  ;;  %v571_v62 = vmul.f32 %v773_v47, %v1022_v59  ;;  %v582_v43 = vand.u32 2147483648, %v1026_v61  ;;  %v777_v35 = vpop.eup %776 }
 0x1e8   :  { %658 = vst [vmem:[%s1232_s5 + $0x10] sm:$0xff] %v642_v45  ;;  %v643_v57 = vmul.f32 %v555_v55, %v920_v44  ;;  %v559_v63 = vsel %vm558_vm11, %v1020_v58, %v557_v52  ;;  %v564_v0 = vmul.f32 %v775_v46, %v1024_v60  ;;  %v1113_v44 = vadd.f32 %v434_v6, %v335_v56  ;;  %v779_v58 = vpop.eup %778 }
 0x1e9   :  { %657 = vst [vmem:[%s1232_s5 + $0x8] sm:$0xff] %v641_v41  ;;  %v562_v1 = vsel %vm560_vm12, %v561_v24, %v559_v63  ;;  %v573_v2 = vsel %vm572_vm13, %v1022_v59, %v571_v62  ;;  %v578_v3 = vmul.f32 %v777_v35, %v1026_v61  ;;  %v1132_v11 = vadd.f32 %v436_v20, %v335_v56 }
 0x1ea   :  { %659 = vst [vmem:[%s1232_s5 + $0x18] sm:$0xff] %v643_v57  ;;  %v644_v5 = vmul.f32 %v562_v1, %v924_v48  ;;  %v576_v6 = vsel %vm574_vm14, %v575_v27, %v573_v2  ;;  %v566_v10 = vsel %vm565_vm15, %v1024_v60, %v564_v0  ;;  %v781_v48 = vpop.eup %780  ;;  %786 = vrsqrt.f32 %v1113_v44 }
 0x1eb   :  { %v646_v22 = vmul.f32 %v576_v6, %v926_v49  ;;  %v569_v23 = vsel %vm567_vm0, %v568_v36, %v566_v10  ;;  %v580_v7 = vsel %vm579_vm1, %v1026_v61, %v578_v3  ;;  %v585_v49 = vmul.f32 %v779_v58, %v1045_v16  ;;  %v783_v27 = vpop.eup %782 }
 0x1ec   :  { %660 = vst [vmem:[%s1232_s5 + $0x20] sm:$0xff] %v644_v5  ;;  %v645_v59 = vmul.f32 %v569_v23, %v930_v53  ;;  %v583_v20 = vsel %vm581_vm2, %v582_v43, %v580_v7  ;;  %v589_v24 = vand.u32 2147483648, %v1045_v16  ;;  %v599_v25 = vmul.f32 %v781_v48, %v1047_v17  ;;  %v785_v32 = vpop.eup %784 }
 0x1ed   :  { %662 = vst [vmem:[%s1232_s5 + $0x30] sm:$0xff] %v646_v22  ;;  %v647_v60 = vmul.f32 %v583_v20, %v932_v54  ;;  %v587_v53 = vsel %vm586_vm3, %v1045_v16, %v585_v49  ;;  %vm600_vm5 = vcmp.eq.f32.partialorder %v1047_v17, inf  ;;  %v603_v61 = vand.u32 2147483648, %v1047_v17 }
 0x1ee   :  { %661 = vst [vmem:[%s1232_s5 + $0x28] sm:$0xff] %v645_v59  ;;  %788 = vrsqrt.f32 %v1124_v4  ;;  %v590_v54 = vsel %vm588_vm4, %v589_v24, %v587_v53  ;;  %v601_v26 = vsel %vm600_vm5, %v1047_v17, %v599_v25  ;;  %vm602_vm6 = vcmp.eq.f32.partialorder %v1047_v17, 0.0 }
 0x1ef   :  { %663 = vst [vmem:[%s1232_s5 + $0x38] sm:$0xff] %v647_v60  ;;  %v648_v28 = vmul.f32 %v590_v54, %v954_v12  ;;  %v604_v29 = vsel %vm602_vm6, %v603_v61, %v601_v26  ;;  %790 = vrsqrt.f32 %v1132_v11  ;;  %v592_v30 = vmul.f32 %v783_v27, %v1066_v31 }
 0x1f0   :  { %v650_v16 = vmul.f32 %v604_v29, %v956_v13  ;;  %vm593_vm7 = vcmp.eq.f32.partialorder %v1066_v31, inf  ;;  %v596_v33 = vand.u32 2147483648, %v1066_v31  ;;  %v526_v17 = vadd.f32 %v1049_v21, %v335_v56 }
 0x1f1   :  { %664 = vst [vmem:[%s1232_s5 + $0x40] sm:$0xff] %v648_v28  ;;  %v594_v12 = vsel %vm593_vm7, %v1066_v31, %v592_v30  ;;  %vm595_vm8 = vcmp.eq.f32.partialorder %v1066_v31, 0.0  ;;  %v606_v13 = vmul.f32 %v785_v32, %v1081_v42  ;;  %vm607_vm9 = vcmp.eq.f32.partialorder %v1081_v42, inf }
 0x1f2   :  { %666 = vst [vmem:[%s1232_s5 + $0x50] sm:$0xff] %v650_v16  ;;  %v597_v34 = vsel %vm595_vm8, %v596_v33, %v594_v12  ;;  %v610_v36 = vand.u32 2147483648, %v1081_v42  ;;  %792 = vrsqrt.f32 %v526_v17  ;;  %vm609_vm10 = vcmp.eq.f32.partialorder %v1081_v42, 0.0 }
 0x1f3   :  { %v649_v37 = vmul.f32 %v597_v34, %v950_v8  ;;  %v608_v21 = vsel %vm607_vm9, %v1081_v42, %v606_v13  ;;  %vm614_vm11 = vcmp.eq.f32.partialorder %v1113_v44, inf  ;;  %v617_v50 = vand.u32 2147483648, %v1113_v44 }
 0x1f4   :  { %v787_v38 = vpop.eup %786  ;;  %v611_v39 = vsel %vm609_vm10, %v610_v36, %v608_v21  ;;  %vm616_vm12 = vcmp.eq.f32.partialorder %v1113_v44, 0.0  ;;  %vm628_vm13 = vcmp.eq.f32.partialorder %v1124_v4, inf  ;;  %vm630_vm14 = vcmp.eq.f32.partialorder %v1124_v4, 0.0 }
 0x1f5   :  { %665 = vst [vmem:[%s1232_s5 + $0x48] sm:$0xff] %v649_v37  ;;  %v651_v31 = vmul.f32 %v611_v39, %v952_v9  ;;  %v613_v40 = vmul.f32 %v787_v38, %v1113_v44  ;;  %v631_v9 = vand.u32 2147483648, %v1124_v4  ;;  %vm621_vm15 = vcmp.eq.f32.partialorder %v1132_v11, inf }
 0x1f6   :  { %v624_v56 = vand.u32 2147483648, %v1132_v11  ;;  %vm623_vm0 = vcmp.eq.f32.partialorder %v1132_v11, 0.0  ;;  %vm635_vm1 = vcmp.eq.f32.partialorder %v526_v17, inf  ;;  %v638_v0 = vand.u32 2147483648, %v526_v17 }
 0x1f7   :  { %667 = vst [vmem:[%s1232_s5 + $0x58] sm:$0xff] %v651_v31  ;;  %v615_v8 = vsel %vm614_vm11, %v1113_v44, %v613_v40  ;;  %vm637_vm2 = vcmp.eq.f32.partialorder %v526_v17, 0.0 }
 0x1f8   :  { %v789_v45 = vpop.eup %788  ;;  %v618_v47 = vsel %vm616_vm12, %v617_v50, %v615_v8 }
 0x1f9   :  { %v627_v42 = vmul.f32 %v789_v45, %v1124_v4  ;;  %v791_v51 = vpop.eup %790  ;;  %v652_v41 = vmul.f32 %v618_v47, %v958_v14 }
 0x1fa   :  { %v620_v52 = vmul.f32 %v791_v51, %v1132_v11 }
 0x1fb   :  { %v629_v55 = vsel %vm628_vm13, %v1124_v4, %v627_v42  ;;  %668 = vst [vmem:[%s1232_s5 + $0x60] sm:$0xff] %v652_v41 }
 0x1fc   :  { %v632_v46 = vsel %vm630_vm14, %v631_v9, %v629_v55  ;;  %v622_v62 = vsel %vm621_vm15, %v1132_v11, %v620_v52  ;;  %v793_v14 = vpop.eup %792 }
 0x1fd   :  { %v654_v57 = vmul.f32 %v632_v46, %v960_v15  ;;  %v625_v43 = vsel %vm623_vm0, %v624_v56, %v622_v62  ;;  %v634_v63 = vmul.f32 %v793_v14, %v526_v17 }
 0x1fe   :  { %v653_v35 = vmul.f32 %v625_v43, %v962_v18 }
 0x1ff   :  { %670 = vst [vmem:[%s1232_s5 + $0x70] sm:$0xff] %v654_v57  ;;  %v636_v15 = vsel %vm635_vm1, %v526_v17, %v634_v63 }
 0x200   :  { %669 = vst [vmem:[%s1232_s5 + $0x68] sm:$0xff] %v653_v35  ;;  %v639_v44 = vsel %vm637_vm2, %v638_v0, %v636_v15 }
 0x201   :  { %v655_v1 = vmul.f32 %v639_v44, %v964_v19 }
 0x203   :  { %671 = vst [vmem:[%s1232_s5 + $0x78] sm:$0xff] %v655_v1 }

// kernel: scale_hyperprior_forward.29
= control target key start
LH: loop header
LB: loop body
LE: loop exit
PB: predicated region body
PF: predicated region fallthrough
CT: control target
= control target key end

     0   :  { %s699_s12 = smov 0   ;;  %s701_s13 = smov 0   ;;  %s830_s0 = inlined_call_operand.vmem [shape: bf16[72,2048], index: 0, kind: input, shape index: {}]   ;;  %s831_s1 = inlined_call_operand.vmem [shape: bf16[12,72], index: 1, kind: input, shape index: {}]   ;;  %s832_s2 = inlined_call_operand.vmem [shape: f32[12,1], index: 2, kind: input, shape index: {}]   ;;  %s833_s3 = inlined_call_operand.vmem [shape: f32[12,2048], index: 3, kind: output, shape index: {}]  }
   0x1   :  { %s703_s14 = smov 0  }
   0x2 LB: > { %s557_s15 = sadd.s32 4294967295, %s676_s14   ;;  %s716_s16 = sadd.s32 1, %s676_s14   ;;  %s676_s14 = sphi %s703_s14, %s837_s14   ;;  %s672_s13 = sphi %s701_s13, %s836_s13   ;;  %s668_s12 = sphi %s699_s12, %s835_s12  }
   0x3   : > { %s17_s17 = ssub.s32 %s676_s14, %s716_s16  ;;  %s20_s18 = sadd.s32 1, %s672_s13 }
   0x4   : > { %p18_p0 = scmp.eq.s32.totalorder %s17_s17, 0  ;;  %p27_p1 = scmp.ne.s32.totalorder %s672_s13, %s668_s12 }
   0x5   : > { %p28_p2 = scmp.eq.s32.totalorder %s676_s14, 0  ;;  %p99_p3 = scmp.eq.s32.totalorder %s557_s15, 3 }
   0x6   : > { %s727_s19 = scalar_select %p18_p0, %s672_s13, %s20_s18  }
   0x7   : > { %p29_p4 = por %p28_p2, %p27_p1  ;;  %p729_p5 = por %p99_p3, %p27_p1 }
   0x8   : > { %p560_p6 = scmp.ge.s32.totalorder %s676_s14, 4 }
   0xa   : > { %127 = sbr.rel (%p560_p6) target bundleno = 30 (0x1e), region = 24 }
  0x11   : > { %130 = sbr.rel (!%p29_p4) target bundleno = 30 (0x1e), region = 28  ;;  %s132_s21 = sand.u32 (%p29_p4), 1, %s672_s13  }
  0x12   : > { %s595_s22 = sshll.u32 (%p29_p4), %s676_s14, 4  ;;  %s597_s23 = smul.u32 (%p29_p4), 144, %s132_s21 }
  0x13   : > { %s739_s26 = scalar_lea.vmem (%p29_p4), %s830_s0, %s595_s22 }
  0x14   : > { %v150_v0 = vld [vmem:[%s739_s26] sm:$0xff] (%p29_p4)  ;;  %v152_v1 = vld [vmem:[%s739_s26 + $0x8] sm:$0xff] (%p29_p4)  ;;  %s134_s27 = scalar_lea.vmem (%p29_p4), [#allocation2], %s597_s23 }
  0x15   : > { %v154_v2 = vld [vmem:[%s739_s26 + $0x40] sm:$0xff] (%p29_p4)  ;;  %v156_v3 = vld [vmem:[%s739_s26 + $0x48] sm:$0xff] (%p29_p4)  ;;  %151 = vst [vmem:[%s134_s27] sm:$0xff] (%p29_p4), %v150_v0  ;;  %153 = vst [vmem:[%s134_s27 + $0x8] sm:$0xff] (%p29_p4), %v152_v1 }
  0x16   : > { %v158_v4 = vld [vmem:[%s739_s26 + $0x80] sm:$0xff] (%p29_p4)  ;;  %v160_v5 = vld [vmem:[%s739_s26 + $0x88] sm:$0xff] (%p29_p4)  ;;  %155 = vst [vmem:[%s134_s27 + $0x10] sm:$0xff] (%p29_p4), %v154_v2  ;;  %157 = vst [vmem:[%s134_s27 + $0x18] sm:$0xff] (%p29_p4), %v156_v3 }
  0x17   : > { %159 = vst [vmem:[%s134_s27 + $0x20] sm:$0xff] (%p29_p4), %v158_v4  ;;  %161 = vst [vmem:[%s134_s27 + $0x28] sm:$0xff] (%p29_p4), %v160_v5  ;;  %v162_v6 = vld [vmem:[%s739_s26 + $0xc0] sm:$0xff] (%p29_p4)  ;;  %v164_v7 = vld [vmem:[%s739_s26 + $0xc8] sm:$0xff] (%p29_p4) }
  0x18   : > { %v166_v8 = vld [vmem:[%s739_s26 + $0x100] sm:$0xff]  ;;  %163 = vst [vmem:[%s134_s27 + $0x30] sm:$0xff] %v162_v6  ;;  %165 = vst [vmem:[%s134_s27 + $0x38] sm:$0xff] %v164_v7  ;;  %v168_v9 = vld [vmem:[%s739_s26 + $0x108] sm:$0xff] }
  0x19   : > { %167 = vst [vmem:[%s134_s27 + $0x40] sm:$0xff] %v166_v8  ;;  %v170_v10 = vld [vmem:[%s739_s26 + $0x140] sm:$0xff]  ;;  %v172_v11 = vld [vmem:[%s739_s26 + $0x148] sm:$0xff]  ;;  %169 = vst [vmem:[%s134_s27 + $0x48] sm:$0xff] %v168_v9 }
  0x1a   : > { %171 = vst [vmem:[%s134_s27 + $0x50] sm:$0xff] %v170_v10  ;;  %173 = vst [vmem:[%s134_s27 + $0x58] sm:$0xff] %v172_v11  ;;  %v174_v12 = vld [vmem:[%s739_s26 + $0x180] sm:$0xff]  ;;  %v176_v13 = vld [vmem:[%s739_s26 + $0x188] sm:$0xff] }
  0x1b   : > { %v178_v14 = vld [vmem:[%s739_s26 + $0x1c0] sm:$0xff]  ;;  %175 = vst [vmem:[%s134_s27 + $0x60] sm:$0xff] %v174_v12  ;;  %177 = vst [vmem:[%s134_s27 + $0x68] sm:$0xff] %v176_v13  ;;  %v180_v15 = vld [vmem:[%s739_s26 + $0x1c8] sm:$0xff] }
  0x1c   : > { %179 = vst [vmem:[%s134_s27 + $0x70] sm:$0xff] %v178_v14  ;;  %v182_v16 = vld [vmem:[%s739_s26 + $0x200] sm:$0xff]  ;;  %v184_v17 = vld [vmem:[%s739_s26 + $0x208] sm:$0xff]  ;;  %181 = vst [vmem:[%s134_s27 + $0x78] sm:$0xff] %v180_v15 }
  0x1d   : > { %183 = vst [vmem:[%s134_s27 + $0x80] sm:$0xff] %v182_v16  ;;  %185 = vst [vmem:[%s134_s27 + $0x88] sm:$0xff] %v184_v17 }
  0x1e PF: > { %p563_p7 = scmp.ge.s32.totalorder %s676_s14, 1  ;;  %p190_p8 = scmp.lt.s32.totalorder %s676_s14, 5 }
  0x20   : > { %p191_p9 = pnand %p563_p7, %p190_p8 }
  0x21   : > { %s197_s28 = sand.u32 (!%p191_p9), 1, %s668_s12   ;;  %v678_v18 = vmov (!%p191_p9), 0   ;;  %v242_v19 = vld [vmem:[%s832_s2] sm:$0xff] (!%p191_p9)  ;;  %v243_v20 = vld [vmem:[%s832_s2 + $0x8] sm:$0xf] (!%p191_p9)  ;;  %vm353_vm0 = vcmask (!%p191_p9), 1043456  }
  0x22   : > { %194 = sbr.rel (%p191_p9) target bundleno = 286 (0x11e), region = 51  ;;  %398 = vmatprep.mubr.bf16.mxu0 (!%p191_p9), %v678_v18  ;;  %441 = vmatprep.mubr.bf16.mxu1 (!%p191_p9), %v678_v18  ;;  %v653_v45 = vld [vmem:[%s831_s1] sm:$0x3f] (!%p191_p9)   ;;  %vm349_vm1 = vcmask (!%p191_p9), 588800   ;;  %s564_s10 = sshll.u32 (!%p191_p9), %s197_s28, 6 }
  0x23   : > { %s598_s29 = smul.u32 (!%p191_p9), 144, %s197_s28  ;;  %624 = vset.pattern.permute.xlu0 (!%p191_p9), %v678_v18  ;;  %s795_s11 = scalar_lea.vmem (!%p191_p9), [#allocation3], %s564_s10 }
  0x24   : > { %246 = vperm.xlu0 (!%p191_p9), %624, %v242_v19  }
  0x25   : > { %s770_s7 = scalar_lea.vmem (!%p191_p9), [#allocation2], %s598_s29 }
  0x26   : > { %v625_v21 = vld [vmem:[%s770_s7 + $0x4] ss:$16 sps:$4 sm:$0xff] (!%p191_p9)   ;;  %v627_v22 = vld [vmem:[%s770_s7 + $0xc] ss:$16 sps:$4 sm:$0xff] (!%p191_p9)   ;;  %v629_v23 = vld [vmem:[%s770_s7] ss:$16 sps:$4 sm:$0xff] (!%p191_p9)  }
  0x27   : > { %366 = vmatprep.subr.bf16.mxu0 (!%p191_p9), %v625_v21  ;;  %v630_v24 = vld [vmem:[%s770_s7 + $0x8] ss:$16 sps:$4 sm:$0xff] (!%p191_p9)   ;;  %409 = vmatprep.subr.bf16.mxu1 (!%p191_p9), %v627_v22  ;;  %v631_v25 = vld [vmem:[%s770_s7 + $0x24] ss:$16 sps:$4 sm:$0xff] (!%p191_p9)   ;;  %v633_v26 = vld [vmem:[%s770_s7 + $0x2c] ss:$16 sps:$4 sm:$0xff] (!%p191_p9)  }
  0x28   : > { %251 = vperm.xlu0 (!%p191_p9), %624, %v243_v20   ;;  %367 = vmatpush1.bf16.msra.mxu0 (!%p191_p9), %v629_v23  ;;  %v635_v27 = vld [vmem:[%s770_s7 + $0x20] ss:$16 sps:$4 sm:$0xff] (!%p191_p9)   ;;  %v636_v28 = vld [vmem:[%s770_s7 + $0x28] ss:$16 sps:$4 sm:$0xff] (!%p191_p9)   ;;  %v637_v29 = vld [vmem:[%s770_s7 + $0x44] ss:$16 sps:$4 sm:$0xff] (!%p191_p9)  }
  0x29   : > { %410 = vmatpush1.bf16.msra.mxu1 %v630_v24  ;;  %368 = vmatprep.subr.bf16.mxu0 %v631_v25  ;;  %v639_v30 = vld [vmem:[%s770_s7 + $0x4c] ss:$16 sps:$4 sm:$0xff]   ;;  %v641_v31 = vld [vmem:[%s770_s7 + $0x40] ss:$16 sps:$4 sm:$0xff]   ;;  %v642_v32 = vld [vmem:[%s770_s7 + $0x48] ss:$16 sps:$4 sm:$0xff]  }
  0x2a   : > { %411 = vmatprep.subr.bf16.mxu1 %v633_v26  ;;  %v643_v33 = vld [vmem:[%s770_s7 + $0x64] ss:$16 sps:$4 sm:$0xff]   ;;  %v645_v34 = vld [vmem:[%s770_s7 + $0x6c] ss:$16 sps:$4 sm:$0xff]   ;;  %v647_v37 = vld [vmem:[%s770_s7 + $0x60] ss:$16 sps:$4 sm:$0xff]  }
  0x2b   : > { %v240_v35 = vld [vmem:[%s770_s7 + $0x80] sm:$0xff]  ;;  %v241_v36 = vld [vmem:[%s770_s7 + $0x88] sm:$0xff]  ;;  %s596_s12 = sshll.u32 (%p729_p5), %s557_s15, 5 }
  0x2c   : > { %369 = vmatpush1.bf16.msra.mxu0 %v635_v27  ;;  %v648_v38 = vld [vmem:[%s770_s7 + $0x68] ss:$16 sps:$4 sm:$0xff]   ;;  %v583_v39 = vcombine.high %v240_v35, %v240_v35  ;;  %v585_v40 = vcombine.high %v241_v36, %v241_v36  ;;  %v582_v41 = vcombine.low %v240_v35, %v240_v35  ;;  %v584_v42 = vcombine.low %v241_v36, %v241_v36  ;;  %s469_s21 = scalar_lea.vmem (%p729_p5), %s833_s3, %s596_s12 }
  0x2d   : > { %412 = vmatpush1.bf16.msra.mxu1 %v636_v28  ;;  %370 = vmatprep.subr.bf16.mxu0 %v637_v29 }
  0x2e   : > { %413 = vmatprep.subr.bf16.mxu1 %v639_v30  ;;  %v355_v43 = vsel %vm353_vm0, %v582_v41, 0  ;;  %v361_v44 = vsel %vm353_vm0, %v584_v42, 0 }
  0x30   : > { %371 = vmatpush1.bf16.msra.mxu0 %v641_v31 }
  0x31   : > { %414 = vmatpush1.bf16.msra.mxu1 %v642_v32  ;;  %372 = vmatprep.subr.bf16.mxu0 %v643_v33 }
  0x32   : > { %415 = vmatprep.subr.bf16.mxu1 %v645_v34 }
  0x34   : > { %373 = vmatpush1.bf16.msra.mxu0 %v647_v37 }
  0x35   : > { %416 = vmatpush1.bf16.msra.mxu1 %v648_v38  ;;  %586 = vmatprep.subr.msk.bf16.mxu0 %vm353_vm0, %v583_v39 }
  0x36   : > { %588 = vmatprep.subr.msk.bf16.mxu1 %vm353_vm0, %v585_v40 }
  0x38   : > { %375 = vmatpush1.bf16.msra.mxu0 %v355_v43 }
  0x39   : > { %418 = vmatpush1.bf16.msra.mxu1 %v361_v44 }
  0x3b   : > { %587 = vmatmul.mubr.msk.bf16.vlgmr.msra.gmra.mrb[0].mxu0 %vm349_vm1, %v653_v45 }
  0x3c   : > { %589 = vmatmul.mubr.msk.bf16.vlgmr.msra.gmra.mrb[0].mxu1 %vm349_vm1, %v653_v45 }
  0xa3   : > { %v247_v46 = vpop.permute.xlu0 %246 }
  0xa7   : > { %v252_v47 = vpop.permute.xlu0 %251 }
 0x10e   : > { %v400_v48 = vpop.f32.mrb[0].mxu0 }
 0x10f   : > { %v443_v49 = vpop.f32.mrb[0].mxu1  ;;  %v401_v50 = vadd.f32 %v400_v48, %v247_v46  ;;  %v402_v52 = vpop.f32.mrb[1].mxu0  ;;  %466 = sbr.rel (!%p729_p5) target bundleno = 286 (0x11e), region = 59 }
 0x110   : > { %v444_v51 = vadd.f32 %v443_v49, %v247_v46  ;;  %v445_v53 = vpop.f32.mrb[1].mxu1  ;;  %v403_v54 = vadd.f32 %v402_v52, %v247_v46  ;;  %v404_v56 = vpop.f32.mrb[2].mxu0 }
 0x111   : > { %v446_v55 = vadd.f32 %v445_v53, %v247_v46  ;;  %v447_v57 = vpop.f32.mrb[2].mxu1  ;;  %452 = vst [vmem:[%s795_s11] sm:$0xff] %v401_v50  ;;  %v405_v58 = vadd.f32 %v404_v56, %v252_v47  ;;  %v406_v60 = vpop.f32.mrb[3].mxu0 }
 0x112   : > { %454 = vst [vmem:[%s795_s11 + $0x10] sm:$0xff] %v444_v51  ;;  %v448_v59 = vadd.f32 %v447_v57, %v252_v47  ;;  %v449_v61 = vpop.f32.mrb[3].mxu1  ;;  %453 = vst [vmem:[%s795_s11 + $0x8] sm:$0xff] %v403_v54  ;;  %v407_v62 = vadd.f32 %v406_v60, %v252_v47 }
 0x113   : > { %455 = vst [vmem:[%s795_s11 + $0x18] sm:$0xff] %v446_v55  ;;  %v450_v63 = vadd.f32 %v449_v61, %v252_v47  ;;  %456 = vst [vmem:[%s795_s11 + $0x20] sm:$0xf] %v405_v58 }
 0x114   : > { %458 = vst [vmem:[%s795_s11 + $0x30] sm:$0xf] %v448_v59  ;;  %457 = vst [vmem:[%s795_s11 + $0x28] sm:$0xf] %v407_v62 }
 0x115   : > { %459 = vst [vmem:[%s795_s11 + $0x38] sm:$0xf] %v450_v63 }
 0x118   : > { %v482_v0 = vld [vmem:[%s795_s11] sm:$0xff] }
 0x119   : > { %v484_v1 = vld [vmem:[%s795_s11 + $0x8] sm:$0xff]  ;;  %v486_v2 = vld [vmem:[%s795_s11 + $0x10] sm:$0xff]  ;;  %483 = vst [vmem:[%s469_s21] sm:$0xff] %v482_v0 }
 0x11a   : > { %v488_v3 = vld [vmem:[%s795_s11 + $0x18] sm:$0xff]  ;;  %v490_v4 = vld [vmem:[%s795_s11 + $0x20] sm:$0xff]  ;;  %485 = vst [vmem:[%s469_s21 + $0x8] sm:$0xff] %v484_v1  ;;  %487 = vst [vmem:[%s469_s21 + $0x10] sm:$0xff] %v486_v2 }
 0x11b   : > { %v492_v5 = vld [vmem:[%s795_s11 + $0x28] sm:$0xff]  ;;  %489 = vst [vmem:[%s469_s21 + $0x18] sm:$0xff] %v488_v3  ;;  %491 = vst [vmem:[%s469_s21 + $0x80] sm:$0xff] %v490_v4  ;;  %v494_v6 = vld [vmem:[%s795_s11 + $0x30] sm:$0xff] }
 0x11c   : > { %493 = vst [vmem:[%s469_s21 + $0x88] sm:$0xff] %v492_v5  ;;  %v496_v7 = vld [vmem:[%s795_s11 + $0x38] sm:$0xff]  ;;  %495 = vst [vmem:[%s469_s21 + $0x90] sm:$0xff] %v494_v6 }
 0x11d   : > { %497 = vst [vmem:[%s469_s21 + $0x98] sm:$0xff] %v496_v7 }
 0x11e PF: > { %p10_p10 = scmp.ge.s32.totalorder %s716_s16, 6   ;;  %s835_s12 = smov %s672_s13 }
 0x11f   : > { %s836_s13 = smov %s727_s19  ;;  %s837_s14 = smov %s716_s16 }
 0x120   :  { %12 = sbr.rel (!%p10_p10) target bundleno = 2 (0x2), region = 113 }

</bundles_post_ra>
